<compile_context>
chip_gen: v5e
topology: v5e:2x2
jax: 0.10.0
libtpu: 0.0.40
codegen_flags: <defaults>
</compile_context>

<pallas_src>
import functools
import math

import numpy as np
import jax
import jax.numpy as jnp
from jax.experimental import pallas as pl
from jax.experimental.pallas import tpu as pltpu

OUT_H = 100
OUT_W = 100
_MAX_SLABS = 64          # bounds the stage-2 static unroll (and trace time)


def _r8(n: int) -> int:
    return -(-n // 8) * 8


def _r128(n: int) -> int:
    return -(-n // 128) * 128


@functools.lru_cache(maxsize=None)
def _adaptive_pool_matrix(in_size: int, out_size: int) -> np.ndarray:
    """PyTorch AdaptiveAvgPool bin matrix P (out_size, in_size), f32."""
    P = np.zeros((out_size, in_size), dtype=np.float32)
    for i in range(out_size):
        start = (i * in_size) // out_size              # floor
        end = -((-(i + 1) * in_size) // out_size)      # ceil
        P[i, start:end] = 1.0 / float(end - start)
    return P


@functools.lru_cache(maxsize=None)
def _hw_info() -> tuple:
    """(vmem_capacity_bytes, tensorcores) with conservative fallbacks."""
    vmem_cap = 64 << 20        # v7x per-core VMEM: smallest of the targets
    num_tc = 1
    try:
        info = pltpu.get_tpu_info()
        vmem_cap = int(getattr(info, "vmem_capacity_bytes", vmem_cap))
        for name in ("num_cores", "cores_per_chip", "num_tensorcores",
                     "tensorcore_count", "core_count"):
            v = getattr(info, name, None)
            if isinstance(v, int) and v > 0:
                num_tc = v
                break
    except Exception:
        pass
    if num_tc == 1:
        try:
            v = getattr(jax.devices()[0], "num_cores", None)
            if isinstance(v, int) and v > 0:
                num_tc = v
        except Exception:
            pass
    return vmem_cap, num_tc


def _pick_tiling(nc: int, h: int, w: int) -> tuple:
    """Return (B slabs per grid step, padded NC, vmem_limit_bytes)."""
    vmem_cap, num_tc = _hw_info()
    # ~40 MiB on 64 MiB (v7x) parts, ~80 MiB on 128 MiB (v5e/v6e) parts.
    vmem_limit = int(min(vmem_cap * 5 // 8, 80 << 20))

    # Layout-honest per-slab footprint (f32 bytes; lanes->128, sublanes->8).
    per_slab = 4 * (
        2 * _r8(h) * _r128(w)              # x block, double-buffered
        + 2 * _r8(OUT_H) * _r128(OUT_W)    # out block, double-buffered
        + _r8(h) * _r128(OUT_W)            # u = x @ P_w^T intermediate
        + _r8(OUT_H) * _r128(OUT_W)        # one in-flight stage-2 result tile
    )
    # Resident constants (double-buffered by default) + compiler scratch.
    fixed = 4 * 2 * (_r8(OUT_H) * _r128(h) + _r8(w) * _r128(OUT_W)) + (2 << 20)
    budget = max(per_slab, vmem_limit * 3 // 4 - fixed)

    cap = max(1, min(budget // per_slab, _MAX_SLABS, nc))
    if num_tc >= 2 and nc >= 2:
        cap = max(1, min(cap, nc // 2))    # keep both TensorCores fed

    # Sublane alignment: the (B*H, W) input block needs B*H % 8 == 0 unless it
    # spans the whole (padded) array.
    align = 8 // math.gcd(h, 8)

    best = None                            # largest aligned divisor of nc <= cap
    for b in range(cap, 0, -1):
        if nc % b:
            continue
        if (b * h) % 8 and b != nc:
            continue
        steps = nc // b
        if num_tc >= 2 and steps % 2:
            if best is None:
                best = b                   # odd step count: keep as fallback
            continue
        best = b
        break
    if best is not None and 2 * best >= cap:
        return best, nc, vmem_limit

    # No divisor near the VMEM-optimal B: pad NC to a multiple of the target B
    # instead of collapsing B toward 1 (costs at most one extra grid step plus
    # one HBM copy of x for the pad).
    b = max(align, (cap // align) * align)
    b = min(b, _MAX_SLABS)
    nc_pad = -(-nc // b) * b
    return b, nc_pad, vmem_limit


def _pool_kernel(ph_ref, x_ref, pwt_ref, o_ref):
    # ph_ref  : (OUT_H, H)     resident row-pooling matrix
    # x_ref   : (B*H, W)       B input slabs flattened along sublanes
    # pwt_ref : (W, OUT_W)     resident column-pooling matrix (transposed)
    # o_ref   : (B, OUT_H, OUT_W)
    h = ph_ref.shape[1]
    b = x_ref.shape[0] // h

    # Stage 1 (W contraction): one big MXU matmul over all B slabs at once.
    u = jnp.dot(x_ref[...], pwt_ref[...],
                preferred_element_type=jnp.float32,
                precision=jax.lax.Precision.HIGHEST)           # (B*H, OUT_W)

    # Stage 2 (H contraction): statically unrolled per-slab dots written
    # straight into the output block (no P_h broadcast, no batched dot).
    ph = ph_ref[...]
    for s in range(b):
        y = jnp.dot(ph, u[s * h:(s + 1) * h, :],
                    preferred_element_type=jnp.float32,
                    precision=jax.lax.Precision.HIGHEST)       # (OUT_H, OUT_W)
        o_ref[s] = y.astype(o_ref.dtype)


def cmvit_repeat_forward(x: jax.Array, n_blocks: int = 6) -> jax.Array:
    """x: (N, C, H, W) float32 -> (N, C, 100, 100) float32."""
    del n_blocks    # the MViT_combined_cmf blocks are the identity on x

    N, C, H, W = x.shape
    nc = N * C
    B, nc_pad, vmem_limit = _pick_tiling(nc, H, W)

    ph = jnp.asarray(_adaptive_pool_matrix(H, OUT_H))           # (100, H)
    pwt = jnp.asarray(_adaptive_pool_matrix(W, OUT_W).T)        # (W, 100)

    x_flat = x.reshape(nc * H, W)
    if nc_pad != nc:
        x_flat = jnp.pad(x_flat, ((0, (nc_pad - nc) * H), (0, 0)))

    steps = nc_pad // B
    flops = int(2 * nc_pad * H * OUT_W * (W + OUT_H))
    bytes_accessed = int(4 * (nc_pad * (H * W + OUT_H * OUT_W)
                              + OUT_H * H + W * OUT_W))

    out = pl.pallas_call(
        _pool_kernel,
        out_shape=jax.ShapeDtypeStruct((nc_pad, OUT_H, OUT_W), x.dtype),
        grid_spec=pltpu.PrefetchScalarGridSpec(
            num_scalar_prefetch=0,
            grid=(steps,),
            in_specs=[
                pl.BlockSpec((OUT_H, H), lambda i: (0, 0)),     # P_h, resident
                pl.BlockSpec((B * H, W), lambda i: (i, 0)),     # B slabs / step
                pl.BlockSpec((W, OUT_W), lambda i: (0, 0)),     # P_w^T, resident
            ],
            out_specs=pl.BlockSpec((B, OUT_H, OUT_W), lambda i: (i, 0, 0)),
        ),
        compiler_params=pltpu.CompilerParams(
            dimension_semantics=("parallel",),
            vmem_limit_bytes=vmem_limit),
        cost_estimate=pl.CostEstimate(
            flops=flops, transcendentals=0, bytes_accessed=bytes_accessed),
    )(ph, x_flat, pwt)

    if nc_pad != nc:
        out = out[:nc]
    return out.reshape(N, C, OUT_H, OUT_W)


def _reference_adaptive_avg_pool(x: np.ndarray) -> np.ndarray:
    """Plain-numpy reference of torch AdaptiveAvgPool2d((100,100))."""
    N, C, H, W = x.shape
    out = np.zeros((N, C, OUT_H, OUT_W), dtype=np.float32)
    for i in range(OUT_H):
        hs = (i * H) // OUT_H
        he = -((-(i + 1) * H) // OUT_H)
        for j in range(OUT_W):
            ws = (j * W) // OUT_W
            we = -((-(j + 1) * W) // OUT_W)
            out[:, :, i, j] = x[:, :, hs:he, ws:we].mean(axis=(2, 3))
    return out


if __name__ == "__main__":
    key = jax.random.PRNGKey(0)
    # Small, module-consistent input: batch=2, in_channels=3, spatial=16 (NCHW).
    x = jax.random.normal(key, (2, 3, 16, 16), dtype=jnp.float32)

    forward = jax.jit(cmvit_repeat_forward)   # P_h / P_w^T fold to constants
    y = jax.block_until_ready(forward(x))

    assert y.shape == (2, 3, 100, 100), y.shape
    ref = _reference_adaptive_avg_pool(np.asarray(x))
    np.testing.assert_allclose(np.asarray(y), ref, rtol=1e-5, atol=1e-5)

    print("KERNEL_OK")
</pallas_src>

<mosaic_0001>
module attributes {stable_mosaic.version = 11 : i64} {
  func.func @_pool_kernel(%arg0: i32, %arg1: memref<100x16xf32, #tpu.memory_space<vmem>>, %arg2: memref<96x16xf32, #tpu.memory_space<vmem>>, %arg3: memref<16x100xf32, #tpu.memory_space<vmem>>, %arg4: memref<6x100x100xf32, #tpu.memory_space<vmem>>) attributes {dimension_semantics = [#tpu.dimension_semantics<parallel>], iteration_bounds = array<i64: 1>, scalar_prefetch = 0 : i64, scratch_operands = 0 : i64, tpu.core_type = #tpu.core_type<tc>, window_params = [{pipeline_mode = #tpu.pipeline_mode<synchronous>, transform_indices = @transform_0, window_bounds = array<i64: 100, 16>}, {transform_indices = @transform_1, window_bounds = array<i64: 96, 16>}, {pipeline_mode = #tpu.pipeline_mode<synchronous>, transform_indices = @transform_2, window_bounds = array<i64: 16, 100>}, {transform_indices = @transform_3, window_bounds = array<i64: 6, 100, 100>}]} {
    %c0 = arith.constant 0 : index
    %c0_0 = arith.constant 0 : index
    %0 = vector.load %arg2[%c0, %c0_0] : memref<96x16xf32, #tpu.memory_space<vmem>>, vector<96x16xf32>
    %c0_1 = arith.constant 0 : index
    %c0_2 = arith.constant 0 : index
    %1 = vector.load %arg3[%c0_1, %c0_2] : memref<16x100xf32, #tpu.memory_space<vmem>>, vector<16x100xf32>
    %cst = arith.constant dense<0.000000e+00> : vector<96x100xf32>
    %2 = tpu.matmul %0, %1, %cst {dimension_numbers = #tpu.dot_dimension_numbers<[1], [0], [0], [1], [0, 0, 1, 1], [], []>, precision = #tpu.contract_precision<fp32>} : vector<96x16xf32>, vector<16x100xf32>, vector<96x100xf32> -> vector<96x100xf32>
    %c0_3 = arith.constant 0 : index
    %c0_4 = arith.constant 0 : index
    %3 = vector.load %arg1[%c0_3, %c0_4] : memref<100x16xf32, #tpu.memory_space<vmem>>, vector<100x16xf32>
    %4 = vector.extract_strided_slice %2 {offsets = [0, 0], sizes = [16, 100], strides = [1, 1]} : vector<96x100xf32> to vector<16x100xf32>
    %cst_5 = arith.constant dense<0.000000e+00> : vector<100x100xf32>
    %5 = tpu.matmul %3, %4, %cst_5 {dimension_numbers = #tpu.dot_dimension_numbers<[1], [0], [0], [1], [0, 0, 1, 1], [], []>, precision = #tpu.contract_precision<fp32>} : vector<100x16xf32>, vector<16x100xf32>, vector<100x100xf32> -> vector<100x100xf32>
    %c0_6 = arith.constant 0 : index
    %c0_7 = arith.constant 0 : index
    %c0_8 = arith.constant 0 : index
    %6 = vector.load %arg4[%c0_6, %c0_7, %c0_8] : memref<6x100x100xf32, #tpu.memory_space<vmem>>, vector<1x100x100xf32>
    %7 = vector.shape_cast %6 : vector<1x100x100xf32> to vector<100x100xf32>
    %8 = vector.shape_cast %5 : vector<100x100xf32> to vector<1x100x100xf32>
    tpu.vector_store %arg4[%c0_6, %c0_7, %c0_8], %8 {strides = array<i32>} : memref<6x100x100xf32, #tpu.memory_space<vmem>>, vector<1x100x100xf32>,
    %9 = vector.extract_strided_slice %2 {offsets = [16, 0], sizes = [16, 100], strides = [1, 1]} : vector<96x100xf32> to vector<16x100xf32>
    %cst_9 = arith.constant dense<0.000000e+00> : vector<100x100xf32>
    %10 = tpu.matmul %3, %9, %cst_9 {dimension_numbers = #tpu.dot_dimension_numbers<[1], [0], [0], [1], [0, 0, 1, 1], [], []>, precision = #tpu.contract_precision<fp32>} : vector<100x16xf32>, vector<16x100xf32>, vector<100x100xf32> -> vector<100x100xf32>
    %c1 = arith.constant 1 : index
    %c0_10 = arith.constant 0 : index
    %c0_11 = arith.constant 0 : index
    %11 = vector.load %arg4[%c1, %c0_10, %c0_11] : memref<6x100x100xf32, #tpu.memory_space<vmem>>, vector<1x100x100xf32>
    %12 = vector.shape_cast %11 : vector<1x100x100xf32> to vector<100x100xf32>
    %13 = vector.shape_cast %10 : vector<100x100xf32> to vector<1x100x100xf32>
    tpu.vector_store %arg4[%c1, %c0_10, %c0_11], %13 {strides = array<i32>} : memref<6x100x100xf32, #tpu.memory_space<vmem>>, vector<1x100x100xf32>,
    %14 = vector.extract_strided_slice %2 {offsets = [32, 0], sizes = [16, 100], strides = [1, 1]} : vector<96x100xf32> to vector<16x100xf32>
    %cst_12 = arith.constant dense<0.000000e+00> : vector<100x100xf32>
    %15 = tpu.matmul %3, %14, %cst_12 {dimension_numbers = #tpu.dot_dimension_numbers<[1], [0], [0], [1], [0, 0, 1, 1], [], []>, precision = #tpu.contract_precision<fp32>} : vector<100x16xf32>, vector<16x100xf32>, vector<100x100xf32> -> vector<100x100xf32>
    %c2 = arith.constant 2 : index
    %c0_13 = arith.constant 0 : index
    %c0_14 = arith.constant 0 : index
    %16 = vector.load %arg4[%c2, %c0_13, %c0_14] : memref<6x100x100xf32, #tpu.memory_space<vmem>>, vector<1x100x100xf32>
    %17 = vector.shape_cast %16 : vector<1x100x100xf32> to vector<100x100xf32>
    %18 = vector.shape_cast %15 : vector<100x100xf32> to vector<1x100x100xf32>
    tpu.vector_store %arg4[%c2, %c0_13, %c0_14], %18 {strides = array<i32>} : memref<6x100x100xf32, #tpu.memory_space<vmem>>, vector<1x100x100xf32>,
    %19 = vector.extract_strided_slice %2 {offsets = [48, 0], sizes = [16, 100], strides = [1, 1]} : vector<96x100xf32> to vector<16x100xf32>
    %cst_15 = arith.constant dense<0.000000e+00> : vector<100x100xf32>
    %20 = tpu.matmul %3, %19, %cst_15 {dimension_numbers = #tpu.dot_dimension_numbers<[1], [0], [0], [1], [0, 0, 1, 1], [], []>, precision = #tpu.contract_precision<fp32>} : vector<100x16xf32>, vector<16x100xf32>, vector<100x100xf32> -> vector<100x100xf32>
    %c3 = arith.constant 3 : index
    %c0_16 = arith.constant 0 : index
    %c0_17 = arith.constant 0 : index
    %21 = vector.load %arg4[%c3, %c0_16, %c0_17] : memref<6x100x100xf32, #tpu.memory_space<vmem>>, vector<1x100x100xf32>
    %22 = vector.shape_cast %21 : vector<1x100x100xf32> to vector<100x100xf32>
    %23 = vector.shape_cast %20 : vector<100x100xf32> to vector<1x100x100xf32>
    tpu.vector_store %arg4[%c3, %c0_16, %c0_17], %23 {strides = array<i32>} : memref<6x100x100xf32, #tpu.memory_space<vmem>>, vector<1x100x100xf32>,
    %24 = vector.extract_strided_slice %2 {offsets = [64, 0], sizes = [16, 100], strides = [1, 1]} : vector<96x100xf32> to vector<16x100xf32>
    %cst_18 = arith.constant dense<0.000000e+00> : vector<100x100xf32>
    %25 = tpu.matmul %3, %24, %cst_18 {dimension_numbers = #tpu.dot_dimension_numbers<[1], [0], [0], [1], [0, 0, 1, 1], [], []>, precision = #tpu.contract_precision<fp32>} : vector<100x16xf32>, vector<16x100xf32>, vector<100x100xf32> -> vector<100x100xf32>
    %c4 = arith.constant 4 : index
    %c0_19 = arith.constant 0 : index
    %c0_20 = arith.constant 0 : index
    %26 = vector.load %arg4[%c4, %c0_19, %c0_20] : memref<6x100x100xf32, #tpu.memory_space<vmem>>, vector<1x100x100xf32>
    %27 = vector.shape_cast %26 : vector<1x100x100xf32> to vector<100x100xf32>
    %28 = vector.shape_cast %25 : vector<100x100xf32> to vector<1x100x100xf32>
    tpu.vector_store %arg4[%c4, %c0_19, %c0_20], %28 {strides = array<i32>} : memref<6x100x100xf32, #tpu.memory_space<vmem>>, vector<1x100x100xf32>,
    %29 = vector.extract_strided_slice %2 {offsets = [80, 0], sizes = [16, 100], strides = [1, 1]} : vector<96x100xf32> to vector<16x100xf32>
    %cst_21 = arith.constant dense<0.000000e+00> : vector<100x100xf32>
    %30 = tpu.matmul %3, %29, %cst_21 {dimension_numbers = #tpu.dot_dimension_numbers<[1], [0], [0], [1], [0, 0, 1, 1], [], []>, precision = #tpu.contract_precision<fp32>} : vector<100x16xf32>, vector<16x100xf32>, vector<100x100xf32> -> vector<100x100xf32>
    %c5 = arith.constant 5 : index
    %c0_22 = arith.constant 0 : index
    %c0_23 = arith.constant 0 : index
    %31 = vector.load %arg4[%c5, %c0_22, %c0_23] : memref<6x100x100xf32, #tpu.memory_space<vmem>>, vector<1x100x100xf32>
    %32 = vector.shape_cast %31 : vector<1x100x100xf32> to vector<100x100xf32>
    %33 = vector.shape_cast %30 : vector<100x100xf32> to vector<1x100x100xf32>
    tpu.vector_store %arg4[%c5, %c0_22, %c0_23], %33 {strides = array<i32>} : memref<6x100x100xf32, #tpu.memory_space<vmem>>, vector<1x100x100xf32>,
    return
  }
  func.func @transform_0(%arg0: i32) -> (i32, i32) {
    %c0_i32 = arith.constant 0 : i32
    %c0_i32_0 = arith.constant 0 : i32
    %c0_i32_1 = arith.constant 0 : i32
    return %c0_i32, %c0_i32_0 : i32, i32
  }
  func.func @transform_1(%arg0: i32) -> (i32, i32) {
    %c0_i32 = arith.constant 0 : i32
    %c0_i32_0 = arith.constant 0 : i32
    return %arg0, %c0_i32 : i32, i32
  }
  func.func @transform_2(%arg0: i32) -> (i32, i32) {
    %c0_i32 = arith.constant 0 : i32
    %c0_i32_0 = arith.constant 0 : i32
    %c0_i32_1 = arith.constant 0 : i32
    return %c0_i32, %c0_i32_0 : i32, i32
  }
  func.func @transform_3(%arg0: i32) -> (i32, i32, i32) {
    %c0_i32 = arith.constant 0 : i32
    %c0_i32_0 = arith.constant 0 : i32
    %c0_i32_1 = arith.constant 0 : i32
    return %arg0, %c0_i32, %c0_i32_0 : i32, i32, i32
  }
}

</mosaic_0001>

<bundles_post_ra>
// kernel: cmvit_repeat_forward.1
= control target key start
LH: loop header
LB: loop body
LE: loop exit
PB: predicated region body
PF: predicated region fallthrough
CT: control target
= control target key end

     0   :  { %8 = vsyncpa [#allocation3], 0  ;;  %s5822_s0 = inlined_call_operand.hbm [shape: f32[100,16], index: 0, kind: input, shape index: {}]   ;;  %s5823_s1 = inlined_call_operand.hbm [shape: f32[96,16], index: 1, kind: input, shape index: {}]   ;;  %s5824_s2 = inlined_call_operand.hbm [shape: f32[16,100], index: 2, kind: input, shape index: {}]   ;;  %s5825_s3 = inlined_call_operand.vmem [shape: f32[6,100,100], index: 3, kind: output, shape index: {}]  }
   0x1   :  { %9 = vsyncpa [#allocation5], 0  ;;  %s27_s14 = sshll.u32 %s5823_s1, 4  ;;  %s4091_s15 = smov [#allocation4]   ;;  %s28_s14 = int_to_ptr.hbm [resolvable:$true] %s27_s14 }
   0x2   :  { %s29_s16 = sshll.u32 %s4091_s15, 4  ;;  %s14_s19 = sshll.u32 %s5822_s0, 4  ;;  %s30_s16 = int_to_ptr.vmem [resolvable:$true] %s29_s16  ;;  %s15_s19 = int_to_ptr.hbm [resolvable:$true] %s14_s19 }
   0x3   :  { %s4092_s20 = smov 128   ;;  %s4093_s21 = smov 8  }
   0x4   :  { %35 = dma.hbm_to_vmem [thread:$0]  %s28_s14, 1536, %s30_s16, [#allocation5], %s4092_s20, %s4092_s20, %s4093_s21  }
   0x5   :  { %s4094_s22 = smov [#allocation2]   ;;  %s40_s26 = sshll.u32 %s5824_s2, 4  ;;  %s41_s26 = int_to_ptr.hbm [resolvable:$true] %s40_s26 }
   0x6   :  { %s16_s23 = sshll.u32 %s4094_s22, 4  ;;  %s4095_s1 = smov [#allocation6]   ;;  %s17_s23 = int_to_ptr.vmem [resolvable:$true] %s16_s23 }
   0x7   :  { %22 = dma.hbm_to_vmem [thread:$0]  %s15_s19, 1664, %s17_s23, [#allocation3], %s4092_s20, %s4092_s20, %s4093_s21  }
   0x8   :  { %s42_s27 = sshll.u32 %s4095_s1, 4  ;;  %s43_s27 = int_to_ptr.vmem [resolvable:$true] %s42_s27 }
   0x9   :  { %48 = dma.hbm_to_vmem [thread:$0]  %s41_s26, 256, %s43_s27, [#allocation5], %s4092_s20, %s4092_s20, %s4093_s21  }
   0xa   :  { %4087 = dma.done.wait [#allocation3], 1664  }
   0xb   :  { %4088 = vsyncadd [#allocation3], 4294965632 }
   0xc   :  { %4089 = dma.done.wait [#allocation5], 1792  }
   0xd   :  { %4090 = vsyncadd [#allocation5], 4294965504  ;;  %vm75_vm0 = vcmask 130048   ;;  %v74_v0 = vld [vmem:[#allocation6 + $0x8] sm:$0xff]  ;;  %v73_v1 = vld [vmem:[#allocation6] sm:$0xff]  ;;  %vm1195_vm1 = vcmask 818176  }
   0xe   :  { %v67_v2 = vld [vmem:[#allocation4 + $0x30] sm:$0xff]  ;;  %v4125_v3 = vand.u32 4294901760, %v74_v0  ;;  %v4127_v4 = vand.u32 4294901760, %v73_v1  ;;  %v68_v6 = vld [vmem:[#allocation4 + $0x38] sm:$0xff]  ;;  %v61_v7 = vld [vmem:[#allocation4] sm:$0xff]  ;;  %vm1208_vm2 = vcmask 814080  }
   0xf   :  { %v95_v5 = vsel %vm75_vm0, %v67_v2, 0  ;;  %v69_v8 = vld [vmem:[#allocation4 + $0x40] sm:$0xff]  ;;  %v98_v10 = vsel %vm75_vm0, %v68_v6, 0  ;;  %v77_v11 = vsel %vm75_vm0, %v61_v7, 0  ;;  %v62_v12 = vld [vmem:[#allocation4 + $0x8] sm:$0xff]  ;;  %v63_v33 = vld [vmem:[#allocation4 + $0x10] sm:$0xff] }
  0x10   :  { %v4130_v9 = vand.u32 4294901760, %v95_v5  ;;  %4006 = vmatpush.msra.mxu2 %v4125_v3  ;;  %v242_v13 = vsub.f32 %v74_v0, %v4125_v3  ;;  %v248_v14 = vsub.f32 %v73_v1, %v4127_v4  ;;  %127 = vmatpush.msra.mxu0 %v4125_v3  ;;  %v4138_v15 = vand.u32 4294901760, %v98_v10  ;;  %v70_v39 = vld [vmem:[#allocation4 + $0x48] sm:$0xff]  ;;  %v64_v45 = vld [vmem:[#allocation4 + $0x18] sm:$0xff]  ;;  %v71_v55 = vld [vmem:[#allocation4 + $0x50] sm:$0xff] }
  0x11   :  { %v4140_v16 = vand.u32 4294901760, %v77_v11  ;;  %v101_v18 = vsel %vm75_vm0, %v69_v8, 0  ;;  %v80_v19 = vsel %vm75_vm0, %v62_v12, 0  ;;  %v83_v41 = vsel %vm75_vm0, %v63_v33, 0  ;;  %v65_v59 = vld [vmem:[#allocation4 + $0x20] sm:$0xff] }
  0x12   :  { %v4143_v17 = vsub.f32 %v95_v5, %v4130_v9  ;;  %4007 = vmatpush.msra.mxu2 %v4127_v4  ;;  %v243_v20 = vand.u32 4294901760, %v242_v13  ;;  %v249_v21 = vand.u32 4294901760, %v248_v14  ;;  %v4149_v22 = vsub.f32 %v98_v10, %v4138_v15  ;;  %129 = vmatpush.msra.mxu0 %v4127_v4  ;;  %v72_v5 = vld [vmem:[#allocation4 + $0x58] sm:$0xff]  ;;  %v66_v10 = vld [vmem:[#allocation4 + $0x28] sm:$0xff] }
  0x13   :  { %v4153_v23 = vsub.f32 %v77_v11, %v4140_v16  ;;  %v4156_v25 = vand.u32 4294901760, %v80_v19  ;;  %v4163_v31 = vand.u32 4294901760, %v101_v18  ;;  %v4179_v44 = vand.u32 4294901760, %v83_v41 }
  0x14   :  { %v180_v24 = vand.u32 4294901760, %v4143_v17  ;;  %318 = vmatpush.msrb.mxu2 %v242_v13  ;;  %v244_v26 = vsub.f32 %v242_v13, %v243_v20  ;;  %v250_v27 = vsub.f32 %v248_v14, %v249_v21  ;;  %491 = vmatpush.msrb.mxu0 %v243_v20  ;;  %v188_v30 = vand.u32 4294901760, %v4149_v22 }
  0x15   :  { %v132_v28 = vand.u32 4294901760, %v4153_v23  ;;  %v4166_v32 = vsub.f32 %v80_v19, %v4156_v25  ;;  %v4177_v43 = vsub.f32 %v101_v18, %v4163_v31  ;;  %v104_v46 = vsel %vm75_vm0, %v70_v39, 0 }
  0x16   :  { %v181_v29 = vsub.f32 %v4143_v17, %v180_v24  ;;  %321 = vmatpush.msrb.mxu2 %v248_v14  ;;  %v245_v34 = vand.u32 4294901760, %v244_v26  ;;  %v251_v35 = vand.u32 4294901760, %v250_v27  ;;  %495 = vmatpush.msrb.mxu0 %v249_v21  ;;  %v189_v42 = vsub.f32 %v4149_v22, %v188_v30 }
  0x17   :  { %v133_v36 = vsub.f32 %v4153_v23, %v132_v28  ;;  %v140_v38 = vand.u32 4294901760, %v4166_v32  ;;  %v4187_v48 = vsub.f32 %v83_v41, %v4179_v44  ;;  %v86_v49 = vsel %vm75_vm0, %v64_v45, 0 }
  0x18   :  { %v182_v37 = vand.u32 4294901760, %v181_v29  ;;  %4008 = vmatpush.msra.mxu3 %v245_v34  ;;  %246 = vmatpush.msra.mxu1 %v245_v34  ;;  %v190_v50 = vand.u32 4294901760, %v189_v42  ;;  %v196_v51 = vand.u32 4294901760, %v4177_v43  ;;  %v4193_v52 = vand.u32 4294901760, %v104_v46 }
  0x19   :  { %v134_v40 = vand.u32 4294901760, %v133_v36  ;;  %v141_v47 = vsub.f32 %v4166_v32, %v140_v38  ;;  %v148_v54 = vand.u32 4294901760, %v4187_v48  ;;  %v4198_v56 = vand.u32 4294901760, %v86_v49 }
  0x1a   :  { %183 = vmatmul.f32.vlgmr.msra.gmra.mxu2 %v182_v37  ;;  %4009 = vmatpush.msra.mxu3 %v251_v35  ;;  %v197_v57 = vsub.f32 %v4177_v43, %v196_v51  ;;  %v4205_v58 = vsub.f32 %v104_v46, %v4193_v52  ;;  %v107_v60 = vsel %vm75_vm0, %v71_v55, 0  ;;  %v89_v63 = vsel %vm75_vm0, %v65_v59, 0 }
  0x1b   :  { %252 = vmatpush.msra.mxu1 %v251_v35  ;;  %278 = vmatmul.f32.vlgmr.msra.gmra.mxu3 %v4130_v9  ;;  %v142_v53 = vand.u32 4294901760, %v141_v47  ;;  %v149_v61 = vsub.f32 %v4187_v48, %v148_v54  ;;  %v4213_v62 = vsub.f32 %v86_v49, %v4198_v56  ;;  %v4218_v2 = vand.u32 4294901760, %v107_v60 }
  0x1c   :  { %135 = vmatmul.f32.vlgmr.msra.gmra.mxu0 %v134_v40  ;;  %254 = vmatmul.f32.vlgmr.msra.gmra.mxu1 %v4140_v16  ;;  %v198_v0 = vand.u32 4294901760, %v197_v57  ;;  %v204_v1 = vand.u32 4294901760, %v4205_v58  ;;  %v162_v6 = vand.u32 4294901760, %v89_v63  ;;  %v110_v11 = vsel %vm75_vm0, %v72_v5, 0  ;;  %v612_v57 = vld [vmem:[#allocation2] sm:$0xff] }
  0x1d   :  { %398 = vmatpush.msrb.mxu3 %v4125_v3  ;;  %560 = vmatpush.msrb.mxu1 %v4125_v3  ;;  %v150_v3 = vand.u32 4294901760, %v149_v61  ;;  %v4225_v8 = vsub.f32 %v107_v60, %v4218_v2  ;;  %v92_v14 = vsel %vm75_vm0, %v66_v10, 0  ;;  %v4233_v20 = vand.u32 4294901760, %v110_v11 }
  0x1e   :  { %v205_v7 = vsub.f32 %v4205_v58, %v204_v1  ;;  %v163_v13 = vsub.f32 %v89_v63, %v162_v6  ;;  %v170_v27 = vand.u32 4294901760, %v92_v14  ;;  %v626_v60 = vsel %vm75_vm0, %v612_v57, 0 }
  0x1f   :  { %400 = vmatpush.msrb.mxu3 %v4127_v4  ;;  %562 = vmatpush.msrb.mxu1 %v4127_v4  ;;  %v156_v4 = vand.u32 4294901760, %v4213_v62  ;;  %v212_v19 = vand.u32 4294901760, %v4225_v8  ;;  %v4239_v33 = vsub.f32 %v110_v11, %v4233_v20 }
  0x20   :  { %v206_v18 = vand.u32 4294901760, %v205_v7  ;;  %v164_v26 = vand.u32 4294901760, %v163_v13  ;;  %v171_v35 = vsub.f32 %v92_v14, %v170_v27 }
  0x21   :  { %v157_v12 = vsub.f32 %v4213_v62, %v156_v4  ;;  %v213_v29 = vsub.f32 %v4225_v8, %v212_v19  ;;  %v220_v37 = vand.u32 4294901760, %v4239_v33 }
  0x22   :  { %191 = vmatmul.f32.gmra.mxu2 %v190_v50  ;;  %v165_v34 = vsub.f32 %v163_v13, %v164_v26  ;;  %v172_v40 = vand.u32 4294901760, %v171_v35 }
  0x23   :  { %282 = vmatmul.f32.gmra.mxu3 %v4138_v15  ;;  %v158_v21 = vand.u32 4294901760, %v157_v12  ;;  %v214_v36 = vand.u32 4294901760, %v213_v29  ;;  %v221_v41 = vsub.f32 %v4239_v33, %v220_v37 }
  0x24   :  { %143 = vmatmul.f32.gmra.mxu0 %v142_v53  ;;  %258 = vmatmul.f32.gmra.mxu1 %v4156_v25  ;;  %v166_v39 = vand.u32 4294901760, %v165_v34  ;;  %v173_v42 = vsub.f32 %v171_v35, %v172_v40 }
  0x25   :  { %v222_v45 = vand.u32 4294901760, %v221_v41 }
  0x26   :  { %v174_v46 = vand.u32 4294901760, %v173_v42 }
  0x2a   :  { %199 = vmatmul.f32.gmra.mxu2 %v198_v0  ;;  %v4334_v0 = vand.u32 4294901760, %v626_v60 }
  0x2b   :  { %286 = vmatmul.f32.gmra.mxu3 %v4163_v31 }
  0x2c   :  { %151 = vmatmul.f32.gmra.mxu0 %v150_v3  ;;  %262 = vmatmul.f32.gmra.mxu1 %v4179_v44  ;;  %v4337_v5 = vsub.f32 %v626_v60, %v4334_v0 }
  0x2e   :  { %5947 = vst [vmem:[#allocation17_spill] sm:$0xff] %v4337_v5  ;;  %v4341_v14 = vand.u32 4294901760, %v4337_v5 }
  0x30   :  { %5948 = vst [vmem:[#allocation18_spill] sm:$0xff] %v4341_v14 }
  0x32   :  { %207 = vmatmul.f32.gmra.mxu2 %v206_v18 }
  0x33   :  { %290 = vmatmul.f32.gmra.mxu3 %v4193_v52 }
  0x34   :  { %159 = vmatmul.f32.gmra.mxu0 %v158_v21  ;;  %266 = vmatmul.f32.gmra.mxu1 %v4198_v56  ;;  %v614_v21 = vld [vmem:[#allocation2 + $0x10] sm:$0xff] }
  0x3a   :  { %215 = vmatmul.f32.gmra.mxu2 %v214_v36  ;;  %v632_v36 = vsel %vm75_vm0, %v614_v21, 0 }
  0x3b   :  { %294 = vmatmul.f32.gmra.mxu3 %v4218_v2 }
  0x3c   :  { %167 = vmatmul.f32.gmra.mxu0 %v166_v39  ;;  %270 = vmatmul.f32.gmra.mxu1 %v162_v6 }
  0x42   :  { %223 = vmatmul.f32.gmra.mxu2 %v222_v45 }
  0x43   :  { %298 = vmatmul.f32.gmra.mxu3 %v4233_v20 }
  0x44   :  { %175 = vmatmul.f32.gmra.mxu0 %v174_v46  ;;  %274 = vmatmul.f32.gmra.mxu1 %v170_v27 }
  0x4a   :  { %324 = vmatmul.f32.vlgmr.msrb.gmra.mxu2 %v4153_v23 }
  0x4b   :  { %404 = vmatmul.f32.vlgmr.msrb.gmra.mxu3 %v132_v28 }
  0x4c   :  { %497 = vmatmul.f32.vlgmr.msrb.gmra.mxu0 %v4140_v16  ;;  %564 = vmatmul.f32.vlgmr.msrb.gmra.mxu1 %v4140_v16 }
  0x52   :  { %329 = vmatmul.f32.gmra.mxu2 %v4166_v32 }
  0x53   :  { %410 = vmatmul.f32.gmra.mxu3 %v140_v38 }
  0x54   :  { %501 = vmatmul.f32.gmra.mxu0 %v4156_v25  ;;  %568 = vmatmul.f32.gmra.mxu1 %v4156_v25 }
  0x5a   :  { %334 = vmatmul.f32.gmra.mxu2 %v4187_v48 }
  0x5b   :  { %416 = vmatmul.f32.gmra.mxu3 %v148_v54 }
  0x5c   :  { %505 = vmatmul.f32.gmra.mxu0 %v4179_v44  ;;  %572 = vmatmul.f32.gmra.mxu1 %v4179_v44 }
  0x62   :  { %339 = vmatmul.f32.gmra.mxu2 %v4213_v62 }
  0x63   :  { %422 = vmatmul.f32.gmra.mxu3 %v156_v4 }
  0x64   :  { %509 = vmatmul.f32.gmra.mxu0 %v4198_v56  ;;  %576 = vmatmul.f32.gmra.mxu1 %v4198_v56 }
  0x6a   :  { %344 = vmatmul.f32.gmra.mxu2 %v163_v13 }
  0x6b   :  { %428 = vmatmul.f32.gmra.mxu3 %v164_v26 }
  0x6c   :  { %513 = vmatmul.f32.gmra.mxu0 %v162_v6  ;;  %580 = vmatmul.f32.gmra.mxu1 %v162_v6 }
  0x72   :  { %349 = vmatmul.f32.gmra.mxu2 %v171_v35 }
  0x73   :  { %434 = vmatmul.f32.gmra.mxu3 %v172_v40 }
  0x74   :  { %517 = vmatmul.f32.gmra.mxu0 %v170_v27  ;;  %584 = vmatmul.f32.gmra.mxu1 %v170_v27  ;;  %v685_v27 = vsub.f32 %v4337_v5, %v4341_v14 }
  0x76   :  { %v4354_v46 = vand.u32 4294901760, %v685_v27 }
  0x78   :  { %5950 = vst [vmem:[#allocation20_spill] sm:$0xff] %v4354_v46 }
  0x7a   :  { %354 = vmatmul.f32.gmra.mxu2 %v4143_v17 }
  0x7b   :  { %440 = vmatmul.f32.gmra.mxu3 %v180_v24 }
  0x7c   :  { %521 = vmatmul.f32.gmra.mxu0 %v4130_v9  ;;  %588 = vmatmul.f32.gmra.mxu1 %v4130_v9 }
  0x82   :  { %359 = vmatmul.f32.gmra.mxu2 %v4149_v22 }
  0x83   :  { %446 = vmatmul.f32.gmra.mxu3 %v188_v30 }
  0x84   :  { %525 = vmatmul.f32.gmra.mxu0 %v4138_v15  ;;  %592 = vmatmul.f32.gmra.mxu1 %v4138_v15 }
  0x8a   :  { %364 = vmatmul.f32.gmra.mxu2 %v4177_v43 }
  0x8b   :  { %452 = vmatmul.f32.gmra.mxu3 %v196_v51 }
  0x8c   :  { %529 = vmatmul.f32.gmra.mxu0 %v4163_v31  ;;  %596 = vmatmul.f32.gmra.mxu1 %v4163_v31 }
  0x92   :  { %369 = vmatmul.f32.gmra.mxu2 %v4205_v58 }
  0x93   :  { %458 = vmatmul.f32.gmra.mxu3 %v204_v1 }
  0x94   :  { %533 = vmatmul.f32.gmra.mxu0 %v4193_v52  ;;  %600 = vmatmul.f32.gmra.mxu1 %v4193_v52 }
  0x99   :  { %v136_v9 = vpop.f32.mrf.mxu0  ;;  %v255_v15 = vpop.f32.mrf.mxu1 }
  0x9a   :  { %374 = vmatmul.f32.gmra.mxu2 %v4225_v8  ;;  %v256_v59 = vadd.f32 %v255_v15, %v136_v9  ;;  %v4359_v15 = vand.u32 4294901760, %v632_v36 }
  0x9b   :  { %464 = vmatmul.f32.gmra.mxu3 %v212_v19 }
  0x9c   :  { %537 = vmatmul.f32.gmra.mxu0 %v4218_v2  ;;  %604 = vmatmul.f32.gmra.mxu1 %v4218_v2  ;;  %v613_v2 = vld [vmem:[#allocation2 + $0x8] sm:$0xff]  ;;  %5952 = vst [vmem:[#allocation22_spill] sm:$0xff] %v4359_v15  ;;  %v4369_v60 = vsub.f32 %v632_v36, %v4359_v15 }
  0x9d   :  { %v4291_v16 = vpop.f32.mrf.mxu2  ;;  %v629_v8 = vsel %vm75_vm0, %v613_v2, 0 }
  0x9e   :  { %v4294_v17 = vpop.f32.mrf.mxu3  ;;  %v4343_v18 = vand.u32 4294901760, %v629_v8  ;;  %5953 = vst [vmem:[#allocation23_spill] sm:$0xff] %v4369_v60 }
  0xa0   :  { %v4350_v29 = vsub.f32 %v629_v8, %v4343_v18 }
  0xa1   :  { %v144_v22 = vpop.f32.mrf.mxu0  ;;  %v259_v23 = vpop.f32.mrf.mxu1 }
  0xa2   :  { %379 = vmatmul.f32.gmra.mxu2 %v4239_v33  ;;  %v260_v6 = vadd.f32 %v259_v23, %v144_v22  ;;  %5949 = vst [vmem:[#allocation19_spill] sm:$0xff] %v4350_v29  ;;  %v4357_v9 = vand.u32 4294901760, %v4350_v29 }
  0xa3   :  { %470 = vmatmul.f32.gmra.mxu3 %v220_v37 }
  0xa4   :  { %541 = vmatmul.f32.gmra.mxu0 %v4233_v20  ;;  %608 = vmatmul.f32.gmra.mxu1 %v4233_v20  ;;  %5951 = vst [vmem:[#allocation21_spill] sm:$0xff] %v4357_v9 }
  0xa5   :  { %v4300_v24 = vpop.f32.mrf.mxu2 }
  0xa6   :  { %v4303_v25 = vpop.f32.mrf.mxu3 }
  0xa9   :  { %v152_v28 = vpop.f32.mrf.mxu0  ;;  %v263_v30 = vpop.f32.mrf.mxu1 }
  0xaa   :  { %v264_v33 = vadd.f32 %v263_v30, %v152_v28  ;;  %v615_v30 = vld [vmem:[#allocation2 + $0x18] sm:$0xff] }
  0xad   :  { %v4305_v31 = vpop.f32.mrf.mxu2 }
  0xae   :  { %5939 = vst [vmem:[#allocation9_spill] sm:$0xff] %v4305_v31  ;;  %v4307_v32 = vpop.f32.mrf.mxu3 }
  0xaf   :  { %5940 = vst [vmem:[#allocation10_spill] sm:$0xff] %v4307_v32 }
  0xb1   :  { %v4309_v38 = vpop.f32.mrf.mxu0  ;;  %v4311_v43 = vpop.f32.mrf.mxu1 }
  0xb5   :  { %v4313_v44 = vpop.f32.mrf.mxu2 }
  0xb6   :  { %5941 = vst [vmem:[#allocation11_spill] sm:$0xff] %v4313_v44  ;;  %v4315_v47 = vpop.f32.mrf.mxu3 }
  0xb7   :  { %5942 = vst [vmem:[#allocation12_spill] sm:$0xff] %v4315_v47 }
  0xb9   :  { %v4317_v48 = vpop.f32.mrf.mxu0  ;;  %v4319_v49 = vpop.f32.mrf.mxu1 }
  0xbd   :  { %v4321_v50 = vpop.f32.mrf.mxu2 }
  0xbe   :  { %5943 = vst [vmem:[#allocation13_spill] sm:$0xff] %v4321_v50  ;;  %v4323_v51 = vpop.f32.mrf.mxu3 }
  0xbf   :  { %5944 = vst [vmem:[#allocation14_spill] sm:$0xff] %v4323_v51 }
  0xc1   :  { %v4325_v52 = vpop.f32.mrf.mxu0  ;;  %v4327_v53 = vpop.f32.mrf.mxu1 }
  0xc5   :  { %v4329_v54 = vpop.f32.mrf.mxu2 }
  0xc6   :  { %5945 = vst [vmem:[#allocation15_spill] sm:$0xff] %v4329_v54  ;;  %v4331_v55 = vpop.f32.mrf.mxu3 }
  0xc7   :  { %5946 = vst [vmem:[#allocation16_spill] sm:$0xff] %v4331_v55 }
  0xc9   :  { %v498_v56 = vpop.f32.mrf.mxu0  ;;  %v565_v58 = vpop.f32.mrf.mxu1 }
  0xcd   :  { %v325_v61 = vpop.f32.mrf.mxu2 }
  0xce   :  { %v326_v62 = vadd.f32 %v325_v61, %v256_v59  ;;  %v405_v63 = vpop.f32.mrf.mxu3  ;;  %v693_v59 = vsub.f32 %v4350_v29, %v4357_v9 }
  0xd0   :  { %v406_v1 = vadd.f32 %v405_v63, %v326_v62 }
  0xd1   :  { %v502_v4 = vpop.f32.mrf.mxu0  ;;  %v569_v11 = vpop.f32.mrf.mxu1 }
  0xd2   :  { %v499_v3 = vadd.f32 %v498_v56, %v406_v1  ;;  %v635_v1 = vsel %vm75_vm0, %v615_v30, 0 }
  0xd3   :  { %v4379_v8 = vand.u32 4294901760, %v635_v1 }
  0xd4   :  { %v566_v7 = vadd.f32 %v565_v58, %v499_v3  ;;  %v268_v58 = vadd.f32 %v4311_v43, %v4309_v38 }
  0xd5   :  { %v330_v10 = vpop.f32.mrf.mxu2  ;;  %5956 = vst [vmem:[#allocation26_spill] sm:$0xff] %v4379_v8  ;;  %v4386_v27 = vsub.f32 %v635_v1, %v4379_v8 }
  0xd6   :  { %v331_v12 = vadd.f32 %v330_v10, %v260_v6  ;;  %v411_v13 = vpop.f32.mrf.mxu3  ;;  %v4345_v19 = vand.u32 4294901760, %v566_v7  ;;  %v4374_v6 = vand.u32 4294901760, %v693_v59 }
  0xd7   :  { %5957 = vst [vmem:[#allocation27_spill] sm:$0xff] %v4386_v27 }
  0xd8   :  { %v412_v20 = vadd.f32 %v411_v13, %v331_v12  ;;  %v808_v34 = vsub.f32 %v566_v7, %v4345_v19  ;;  %5954 = vst [vmem:[#allocation24_spill] sm:$0xff] %v4374_v6  ;;  %v4377_v7 = vand.u32 4294901760, %v4369_v60 }
  0xd9   :  { %v506_v39 = vpop.f32.mrf.mxu0  ;;  %v573_v45 = vpop.f32.mrf.mxu1 }
  0xda   :  { %v503_v26 = vadd.f32 %v502_v4, %v412_v20  ;;  %v809_v28 = vand.u32 4294901760, %v808_v34  ;;  %5955 = vst [vmem:[#allocation25_spill] sm:$0xff] %v4377_v7  ;;  %v616_v20 = vld [vmem:[#allocation2 + $0x20] sm:$0xff] }
  0xdc   :  { %v570_v35 = vadd.f32 %v569_v11, %v503_v26  ;;  %v810_v63 = vsub.f32 %v808_v34, %v809_v28  ;;  %v701_v26 = vsub.f32 %v4369_v60, %v4377_v7 }
  0xdd   :  { %v335_v37 = vpop.f32.mrf.mxu2 }
  0xde   :  { %v678_v40 = vand.u32 4294901760, %v570_v35  ;;  %v336_v41 = vadd.f32 %v335_v37, %v264_v33  ;;  %v417_v42 = vpop.f32.mrf.mxu3  ;;  %v811_v12 = vand.u32 4294901760, %v810_v63  ;;  %v4392_v37 = vand.u32 4294901760, %v701_v26  ;;  %v618_v63 = vld [vmem:[#allocation2 + $0x30] sm:$0xff] }
  0xe0   :  { %v802_v22 = vsub.f32 %v570_v35, %v678_v40  ;;  %v418_v23 = vadd.f32 %v417_v42, %v336_v41  ;;  %679 = vmatpush.msra.mxu2 %v678_v40  ;;  %967 = vmatpush.msra.mxu1 %v678_v40  ;;  %v638_v35 = vsel %vm75_vm0, %v616_v20, 0  ;;  %5958 = vst [vmem:[#allocation28_spill] sm:$0xff] %v4392_v37 }
  0xe1   :  { %v510_v4 = vpop.f32.mrf.mxu0  ;;  %v577_v13 = vpop.f32.mrf.mxu1  ;;  %v4397_v41 = vand.u32 4294901760, %v638_v35 }
  0xe2   :  { %v507_v56 = vadd.f32 %v506_v39, %v418_v23  ;;  %681 = vmatpush.msra.mxu2 %v4345_v19  ;;  %882 = vmatpush.msra.mxu0 %v802_v22  ;;  %v803_v57 = vand.u32 4294901760, %v802_v22  ;;  %v4395_v39 = vand.u32 4294901760, %v4386_v27 }
  0xe3   :  { %969 = vmatpush.msra.mxu1 %v4345_v19  ;;  %687 = vmatmul.f32.vlgmr.msra.gmra.mxu2 %v4354_v46  ;;  %v4403_v23 = vsub.f32 %v638_v35, %v4397_v41 }
  0xe4   :  { %v574_v61 = vadd.f32 %v573_v45, %v507_v56  ;;  %973 = vmatmul.f32.vlgmr.msra.gmra.mxu1 %v4341_v14  ;;  %885 = vmatpush.msra.mxu0 %v808_v34  ;;  %v804_v62 = vsub.f32 %v802_v22, %v803_v57  ;;  %5959 = vst [vmem:[#allocation29_spill] sm:$0xff] %v4395_v39  ;;  %v617_v22 = vld [vmem:[#allocation2 + $0x28] sm:$0xff] }
  0xe5   :  { %1066 = vmatpush.msrb.mxu2 %v803_v57  ;;  %v340_v38 = vpop.f32.mrf.mxu2  ;;  %888 = vmatmul.f32.vlgmr.msra.gmra.mxu0 %v4337_v5  ;;  %5960 = vst [vmem:[#allocation30_spill] sm:$0xff] %v4403_v23  ;;  %v641_v56 = vsel %vm75_vm0, %v617_v22, 0  ;;  %v4412_v59 = vand.u32 4294901760, %v4403_v23 }
  0xe6   :  { %v341_v43 = vadd.f32 %v340_v38, %v268_v58  ;;  %v805_v2 = vand.u32 4294901760, %v804_v62  ;;  %v423_v3 = vpop.f32.mrf.mxu3  ;;  %v1226_v10 = vand.u32 4294901760, %v574_v61 }
  0xe7   :  { %1070 = vmatpush.msrb.mxu2 %v809_v28  ;;  %5962 = vst [vmem:[#allocation32_spill] sm:$0xff] %v4412_v59  ;;  %v717_v1 = vsub.f32 %v4403_v23, %v4412_v59 }
  0xe8   :  { %v424_v11 = vadd.f32 %v423_v3, %v341_v43  ;;  %806 = vmatpush.msra.mxu3 %v805_v2  ;;  %v1354_v33 = vsub.f32 %v574_v61, %v1226_v10  ;;  %v4414_v61 = vand.u32 4294901760, %v641_v56  ;;  %v644_v43 = vsel %vm75_vm0, %v618_v63, 0 }
  0xe9   :  { %v4426_v2 = vand.u32 4294901760, %v717_v1 }
  0xea   :  { %v511_v21 = vadd.f32 %v510_v4, %v424_v11  ;;  %812 = vmatpush.msra.mxu3 %v811_v12  ;;  %v1355_v45 = vand.u32 4294901760, %v1354_v33  ;;  %v4420_v38 = vsub.f32 %v641_v56, %v4414_v61  ;;  %v4431_v4 = vand.u32 4294901760, %v644_v43  ;;  %v619_v11 = vld [vmem:[#allocation2 + $0x38] sm:$0xff]  ;;  %v4475_v56 = vpop.f32.mrf.mxu0 }
  0xeb   :  { %695 = vmatmul.f32.gmra.mxu2 %v4374_v6  ;;  %814 = vmatmul.f32.vlgmr.msra.gmra.mxu3 %v4334_v0  ;;  %5964 = vst [vmem:[#allocation34_spill] sm:$0xff] %v4426_v2 }
  0xec   :  { %v578_v34 = vadd.f32 %v577_v13, %v511_v21  ;;  %979 = vmatmul.f32.gmra.mxu1 %v4357_v9  ;;  %1139 = vmatpush.msrb.mxu3 %v678_v40  ;;  %v1356_v30 = vsub.f32 %v1354_v33, %v1355_v45  ;;  %5963 = vst [vmem:[#allocation33_spill] sm:$0xff] %v4420_v38  ;;  %v4429_v3 = vand.u32 4294901760, %v4420_v38 }
  0xed   :  { %893 = vmatmul.f32.gmra.mxu0 %v4350_v29  ;;  %v4437_v13 = vsub.f32 %v644_v43, %v4431_v4  ;;  %v345_v43 = vpop.f32.mrf.mxu2 }
  0xee   :  { %v1224_v36 = vand.u32 4294901760, %v578_v34  ;;  %1141 = vmatpush.msrb.mxu3 %v4345_v19  ;;  %v709_v19 = vsub.f32 %v4386_v27, %v4395_v39  ;;  %v1357_v62 = vand.u32 4294901760, %v1356_v30  ;;  %5965 = vst [vmem:[#allocation35_spill] sm:$0xff] %v4429_v3  ;;  %v725_v12 = vsub.f32 %v4420_v38, %v4429_v3  ;;  %v429_v50 = vpop.f32.mrf.mxu3 }
  0xef   :  { %5966 = vst [vmem:[#allocation36_spill] sm:$0xff] %v4437_v13  ;;  %v4446_v21 = vand.u32 4294901760, %v4437_v13 }
  0xf0   :  { %v1348_v42 = vsub.f32 %v578_v34, %v1224_v36  ;;  %1225 = vmatpush.msrb.mxu0 %v1224_v36  ;;  %1513 = vmatpush.msra.mxu3 %v1224_v36  ;;  %v4409_v58 = vand.u32 4294901760, %v709_v19  ;;  %v4443_v20 = vand.u32 4294901760, %v725_v12  ;;  %v4467_v19 = vpop.f32.mrf.mxu1 }
  0xf1   :  { %5968 = vst [vmem:[#allocation38_spill] sm:$0xff] %v4446_v21  ;;  %v733_v34 = vsub.f32 %v4437_v13, %v4446_v21 }
  0xf2   :  { %1227 = vmatpush.msrb.mxu0 %v1226_v10  ;;  %1428 = vmatpush.msra.mxu2 %v1348_v42  ;;  %v1349_v40 = vand.u32 4294901760, %v1348_v42  ;;  %5961 = vst [vmem:[#allocation31_spill] sm:$0xff] %v4409_v58 }
  0xf3   :  { %1515 = vmatpush.msra.mxu3 %v1226_v10  ;;  %703 = vmatmul.f32.gmra.mxu2 %v4392_v37  ;;  %5967 = vst [vmem:[#allocation37_spill] sm:$0xff] %v4443_v20 }
  0xf4   :  { %818 = vmatmul.f32.gmra.mxu3 %v4343_v18  ;;  %985 = vmatmul.f32.gmra.mxu1 %v4377_v7  ;;  %v1350_v28 = vsub.f32 %v1348_v42, %v1349_v40  ;;  %v4460_v42 = vand.u32 4294901760, %v733_v34 }
  0xf5   :  { %1431 = vmatpush.msra.mxu2 %v1354_v33  ;;  %1612 = vmatpush.msra.mxu0 %v1349_v40  ;;  %v620_v33 = vld [vmem:[#allocation2 + $0x40] sm:$0xff]  ;;  %v621_v40 = vld [vmem:[#allocation2 + $0x48] sm:$0xff]  ;;  %v350_v55 = vpop.f32.mrf.mxu2 }
  0xf6   :  { %898 = vmatmul.f32.gmra.mxu0 %v4369_v60  ;;  %v1351_v57 = vand.u32 4294901760, %v1350_v28  ;;  %5970 = vst [vmem:[#allocation40_spill] sm:$0xff] %v4460_v42 }
  0xf7   :  { %1616 = vmatpush.msra.mxu0 %v1355_v45 }
  0xf8   :  { %1352 = vmatpush.msrb.mxu1 %v1351_v57  ;;  %v653_v57 = vsel %vm75_vm0, %v621_v40, 0  ;;  %v585_v34 = vpop.f32.mrf.mxu1 }
  0xf9   :  { %v4486_v1 = vand.u32 4294901760, %v653_v57 }
  0xfa   :  { %1358 = vmatpush.msrb.mxu1 %v1357_v62 }
  0xfb   :  { %711 = vmatmul.f32.gmra.mxu2 %v4409_v58 }
  0xfc   :  { %1685 = vmatpush.msra.mxu1 %v1224_v36  ;;  %822 = vmatmul.f32.gmra.mxu3 %v4359_v15  ;;  %v650_v36 = vsel %vm75_vm0, %v620_v33, 0 }
  0xfd   :  { %991 = vmatmul.f32.gmra.mxu1 %v4395_v39  ;;  %v4465_v22 = vand.u32 4294901760, %v650_v36 }
  0xfe   :  { %1687 = vmatpush.msra.mxu1 %v1226_v10  ;;  %903 = vmatmul.f32.gmra.mxu0 %v4386_v27  ;;  %v647_v10 = vsel %vm75_vm0, %v619_v11, 0  ;;  %v622_v11 = vld [vmem:[#allocation2 + $0x50] sm:$0xff] }
  0xff   :  { %v4448_v26 = vand.u32 4294901760, %v647_v10  ;;  %v4473_v30 = vsub.f32 %v650_v36, %v4465_v22  ;;  %v656_v33 = vsel %vm75_vm0, %v622_v11, 0  ;;  %v518_v36 = vpop.f32.mrf.mxu0 }
 0x100   :  { %v4503_v51 = vand.u32 4294901760, %v656_v33  ;;  %v4515_v32 = vpop.f32.mrf.mxu1 }
 0x101   :  { %v4454_v35 = vsub.f32 %v647_v10, %v4448_v26  ;;  %5972 = vst [vmem:[#allocation42_spill] sm:$0xff] %v4473_v30  ;;  %v4484_v63 = vand.u32 4294901760, %v4473_v30  ;;  %v4492_v10 = vsub.f32 %v653_v57, %v4486_v1  ;;  %v623_v57 = vld [vmem:[#allocation2 + $0x58] sm:$0xff] }
 0x102   :  { %v4509_v11 = vsub.f32 %v656_v33, %v4503_v51  ;;  %v624_v33 = vld [vmem:[#allocation2 + $0x60] sm:$0xf] }
 0x103   :  { %719 = vmatmul.f32.gmra.mxu2 %v4426_v2  ;;  %5969 = vst [vmem:[#allocation39_spill] sm:$0xff] %v4454_v35  ;;  %v4463_v45 = vand.u32 4294901760, %v4454_v35  ;;  %v749_v12 = vsub.f32 %v4473_v30, %v4484_v63 }
 0x104   :  { %826 = vmatmul.f32.gmra.mxu3 %v4379_v8  ;;  %5974 = vst [vmem:[#allocation44_spill] sm:$0xff] %v4484_v63  ;;  %v4520_v47 = vand.u32 4294901760, %v4509_v11 }
 0x105   :  { %997 = vmatmul.f32.gmra.mxu1 %v4412_v59  ;;  %5971 = vst [vmem:[#allocation41_spill] sm:$0xff] %v4463_v45  ;;  %v741_v28 = vsub.f32 %v4454_v35, %v4463_v45  ;;  %v4498_v40 = vand.u32 4294901760, %v749_v12  ;;  %v659_v12 = vsel %vm75_vm0, %v623_v57, 0 }
 0x106   :  { %908 = vmatmul.f32.gmra.mxu0 %v4403_v23  ;;  %5975 = vst [vmem:[#allocation45_spill] sm:$0xff] %v4492_v10  ;;  %v4522_v44 = vand.u32 4294901760, %v659_v12  ;;  %v765_v57 = vsub.f32 %v4509_v11, %v4520_v47 }
 0x107   :  { %v4481_v62 = vand.u32 4294901760, %v741_v28  ;;  %5976 = vst [vmem:[#allocation46_spill] sm:$0xff] %v4498_v40  ;;  %v4501_v28 = vand.u32 4294901760, %v4492_v10 }
 0x108   :  { %5979 = vst [vmem:[#allocation49_spill] sm:$0xff] %v4520_v47  ;;  %v4547_v59 = vpop.f32.mrf.mxu1 }
 0x109   :  { %5973 = vst [vmem:[#allocation43_spill] sm:$0xff] %v4481_v62  ;;  %v757_v54 = vsub.f32 %v4492_v10, %v4501_v28 }
 0x10a   :  { %5977 = vst [vmem:[#allocation47_spill] sm:$0xff] %v4501_v28 }
 0x10b   :  { %727 = vmatmul.f32.gmra.mxu2 %v4443_v20  ;;  %v4517_v31 = vand.u32 4294901760, %v757_v54  ;;  %v662_v54 = vsel %vm75_vm0, %v624_v33, 0 }
 0x10c   :  { %830 = vmatmul.f32.gmra.mxu3 %v4397_v41 }
 0x10d   :  { %1003 = vmatmul.f32.gmra.mxu1 %v4429_v3  ;;  %5978 = vst [vmem:[#allocation48_spill] sm:$0xff] %v4517_v31 }
 0x10e   :  { %913 = vmatmul.f32.gmra.mxu0 %v4420_v38 }
 0x110   :  { %v4571_v23 = vpop.f32.mrf.mxu1 }
 0x111   :  { %5985 = vst [vmem:[#allocation55_spill] sm:$0xff] %v4571_v23 }
 0x113   :  { %735 = vmatmul.f32.gmra.mxu2 %v4460_v42 }
 0x114   :  { %834 = vmatmul.f32.gmra.mxu3 %v4414_v61 }
 0x115   :  { %1009 = vmatmul.f32.gmra.mxu1 %v4446_v21  ;;  %v435_v21 = vpop.f32.mrf.mxu3 }
 0x116   :  { %918 = vmatmul.f32.gmra.mxu0 %v4437_v13  ;;  %v4543_v13 = vand.u32 4294901760, %v662_v54 }
 0x11b   :  { %743 = vmatmul.f32.gmra.mxu2 %v4481_v62 }
 0x11c   :  { %838 = vmatmul.f32.gmra.mxu3 %v4431_v4 }
 0x11d   :  { %1015 = vmatmul.f32.gmra.mxu1 %v4463_v45  ;;  %v4524_v45 = vpop.f32.mrf.mxu0  ;;  %v4559_v39 = vpop.f32.mrf.mxu3 }
 0x11e   :  { %923 = vmatmul.f32.gmra.mxu0 %v4454_v35  ;;  %v4538_v35 = vand.u32 4294901760, %v765_v57 }
 0x120   :  { %5980 = vst [vmem:[#allocation50_spill] sm:$0xff] %v4538_v35 }
 0x123   :  { %751 = vmatmul.f32.gmra.mxu2 %v4498_v40 }
 0x124   :  { %842 = vmatmul.f32.gmra.mxu3 %v4448_v26 }
 0x125   :  { %1021 = vmatmul.f32.gmra.mxu1 %v4484_v63  ;;  %v4530_v63 = vsub.f32 %v659_v12, %v4522_v44  ;;  %v276_v12 = vadd.f32 %v4327_v53, %v4325_v52  ;;  %v4549_v38 = vpop.f32.mrf.mxu0 }
 0x126   :  { %928 = vmatmul.f32.gmra.mxu0 %v4473_v30  ;;  %v4532_v30 = vpop.f32.mrf.mxu2 }
 0x127   :  { %v4541_v3 = vand.u32 4294901760, %v4530_v63  ;;  %v351_v33 = vadd.f32 %v350_v55, %v276_v12 }
 0x129   :  { %5981 = vst [vmem:[#allocation51_spill] sm:$0xff] %v4541_v3  ;;  %v773_v57 = vsub.f32 %v4530_v63, %v4541_v3 }
 0x12b   :  { %759 = vmatmul.f32.gmra.mxu2 %v4517_v31 }
 0x12c   :  { %846 = vmatmul.f32.gmra.mxu3 %v4465_v22 }
 0x12d   :  { %1027 = vmatmul.f32.gmra.mxu1 %v4501_v28  ;;  %v272_v28 = vadd.f32 %v4319_v49, %v4317_v48  ;;  %v436_v48 = vadd.f32 %v435_v21, %v351_v33  ;;  %v4566_v49 = vand.u32 4294901760, %v773_v57 }
 0x12e   :  { %933 = vmatmul.f32.gmra.mxu0 %v4492_v10  ;;  %v4557_v10 = vsub.f32 %v662_v54, %v4543_v13  ;;  %v4563_v53 = vpop.f32.mrf.mxu2 }
 0x12f   :  { %v346_v52 = vadd.f32 %v345_v43, %v272_v28  ;;  %5983 = vst [vmem:[#allocation53_spill] sm:$0xff] %v4566_v49  ;;  %v519_v54 = vadd.f32 %v518_v36, %v436_v48  ;;  %v4576_v43 = vpop.f32.mrf.mxu0  ;;  %v4581_v28 = vpop.f32.mrf.mxu3 }
 0x130   :  { %5982 = vst [vmem:[#allocation52_spill] sm:$0xff] %v4557_v10  ;;  %v4569_v55 = vand.u32 4294901760, %v4557_v10  ;;  %v4596_v48 = vpop.f32.mrf.mxu1 }
 0x131   :  { %v430_v12 = vadd.f32 %v429_v50, %v346_v52  ;;  %5986 = vst [vmem:[#allocation56_spill] sm:$0xff] %v4576_v43  ;;  %v586_v50 = vadd.f32 %v585_v34, %v519_v54 }
 0x132   :  { %5984 = vst [vmem:[#allocation54_spill] sm:$0xff] %v4569_v55 }
 0x133   :  { %767 = vmatmul.f32.gmra.mxu2 %v4538_v35  ;;  %v515_v21 = vadd.f32 %v4475_v56, %v430_v12  ;;  %v4589_v52 = vand.u32 4294901760, %v586_v50  ;;  %5989 = vst [vmem:[#allocation59_spill] sm:$0xff] %v4596_v48 }
 0x134   :  { %850 = vmatmul.f32.gmra.mxu3 %v4486_v1 }
 0x135   :  { %1033 = vmatmul.f32.gmra.mxu1 %v4520_v47  ;;  %v781_v47 = vsub.f32 %v4557_v10, %v4569_v55  ;;  %v582_v57 = vadd.f32 %v4467_v19, %v515_v21 }
 0x136   :  { %938 = vmatmul.f32.gmra.mxu0 %v4509_v11  ;;  %v4586_v33 = vpop.f32.mrf.mxu2 }
 0x137   :  { %v4584_v36 = vand.u32 4294901760, %v781_v47  ;;  %5988 = vst [vmem:[#allocation58_spill] sm:$0xff] %v4586_v33  ;;  %v4594_v56 = vand.u32 4294901760, %v582_v57  ;;  %v4598_v12 = vpop.f32.mrf.mxu0  ;;  %v4602_v47 = vsub.f32 %v586_v50, %v4589_v52  ;;  %v4604_v19 = vpop.f32.mrf.mxu3 }
 0x138   :  { %5990 = vst [vmem:[#allocation60_spill] sm:$0xff] %v4598_v12 }
 0x139   :  { %5987 = vst [vmem:[#allocation57_spill] sm:$0xff] %v4584_v36  ;;  %v4607_v34 = vsub.f32 %v582_v57, %v4594_v56  ;;  %v5854_v21 = vand.u32 4294901760, %v4602_v47  ;;  %v4619_v57 = vpop.f32.mrf.mxu1 }
 0x13a   :  { %5991 = vst [vmem:[#allocation61_spill] sm:$0xff] %v4604_v19 }
 0x13b   :  { %775 = vmatmul.f32.gmra.mxu2 %v4566_v49  ;;  %v5855_v50 = vand.u32 4294901760, %v4607_v34  ;;  %5993 = vst [vmem:[#allocation63_spill] sm:$0xff] %v4619_v57  ;;  %v1895_v23 = vsub.f32 %v4602_v47, %v5854_v21 }
 0x13c   :  { %854 = vmatmul.f32.gmra.mxu3 %v4503_v51 }
 0x13d   :  { %1039 = vmatmul.f32.gmra.mxu1 %v4541_v3  ;;  %v1901_v43 = vsub.f32 %v4607_v34, %v5855_v50  ;;  %v1896_v57 = vand.u32 4294901760, %v1895_v23 }
 0x13e   :  { %943 = vmatmul.f32.gmra.mxu0 %v4530_v63  ;;  %v4609_v54 = vpop.f32.mrf.mxu2 }
 0x13f   :  { %5992 = vst [vmem:[#allocation62_spill] sm:$0xff] %v4609_v54  ;;  %v4626_v48 = vpop.f32.mrf.mxu0  ;;  %v4633_v12 = vpop.f32.mrf.mxu3  ;;  %v1902_v21 = vand.u32 4294901760, %v1901_v43 }
 0x140   :  { %5994 = vst [vmem:[#allocation64_spill] sm:$0xff] %v4626_v48 }
 0x141   :  { %5995 = vst [vmem:[#allocation65_spill] sm:$0xff] %v4633_v12  ;;  %v4641_v48 = vpop.f32.mrf.mxu1 }
 0x142   :  { %5997 = vst [vmem:[#allocation67_spill] sm:$0xff] %v4641_v48 }
 0x143   :  { %783 = vmatmul.f32.gmra.mxu2 %v4584_v36 }
 0x144   :  { %858 = vmatmul.f32.gmra.mxu3 %v4522_v44 }
 0x145   :  { %1045 = vmatmul.f32.gmra.mxu1 %v4569_v55 }
 0x146   :  { %948 = vmatmul.f32.gmra.mxu0 %v4557_v10  ;;  %v4636_v19 = vpop.f32.mrf.mxu2 }
 0x147   :  { %5996 = vst [vmem:[#allocation66_spill] sm:$0xff] %v4636_v19  ;;  %v4643_v33 = vpop.f32.mrf.mxu0  ;;  %v4646_v50 = vpop.f32.mrf.mxu3 }
 0x148   :  { %5998 = vst [vmem:[#allocation68_spill] sm:$0xff] %v4643_v33 }
 0x149   :  { %5999 = vst [vmem:[#allocation69_spill] sm:$0xff] %v4646_v50 }
 0x14b   :  { %1072 = vmatmul.f32.vlgmr.msrb.gmra.mxu2 %v4334_v0 }
 0x14c   :  { %862 = vmatmul.f32.gmra.mxu3 %v4543_v13  ;;  %1770 = vmatpush.msrb.mxu2 %v4589_v52 }
 0x14d   :  { %1360 = vmatmul.f32.vlgmr.msrb.gmra.mxu1 %v4334_v0 }
 0x14e   :  { %2058 = vmatpush.msrb.mxu1 %v4589_v52  ;;  %1233 = vmatmul.f32.vlgmr.msrb.gmra.mxu0 %v4354_v46  ;;  %v4650_v23 = vpop.f32.mrf.mxu2 }
 0x14f   :  { %1772 = vmatpush.msrb.mxu2 %v4594_v56  ;;  %1973 = vmatpush.msrb.mxu0 %v4602_v47  ;;  %6000 = vst [vmem:[#allocation70_spill] sm:$0xff] %v4650_v23 }
 0x150   :  { %2060 = vmatpush.msrb.mxu1 %v4594_v56 }
 0x151   :  { %1976 = vmatpush.msrb.mxu0 %v4607_v34 }
 0x153   :  { %1076 = vmatmul.f32.gmra.mxu2 %v4343_v18 }
 0x154   :  { %1143 = vmatmul.f32.vlgmr.msrb.gmra.mxu3 %v4334_v0 }
 0x155   :  { %1364 = vmatmul.f32.gmra.mxu1 %v4343_v18  ;;  %1897 = vmatpush.msrb.mxu3 %v1896_v57 }
 0x156   :  { %1241 = vmatmul.f32.gmra.mxu0 %v4374_v6 }
 0x157   :  { %1903 = vmatpush.msrb.mxu3 %v1902_v21  ;;  %v4656_v21 = vpop.f32.mrf.mxu3 }
 0x158   :  { %6001 = vst [vmem:[#allocation71_spill] sm:$0xff] %v4656_v21 }
 0x15b   :  { %1080 = vmatmul.f32.gmra.mxu2 %v4359_v15 }
 0x15c   :  { %1147 = vmatmul.f32.gmra.mxu3 %v4343_v18 }
 0x15d   :  { %1368 = vmatmul.f32.gmra.mxu1 %v4359_v15 }
 0x15e   :  { %1249 = vmatmul.f32.gmra.mxu0 %v4392_v37 }
 0x161   :  { %v974_v43 = vpop.f32.mrf.mxu1 }
 0x162   :  { %v889_v57 = vpop.f32.mrf.mxu0 }
 0x163   :  { %1084 = vmatmul.f32.gmra.mxu2 %v4379_v8 }
 0x164   :  { %1151 = vmatmul.f32.gmra.mxu3 %v4359_v15 }
 0x165   :  { %1372 = vmatmul.f32.gmra.mxu1 %v4379_v8 }
 0x166   :  { %1257 = vmatmul.f32.gmra.mxu0 %v4409_v58  ;;  %v688_v48 = vpop.f32.mrf.mxu2 }
 0x169   :  { %v980_v33 = vpop.f32.mrf.mxu1 }
 0x16a   :  { %v894_v50 = vpop.f32.mrf.mxu0 }
 0x16b   :  { %1088 = vmatmul.f32.gmra.mxu2 %v4397_v41 }
 0x16c   :  { %1155 = vmatmul.f32.gmra.mxu3 %v4379_v8 }
 0x16d   :  { %1376 = vmatmul.f32.gmra.mxu1 %v4397_v41 }
 0x16e   :  { %1265 = vmatmul.f32.gmra.mxu0 %v4426_v2  ;;  %v815_v19 = vpop.f32.mrf.mxu3  ;;  %v696_v23 = vpop.f32.mrf.mxu2 }
 0x16f   :  { %v816_v12 = vadd.f32 %v815_v19, %v688_v48 }
 0x171   :  { %v890_v54 = vadd.f32 %v889_v57, %v816_v12  ;;  %v986_v37 = vpop.f32.mrf.mxu1 }
 0x173   :  { %v4663_v6 = vadd.f32 %v974_v43, %v890_v54  ;;  %1092 = vmatmul.f32.gmra.mxu2 %v4414_v61  ;;  %v899_v21 = vpop.f32.mrf.mxu0 }
 0x174   :  { %1159 = vmatmul.f32.gmra.mxu3 %v4397_v41 }
 0x175   :  { %1380 = vmatmul.f32.gmra.mxu1 %v4414_v61 }
 0x176   :  { %1273 = vmatmul.f32.gmra.mxu0 %v4443_v20  ;;  %v704_v58 = vpop.f32.mrf.mxu2 }
 0x177   :  { %v819_v55 = vpop.f32.mrf.mxu3 }
 0x178   :  { %v820_v46 = vadd.f32 %v819_v55, %v696_v23 }
 0x17a   :  { %v992_v2 = vpop.f32.mrf.mxu1  ;;  %v895_v3 = vadd.f32 %v894_v50, %v820_v46 }
 0x17b   :  { %1096 = vmatmul.f32.gmra.mxu2 %v4431_v4  ;;  %v904_v48 = vpop.f32.mrf.mxu0 }
 0x17c   :  { %v4670_v12 = vadd.f32 %v980_v33, %v895_v3  ;;  %1163 = vmatmul.f32.gmra.mxu3 %v4414_v61 }
 0x17d   :  { %1384 = vmatmul.f32.gmra.mxu1 %v4431_v4 }
 0x17e   :  { %1281 = vmatmul.f32.gmra.mxu0 %v4460_v42  ;;  %v712_v19 = vpop.f32.mrf.mxu2 }
 0x17f   :  { %v823_v54 = vpop.f32.mrf.mxu3 }
 0x180   :  { %v824_v43 = vadd.f32 %v823_v54, %v704_v58 }
 0x182   :  { %v998_v57 = vpop.f32.mrf.mxu1  ;;  %v900_v20 = vadd.f32 %v899_v21, %v824_v43  ;;  %v284_v43 = vadd.f32 %v4303_v25, %v4300_v24 }
 0x183   :  { %1100 = vmatmul.f32.gmra.mxu2 %v4448_v26  ;;  %v909_v55 = vpop.f32.mrf.mxu0 }
 0x184   :  { %v4676_v46 = vadd.f32 %v986_v37, %v900_v20  ;;  %1167 = vmatmul.f32.gmra.mxu3 %v4431_v4 }
 0x185   :  { %1388 = vmatmul.f32.gmra.mxu1 %v4448_v26 }
 0x186   :  { %1289 = vmatmul.f32.gmra.mxu0 %v4481_v62  ;;  %v720_v3 = vpop.f32.mrf.mxu2 }
 0x187   :  { %v827_v33 = vpop.f32.mrf.mxu3 }
 0x188   :  { %v828_v50 = vadd.f32 %v827_v33, %v712_v19 }
 0x18a   :  { %v1004_v23 = vpop.f32.mrf.mxu1  ;;  %v905_v42 = vadd.f32 %v904_v48, %v828_v50  ;;  %v361_v48 = vadd.f32 %v4563_v53, %v284_v43 }
 0x18b   :  { %1104 = vmatmul.f32.gmra.mxu2 %v4465_v22  ;;  %v914_v58 = vpop.f32.mrf.mxu0 }
 0x18c   :  { %v4682_v21 = vadd.f32 %v992_v2, %v905_v42  ;;  %1171 = vmatmul.f32.gmra.mxu3 %v4448_v26  ;;  %v280_v42 = vadd.f32 %v4294_v17, %v4291_v16  ;;  %v448_v25 = vadd.f32 %v4581_v28, %v361_v48 }
 0x18d   :  { %1392 = vmatmul.f32.gmra.mxu1 %v4465_v22 }
 0x18e   :  { %1297 = vmatmul.f32.gmra.mxu0 %v4498_v40  ;;  %v728_v37 = vpop.f32.mrf.mxu2  ;;  %v527_v16 = vadd.f32 %v4549_v38, %v448_v25 }
 0x18f   :  { %v831_v20 = vpop.f32.mrf.mxu3 }
 0x190   :  { %v832_v54 = vadd.f32 %v831_v20, %v720_v3  ;;  %v356_v3 = vadd.f32 %v4532_v30, %v280_v42 }
 0x192   :  { %v1010_v19 = vpop.f32.mrf.mxu1  ;;  %v910_v33 = vadd.f32 %v909_v55, %v832_v54  ;;  %v442_v54 = vadd.f32 %v4559_v39, %v356_v3 }
 0x193   :  { %1108 = vmatmul.f32.gmra.mxu2 %v4486_v1  ;;  %v919_v2 = vpop.f32.mrf.mxu0 }
 0x194   :  { %v4693_v50 = vadd.f32 %v998_v57, %v910_v33  ;;  %1175 = vmatmul.f32.gmra.mxu3 %v4465_v22  ;;  %v523_v30 = vadd.f32 %v4524_v45, %v442_v54 }
 0x195   :  { %1396 = vmatmul.f32.gmra.mxu1 %v4486_v1 }
 0x196   :  { %1305 = vmatmul.f32.gmra.mxu0 %v4517_v31  ;;  %v736_v24 = vpop.f32.mrf.mxu2  ;;  %v590_v38 = vadd.f32 %v4515_v32, %v523_v30 }
 0x197   :  { %v835_v53 = vpop.f32.mrf.mxu3 }
 0x198   :  { %v836_v55 = vadd.f32 %v835_v53, %v728_v37  ;;  %v594_v37 = vadd.f32 %v4547_v59, %v527_v16  ;;  %v4718_v45 = vand.u32 4294901760, %v590_v38 }
 0x19a   :  { %v1016_v20 = vpop.f32.mrf.mxu1  ;;  %v915_v43 = vadd.f32 %v914_v58, %v836_v55  ;;  %v4711_v42 = vand.u32 4294901760, %v594_v37  ;;  %v4725_v53 = vsub.f32 %v590_v38, %v4718_v45 }
 0x19b   :  { %1112 = vmatmul.f32.gmra.mxu2 %v4503_v51  ;;  %v924_v17 = vpop.f32.mrf.mxu0 }
 0x19c   :  { %v4703_v57 = vadd.f32 %v1004_v23, %v915_v43  ;;  %1179 = vmatmul.f32.gmra.mxu3 %v4486_v1  ;;  %v5874_v30 = vand.u32 4294901760, %v4725_v53 }
 0x19d   :  { %1400 = vmatmul.f32.gmra.mxu1 %v4503_v51 }
 0x19e   :  { %1313 = vmatmul.f32.gmra.mxu0 %v4538_v35  ;;  %v744_v28 = vpop.f32.mrf.mxu2  ;;  %v6013_v35 = vld [vmem:[#allocation38_spill] sm:$0xff] }
 0x19f   :  { %v839_v39 = vpop.f32.mrf.mxu3 }
 0x1a0   :  { %v840_v58 = vadd.f32 %v839_v39, %v736_v24  ;;  %v4722_v24 = vsub.f32 %v594_v37, %v4711_v42 }
 0x1a2   :  { %v1022_v33 = vpop.f32.mrf.mxu1  ;;  %v920_v48 = vadd.f32 %v919_v2, %v840_v58  ;;  %v5875_v55 = vand.u32 4294901760, %v4722_v24 }
 0x1a3   :  { %1116 = vmatmul.f32.gmra.mxu2 %v4522_v44  ;;  %v929_v23 = vpop.f32.mrf.mxu0 }
 0x1a4   :  { %v4714_v3 = vadd.f32 %v1010_v19, %v920_v48  ;;  %1183 = vmatmul.f32.gmra.mxu3 %v4503_v51 }
 0x1a5   :  { %1404 = vmatmul.f32.gmra.mxu1 %v4522_v44 }
 0x1a6   :  { %1321 = vmatmul.f32.gmra.mxu0 %v4566_v49  ;;  %v752_v59 = vpop.f32.mrf.mxu2 }
 0x1a7   :  { %v843_v32 = vpop.f32.mrf.mxu3 }
 0x1a8   :  { %v844_v2 = vadd.f32 %v843_v32, %v744_v28 }
 0x1aa   :  { %v1028_v25 = vpop.f32.mrf.mxu1  ;;  %v925_v19 = vadd.f32 %v924_v17, %v844_v2  ;;  %v2440_v17 = vsub.f32 %v4722_v24, %v5875_v55  ;;  %v6002_v2 = vand.u32 4294901760, %v4602_v47  ;;  %v6009_v55 = vld [vmem:[#allocation35_spill] sm:$0xff] }
 0x1ab   :  { %1120 = vmatmul.f32.gmra.mxu2 %v4543_v13  ;;  %v934_v54 = vpop.f32.mrf.mxu0 }
 0x1ac   :  { %v4729_v43 = vadd.f32 %v1016_v20, %v925_v19  ;;  %1187 = vmatmul.f32.gmra.mxu3 %v4522_v44  ;;  %v2446_v20 = vsub.f32 %v4725_v53, %v5874_v30  ;;  %v2441_v38 = vand.u32 4294901760, %v2440_v17  ;;  %v6003_v19 = vand.u32 4294901760, %v4607_v34 }
 0x1ad   :  { %1408 = vmatmul.f32.gmra.mxu1 %v4543_v13 }
 0x1ae   :  { %1329 = vmatmul.f32.gmra.mxu0 %v4584_v36  ;;  %v760_v16 = vpop.f32.mrf.mxu2 }
 0x1af   :  { %v847_v28 = vpop.f32.mrf.mxu3 }
 0x1b0   :  { %v848_v37 = vadd.f32 %v847_v28, %v752_v59 }
 0x1b2   :  { %v1034_v39 = vpop.f32.mrf.mxu1  ;;  %v930_v58 = vadd.f32 %v929_v23, %v848_v37  ;;  %v2447_v23 = vand.u32 4294901760, %v2446_v20 }
 0x1b3   :  { %1434 = vmatmul.f32.vlgmr.msra.gmra.mxu2 %v4337_v5  ;;  %v939_v48 = vpop.f32.mrf.mxu0 }
 0x1b4   :  { %v4742_v32 = vadd.f32 %v1022_v33, %v930_v58  ;;  %1191 = vmatmul.f32.gmra.mxu3 %v4543_v13  ;;  %2157 = vmatpush.msra.mxu2 %v6002_v2 }
 0x1b5   :  { %1689 = vmatmul.f32.vlgmr.msra.gmra.mxu1 %v4334_v0 }
 0x1b6   :  { %2442 = vmatpush.msra.mxu1 %v2441_v38  ;;  %1618 = vmatmul.f32.vlgmr.msra.gmra.mxu0 %v4334_v0  ;;  %v768_v59 = vpop.f32.mrf.mxu2 }
 0x1b7   :  { %2161 = vmatpush.msra.mxu2 %v6003_v19  ;;  %2315 = vmatpush.msra.mxu0 %v4711_v42  ;;  %v851_v28 = vpop.f32.mrf.mxu3 }
 0x1b8   :  { %2448 = vmatpush.msra.mxu1 %v2447_v23  ;;  %v852_v33 = vadd.f32 %v851_v28, %v760_v16 }
 0x1b9   :  { %2317 = vmatpush.msra.mxu0 %v4718_v45 }
 0x1ba   :  { %v1040_v17 = vpop.f32.mrf.mxu1  ;;  %v935_v37 = vadd.f32 %v934_v54, %v852_v33 }
 0x1bb   :  { %1439 = vmatmul.f32.gmra.mxu2 %v4350_v29  ;;  %v944_v47 = vpop.f32.mrf.mxu0 }
 0x1bc   :  { %v4754_v58 = vadd.f32 %v1028_v25, %v935_v37  ;;  %1519 = vmatmul.f32.vlgmr.msra.gmra.mxu3 %v4341_v14 }
 0x1bd   :  { %1693 = vmatmul.f32.gmra.mxu1 %v4343_v18  ;;  %2230 = vmatpush.msra.mxu3 %v4589_v52 }
 0x1be   :  { %1622 = vmatmul.f32.gmra.mxu0 %v4343_v18  ;;  %v776_v34 = vpop.f32.mrf.mxu2 }
 0x1bf   :  { %2232 = vmatpush.msra.mxu3 %v4594_v56  ;;  %v855_v16 = vpop.f32.mrf.mxu3 }
 0x1c0   :  { %v856_v20 = vadd.f32 %v855_v16, %v768_v59 }
 0x1c2   :  { %v1046_v38 = vpop.f32.mrf.mxu1  ;;  %v940_v54 = vadd.f32 %v939_v48, %v856_v20  ;;  %v6004_v20 = vld [vmem:[#allocation30_spill] sm:$0xff] }
 0x1c3   :  { %1444 = vmatmul.f32.gmra.mxu2 %v4369_v60  ;;  %v949_v2 = vpop.f32.mrf.mxu0 }
 0x1c4   :  { %v4762_v25 = vadd.f32 %v1034_v39, %v940_v54  ;;  %1525 = vmatmul.f32.gmra.mxu3 %v4357_v9 }
 0x1c5   :  { %1697 = vmatmul.f32.gmra.mxu1 %v4359_v15 }
 0x1c6   :  { %1626 = vmatmul.f32.gmra.mxu0 %v4359_v15  ;;  %v784_v52 = vpop.f32.mrf.mxu2 }
 0x1c7   :  { %v859_v23 = vpop.f32.mrf.mxu3 }
 0x1c8   :  { %v860_v19 = vadd.f32 %v859_v23, %v776_v34 }
 0x1ca   :  { %v4767_v28 = vpop.f32.mrf.mxu1  ;;  %v945_v56 = vadd.f32 %v944_v47, %v860_v19 }
 0x1cb   :  { %1449 = vmatmul.f32.gmra.mxu2 %v4386_v27  ;;  %v4770_v48 = vpop.f32.mrf.mxu0 }
 0x1cc   :  { %v4772_v59 = vadd.f32 %v1040_v17, %v945_v56  ;;  %1531 = vmatmul.f32.gmra.mxu3 %v4377_v7  ;;  %v6005_v17 = vld [vmem:[#allocation29_spill] sm:$0xff] }
 0x1cd   :  { %1701 = vmatmul.f32.gmra.mxu1 %v4379_v8 }
 0x1ce   :  { %1630 = vmatmul.f32.gmra.mxu0 %v4379_v8  ;;  %v1073_v39 = vpop.f32.mrf.mxu2 }
 0x1cf   :  { %v863_v33 = vpop.f32.mrf.mxu3  ;;  %v1074_v23 = vadd.f32 %v1073_v39, %v4663_v6 }
 0x1d0   :  { %v864_v37 = vadd.f32 %v863_v33, %v784_v52 }
 0x1d2   :  { %v4777_v16 = vpop.f32.mrf.mxu1  ;;  %v950_v34 = vadd.f32 %v949_v2, %v864_v37  ;;  %v6007_v37 = vld [vmem:[#allocation32_spill] sm:$0xff] }
 0x1d3   :  { %1454 = vmatmul.f32.gmra.mxu2 %v6004_v20  ;;  %v4780_v47 = vpop.f32.mrf.mxu0 }
 0x1d4   :  { %v4782_v54 = vadd.f32 %v1046_v38, %v950_v34  ;;  %1537 = vmatmul.f32.gmra.mxu3 %v6005_v17  ;;  %v6006_v38 = vld [vmem:[#allocation33_spill] sm:$0xff] }
 0x1d5   :  { %1705 = vmatmul.f32.gmra.mxu1 %v4397_v41 }
 0x1d6   :  { %1634 = vmatmul.f32.gmra.mxu0 %v4397_v41  ;;  %v1077_v19 = vpop.f32.mrf.mxu2 }
 0x1d7   :  { %v1144_v56 = vpop.f32.mrf.mxu3  ;;  %v1078_v6 = vadd.f32 %v1077_v19, %v4670_v12 }
 0x1d8   :  { %v1145_v52 = vadd.f32 %v1144_v56, %v1074_v23 }
 0x1da   :  { %v4788_v33 = vpop.f32.mrf.mxu1  ;;  %1196 = vst.msk [vmem:[%s5825_s3] sm:$0xff] %vm1195_vm1, %v1145_v52  ;;  %v6008_v52 = vld [vmem:[#allocation36_spill] sm:$0xff] }
 0x1db   :  { %1459 = vmatmul.f32.gmra.mxu2 %v6006_v38  ;;  %v4795_v2 = vpop.f32.mrf.mxu0 }
 0x1dc   :  { %1543 = vmatmul.f32.gmra.mxu3 %v6007_v37 }
 0x1dd   :  { %1709 = vmatmul.f32.gmra.mxu1 %v4414_v61 }
 0x1de   :  { %1638 = vmatmul.f32.gmra.mxu0 %v4414_v61  ;;  %v1081_v39 = vpop.f32.mrf.mxu2 }
 0x1df   :  { %v1148_v34 = vpop.f32.mrf.mxu3  ;;  %v1082_v12 = vadd.f32 %v1081_v39, %v4676_v46 }
 0x1e0   :  { %v1149_v23 = vadd.f32 %v1148_v34, %v1078_v6 }
 0x1e2   :  { %v4801_v56 = vpop.f32.mrf.mxu1  ;;  %1197 = vst.msk [vmem:[%s5825_s3 + $0x8] sm:$0xff] %vm1195_vm1, %v1149_v23  ;;  %v6011_v23 = vld [vmem:[#allocation39_spill] sm:$0xff] }
 0x1e3   :  { %1464 = vmatmul.f32.gmra.mxu2 %v6008_v52  ;;  %v4808_v30 = vpop.f32.mrf.mxu0 }
 0x1e4   :  { %1549 = vmatmul.f32.gmra.mxu3 %v6009_v55 }
 0x1e5   :  { %1713 = vmatmul.f32.gmra.mxu1 %v4431_v4 }
 0x1e6   :  { %1642 = vmatmul.f32.gmra.mxu0 %v4431_v4  ;;  %v1085_v19 = vpop.f32.mrf.mxu2 }
 0x1e7   :  { %v1152_v6 = vpop.f32.mrf.mxu3  ;;  %v1086_v46 = vadd.f32 %v1085_v19, %v4682_v21 }
 0x1e8   :  { %v1153_v34 = vadd.f32 %v1152_v6, %v1082_v12 }
 0x1ea   :  { %v4814_v36 = vpop.f32.mrf.mxu1  ;;  %1198 = vst.msk [vmem:[%s5825_s3 + $0x10] sm:$0xff] %vm1195_vm1, %v1153_v34  ;;  %v6015_v34 = vld [vmem:[#allocation42_spill] sm:$0xff] }
 0x1eb   :  { %6010 = vst [vmem:[#allocation30_spill] sm:$0xff] %v4814_v36  ;;  %1469 = vmatmul.f32.gmra.mxu2 %v6011_v23  ;;  %v4821_v49 = vpop.f32.mrf.mxu0 }
 0x1ec   :  { %6012 = vst [vmem:[#allocation33_spill] sm:$0xff] %v4821_v49  ;;  %1555 = vmatmul.f32.gmra.mxu3 %v6013_v35  ;;  %v6017_v49 = vld [vmem:[#allocation41_spill] sm:$0xff] }
 0x1ed   :  { %1717 = vmatmul.f32.gmra.mxu1 %v4448_v26 }
 0x1ee   :  { %1646 = vmatmul.f32.gmra.mxu0 %v4448_v26  ;;  %v1089_v39 = vpop.f32.mrf.mxu2 }
 0x1ef   :  { %v1156_v12 = vpop.f32.mrf.mxu3  ;;  %v1090_v21 = vadd.f32 %v1089_v39, %v4693_v50 }
 0x1f0   :  { %v1157_v6 = vadd.f32 %v1156_v12, %v1086_v46 }
 0x1f2   :  { %v4827_v31 = vpop.f32.mrf.mxu1  ;;  %1199 = vst.msk [vmem:[%s5825_s3 + $0x18] sm:$0xff] %vm1195_vm1, %v1157_v6  ;;  %v6019_v6 = vld [vmem:[#allocation45_spill] sm:$0xff] }
 0x1f3   :  { %6014 = vst [vmem:[#allocation32_spill] sm:$0xff] %v4827_v31  ;;  %1474 = vmatmul.f32.gmra.mxu2 %v6015_v34  ;;  %v4834_v36 = vpop.f32.mrf.mxu0  ;;  %v6021_v34 = vld [vmem:[#allocation44_spill] sm:$0xff] }
 0x1f4   :  { %6016 = vst [vmem:[#allocation36_spill] sm:$0xff] %v4834_v36  ;;  %1561 = vmatmul.f32.gmra.mxu3 %v6017_v49 }
 0x1f5   :  { %1721 = vmatmul.f32.gmra.mxu1 %v4465_v22 }
 0x1f6   :  { %1650 = vmatmul.f32.gmra.mxu0 %v4465_v22  ;;  %v1093_v19 = vpop.f32.mrf.mxu2 }
 0x1f7   :  { %v1160_v46 = vpop.f32.mrf.mxu3  ;;  %v1094_v50 = vadd.f32 %v1093_v19, %v4703_v57 }
 0x1f8   :  { %v1161_v12 = vadd.f32 %v1160_v46, %v1090_v21 }
 0x1fa   :  { %v4840_v31 = vpop.f32.mrf.mxu1  ;;  %1200 = vst.msk [vmem:[%s5825_s3 + $0x20] sm:$0xff] %vm1195_vm1, %v1161_v12 }
 0x1fb   :  { %6018 = vst [vmem:[#allocation35_spill] sm:$0xff] %v4840_v31  ;;  %1479 = vmatmul.f32.gmra.mxu2 %v6019_v6  ;;  %v4847_v36 = vpop.f32.mrf.mxu0 }
 0x1fc   :  { %6020 = vst [vmem:[#allocation39_spill] sm:$0xff] %v4847_v36  ;;  %1567 = vmatmul.f32.gmra.mxu3 %v6021_v34  ;;  %v6024_v36 = vld [vmem:[#allocation47_spill] sm:$0xff] }
 0x1fd   :  { %1725 = vmatmul.f32.gmra.mxu1 %v4486_v1 }
 0x1fe   :  { %1654 = vmatmul.f32.gmra.mxu0 %v4486_v1  ;;  %v1097_v39 = vpop.f32.mrf.mxu2 }
 0x1ff   :  { %v1164_v21 = vpop.f32.mrf.mxu3  ;;  %v1098_v57 = vadd.f32 %v1097_v39, %v4714_v3 }
 0x200   :  { %v1165_v46 = vadd.f32 %v1164_v21, %v1094_v50 }
 0x202   :  { %v4853_v31 = vpop.f32.mrf.mxu1  ;;  %1201 = vst.msk [vmem:[%s5825_s3 + $0x28] sm:$0xff] %vm1195_vm1, %v1165_v46 }
 0x203   :  { %6022 = vst [vmem:[#allocation38_spill] sm:$0xff] %v4853_v31  ;;  %1484 = vmatmul.f32.gmra.mxu2 %v4509_v11  ;;  %v4860_v12 = vpop.f32.mrf.mxu0 }
 0x204   :  { %6023 = vst [vmem:[#allocation72_spill] sm:$0xff] %v4860_v12  ;;  %1573 = vmatmul.f32.gmra.mxu3 %v6024_v36  ;;  %v6027_v12 = vld [vmem:[#allocation49_spill] sm:$0xff] }
 0x205   :  { %1729 = vmatmul.f32.gmra.mxu1 %v4503_v51 }
 0x206   :  { %1658 = vmatmul.f32.gmra.mxu0 %v4503_v51  ;;  %v1101_v19 = vpop.f32.mrf.mxu2 }
 0x207   :  { %v1168_v50 = vpop.f32.mrf.mxu3  ;;  %v1102_v3 = vadd.f32 %v1101_v19, %v4729_v43 }
 0x208   :  { %v1169_v21 = vadd.f32 %v1168_v50, %v1098_v57 }
 0x20a   :  { %v4866_v31 = vpop.f32.mrf.mxu1  ;;  %1202 = vst.msk [vmem:[%s5825_s3 + $0x30] sm:$0xff] %vm1195_vm1, %v1169_v21 }
 0x20b   :  { %6025 = vst [vmem:[#allocation73_spill] sm:$0xff] %v4866_v31  ;;  %1489 = vmatmul.f32.gmra.mxu2 %v4530_v63  ;;  %v4873_v46 = vpop.f32.mrf.mxu0 }
 0x20c   :  { %6026 = vst [vmem:[#allocation74_spill] sm:$0xff] %v4873_v46  ;;  %1579 = vmatmul.f32.gmra.mxu3 %v6027_v12  ;;  %v6030_v46 = vld [vmem:[#allocation51_spill] sm:$0xff] }
 0x20d   :  { %1733 = vmatmul.f32.gmra.mxu1 %v4522_v44 }
 0x20e   :  { %1662 = vmatmul.f32.gmra.mxu0 %v4522_v44  ;;  %v1105_v39 = vpop.f32.mrf.mxu2 }
 0x20f   :  { %v1172_v57 = vpop.f32.mrf.mxu3  ;;  %v1106_v43 = vadd.f32 %v1105_v39, %v4742_v32 }
 0x210   :  { %v1173_v50 = vadd.f32 %v1172_v57, %v1102_v3 }
 0x212   :  { %v4879_v31 = vpop.f32.mrf.mxu1  ;;  %1203 = vst.msk [vmem:[%s5825_s3 + $0x38] sm:$0xff] %vm1195_vm1, %v1173_v50  ;;  %v6032_v50 = vld [vmem:[#allocation20_spill] sm:$0xff] }
 0x213   :  { %6028 = vst [vmem:[#allocation75_spill] sm:$0xff] %v4879_v31  ;;  %1494 = vmatmul.f32.gmra.mxu2 %v4557_v10  ;;  %v4886_v21 = vpop.f32.mrf.mxu0  ;;  %v6033_v10 = vld [vmem:[#allocation54_spill] sm:$0xff] }
 0x214   :  { %6029 = vst [vmem:[#allocation76_spill] sm:$0xff] %v4886_v21  ;;  %1585 = vmatmul.f32.gmra.mxu3 %v6030_v46 }
 0x215   :  { %1737 = vmatmul.f32.gmra.mxu1 %v4543_v13 }
 0x216   :  { %1666 = vmatmul.f32.gmra.mxu0 %v4543_v13  ;;  %v1109_v19 = vpop.f32.mrf.mxu2 }
 0x217   :  { %v1176_v3 = vpop.f32.mrf.mxu3  ;;  %v1110_v32 = vadd.f32 %v1109_v19, %v4754_v58  ;;  %v6036_v58 = vld [vmem:[#allocation24_spill] sm:$0xff] }
 0x218   :  { %v1177_v57 = vadd.f32 %v1176_v3, %v1106_v43  ;;  %v6034_v43 = vand.u32 4294901760, %v4722_v24 }
 0x21a   :  { %v4892_v31 = vpop.f32.mrf.mxu1  ;;  %1204 = vst.msk [vmem:[%s5825_s3 + $0x40] sm:$0xff] %vm1195_vm1, %v1177_v57 }
 0x21b   :  { %6031 = vst [vmem:[#allocation51_spill] sm:$0xff] %v4892_v31  ;;  %1778 = vmatmul.f32.vlgmr.msrb.gmra.mxu2 %v6032_v50  ;;  %v4899_v21 = vpop.f32.mrf.mxu0 }
 0x21c   :  { %1591 = vmatmul.f32.gmra.mxu3 %v6033_v10  ;;  %2518 = vmatpush.msrb.mxu2 %v4722_v24 }
 0x21d   :  { %2064 = vmatmul.f32.vlgmr.msrb.gmra.mxu1 %v4341_v14  ;;  %v6035_v14 = vand.u32 4294901760, %v4725_v53 }
 0x21e   :  { %2775 = vmatpush.msrb.mxu1 %v4711_v42  ;;  %1979 = vmatmul.f32.vlgmr.msrb.gmra.mxu0 %v4337_v5  ;;  %v1113_v39 = vpop.f32.mrf.mxu2  ;;  %v1366_v5 = vadd.f32 %v4777_v16, %v4780_v47  ;;  %v1370_v16 = vadd.f32 %v4788_v33, %v4795_v2  ;;  %v1374_v2 = vadd.f32 %v4801_v56, %v4808_v30  ;;  %v6042_v30 = vld [vmem:[#allocation33_spill] sm:$0xff]  ;;  %v6043_v56 = vld [vmem:[#allocation30_spill] sm:$0xff] }
 0x21f   :  { %2521 = vmatpush.msrb.mxu2 %v4725_v53  ;;  %2702 = vmatpush.msrb.mxu0 %v6034_v43  ;;  %v1180_v3 = vpop.f32.mrf.mxu3  ;;  %v1114_v24 = vadd.f32 %v1113_v39, %v4762_v25 }
 0x220   :  { %2777 = vmatpush.msrb.mxu1 %v4718_v45  ;;  %v1181_v57 = vadd.f32 %v1180_v3, %v1110_v32  ;;  %v6037_v3 = vld [vmem:[#allocation28_spill] sm:$0xff] }
 0x221   :  { %2706 = vmatpush.msrb.mxu0 %v6035_v14 }
 0x222   :  { %v4913_v31 = vpop.f32.mrf.mxu1  ;;  %1205 = vst.msk [vmem:[%s5825_s3 + $0x48] sm:$0xff] %vm1195_vm1, %v1181_v57 }
 0x223   :  { %1786 = vmatmul.f32.gmra.mxu2 %v6036_v58  ;;  %v4920_v19 = vpop.f32.mrf.mxu0 }
 0x224   :  { %1905 = vmatmul.f32.vlgmr.msrb.gmra.mxu3 %v4334_v0 }
 0x225   :  { %2070 = vmatmul.f32.gmra.mxu1 %v4357_v9  ;;  %2603 = vmatpush.msrb.mxu3 %v4711_v42 }
 0x226   :  { %1984 = vmatmul.f32.gmra.mxu0 %v4350_v29  ;;  %v1117_v14 = vpop.f32.mrf.mxu2  ;;  %v6040_v29 = vld [vmem:[#allocation37_spill] sm:$0xff] }
 0x227   :  { %2605 = vmatpush.msrb.mxu3 %v4718_v45  ;;  %v1184_v53 = vpop.f32.mrf.mxu3  ;;  %v1118_v42 = vadd.f32 %v1117_v14, %v4772_v59 }
 0x228   :  { %v1185_v32 = vadd.f32 %v1184_v53, %v1114_v24  ;;  %v6038_v53 = vld [vmem:[#allocation31_spill] sm:$0xff] }
 0x22a   :  { %v4928_v43 = vpop.f32.mrf.mxu1  ;;  %1206 = vst.msk [vmem:[%s5825_s3 + $0x50] sm:$0xff] %vm1195_vm1, %v1185_v32 }
 0x22b   :  { %1794 = vmatmul.f32.gmra.mxu2 %v6037_v3  ;;  %v4935_v57 = vpop.f32.mrf.mxu0 }
 0x22c   :  { %1909 = vmatmul.f32.gmra.mxu3 %v4343_v18 }
 0x22d   :  { %2076 = vmatmul.f32.gmra.mxu1 %v4377_v7 }
 0x22e   :  { %1989 = vmatmul.f32.gmra.mxu0 %v4369_v60  ;;  %v1121_v45 = vpop.f32.mrf.mxu2 }
 0x22f   :  { %v1188_v25 = vpop.f32.mrf.mxu3  ;;  %v1122_v59 = vadd.f32 %v1121_v45, %v4782_v54 }
 0x230   :  { %v1189_v39 = vadd.f32 %v1188_v25, %v1118_v42 }
 0x232   :  { %v1690_v24 = vpop.f32.mrf.mxu1  ;;  %1207 = vst.msk [vmem:[%s5825_s3 + $0x58] sm:$0xff] %vm1195_vm1, %v1189_v39  ;;  %v6039_v39 = vld [vmem:[#allocation34_spill] sm:$0xff] }
 0x233   :  { %1802 = vmatmul.f32.gmra.mxu2 %v6038_v53  ;;  %v1619_v32 = vpop.f32.mrf.mxu0 }
 0x234   :  { %1913 = vmatmul.f32.gmra.mxu3 %v4359_v15 }
 0x235   :  { %2082 = vmatmul.f32.gmra.mxu1 %v6005_v17  ;;  %v1362_v17 = vadd.f32 %v4767_v28, %v4770_v48 }
 0x236   :  { %1994 = vmatmul.f32.gmra.mxu0 %v4386_v27  ;;  %v1435_v14 = vpop.f32.mrf.mxu2 }
 0x237   :  { %v1192_v7 = vpop.f32.mrf.mxu3  ;;  %v1436_v54 = vadd.f32 %v1435_v14, %v1362_v17 }
 0x238   :  { %v1193_v42 = vadd.f32 %v1192_v7, %v1122_v59 }
 0x23a   :  { %v1694_v25 = vpop.f32.mrf.mxu1  ;;  %1209 = vst.msk [vmem:[%s5825_s3 + $0x60] sm:$0xf] %vm1208_vm2, %v1193_v42 }
 0x23b   :  { %1810 = vmatmul.f32.gmra.mxu2 %v6039_v39  ;;  %v1623_v9 = vpop.f32.mrf.mxu0 }
 0x23c   :  { %1917 = vmatmul.f32.gmra.mxu3 %v4379_v8 }
 0x23d   :  { %2088 = vmatmul.f32.gmra.mxu1 %v6007_v37 }
 0x23e   :  { %1999 = vmatmul.f32.gmra.mxu0 %v6004_v20  ;;  %v1440_v7 = vpop.f32.mrf.mxu2 }
 0x23f   :  { %v1520_v45 = vpop.f32.mrf.mxu3  ;;  %v1441_v28 = vadd.f32 %v1440_v7, %v1366_v5 }
 0x240   :  { %v1521_v59 = vadd.f32 %v1520_v45, %v1436_v54  ;;  %v6041_v45 = vld [vmem:[#allocation40_spill] sm:$0xff] }
 0x242   :  { %v1698_v27 = vpop.f32.mrf.mxu1  ;;  %v1620_v60 = vadd.f32 %v1619_v32, %v1521_v59 }
 0x243   :  { %1818 = vmatmul.f32.gmra.mxu2 %v6040_v29  ;;  %v1627_v42 = vpop.f32.mrf.mxu0 }
 0x244   :  { %v1691_v39 = vadd.f32 %v1690_v24, %v1620_v60  ;;  %1921 = vmatmul.f32.gmra.mxu3 %v4397_v41 }
 0x245   :  { %2094 = vmatmul.f32.gmra.mxu1 %v6009_v55 }
 0x246   :  { %3941 = vst.msk [vmem:[%s5825_s3 + $0x68] sm:$0xff] %vm1195_vm1, %v1691_v39  ;;  %2004 = vmatmul.f32.gmra.mxu0 %v6006_v38  ;;  %v1445_v48 = vpop.f32.mrf.mxu2 }
 0x247   :  { %v1526_v17 = vpop.f32.mrf.mxu3  ;;  %v1446_v5 = vadd.f32 %v1445_v48, %v1370_v16  ;;  %v1378_v16 = vadd.f32 %v6043_v56, %v6042_v30 }
 0x248   :  { %v1527_v32 = vadd.f32 %v1526_v17, %v1441_v28 }
 0x24a   :  { %v1702_v14 = vpop.f32.mrf.mxu1  ;;  %v1624_v54 = vadd.f32 %v1623_v9, %v1527_v32 }
 0x24b   :  { %1826 = vmatmul.f32.gmra.mxu2 %v6041_v45  ;;  %v1631_v60 = vpop.f32.mrf.mxu0 }
 0x24c   :  { %v1695_v47 = vadd.f32 %v1694_v25, %v1624_v54  ;;  %1925 = vmatmul.f32.gmra.mxu3 %v4414_v61 }
 0x24d   :  { %2100 = vmatmul.f32.gmra.mxu1 %v6013_v35 }
 0x24e   :  { %3942 = vst.msk [vmem:[%s5825_s3 + $0x70] sm:$0xff] %vm1195_vm1, %v1695_v47  ;;  %2009 = vmatmul.f32.gmra.mxu0 %v6008_v52  ;;  %v1450_v9 = vpop.f32.mrf.mxu2 }
 0x24f   :  { %v1532_v24 = vpop.f32.mrf.mxu3  ;;  %v1451_v28 = vadd.f32 %v1450_v9, %v1374_v2  ;;  %v6044_v9 = vld [vmem:[#allocation42_spill] sm:$0xff] }
 0x250   :  { %v1533_v39 = vadd.f32 %v1532_v24, %v1446_v5 }
 0x252   :  { %v1706_v7 = vpop.f32.mrf.mxu1  ;;  %v1628_v59 = vadd.f32 %v1627_v42, %v1533_v39 }
 0x253   :  { %1834 = vmatmul.f32.gmra.mxu2 %v4481_v62  ;;  %v1635_v33 = vpop.f32.mrf.mxu0 }
 0x254   :  { %v1699_v25 = vadd.f32 %v1698_v27, %v1628_v59  ;;  %1929 = vmatmul.f32.gmra.mxu3 %v4431_v4 }
 0x255   :  { %2106 = vmatmul.f32.gmra.mxu1 %v6017_v49 }
 0x256   :  { %3943 = vst.msk [vmem:[%s5825_s3 + $0x78] sm:$0xff] %vm1195_vm1, %v1699_v25  ;;  %2014 = vmatmul.f32.gmra.mxu0 %v6011_v23  ;;  %v1455_v42 = vpop.f32.mrf.mxu2  ;;  %v6045_v25 = vld [vmem:[#allocation48_spill] sm:$0xff] }
 0x257   :  { %v1538_v48 = vpop.f32.mrf.mxu3  ;;  %v1456_v5 = vadd.f32 %v1455_v42, %v1378_v16  ;;  %v6048_v16 = vld [vmem:[#allocation11_spill] sm:$0xff] }
 0x258   :  { %v1539_v17 = vadd.f32 %v1538_v48, %v1451_v28  ;;  %v6046_v28 = vld [vmem:[#allocation36_spill] sm:$0xff] }
 0x259   :  { %v6047_v48 = vld [vmem:[#allocation32_spill] sm:$0xff] }
 0x25a   :  { %v1710_v32 = vpop.f32.mrf.mxu1  ;;  %v1632_v54 = vadd.f32 %v1631_v60, %v1539_v17  ;;  %v1382_v17 = vadd.f32 %v6047_v48, %v6046_v28  ;;  %v6052_v48 = vld [vmem:[#allocation62_spill] sm:$0xff] }
 0x25b   :  { %1842 = vmatmul.f32.gmra.mxu2 %v4498_v40  ;;  %v1639_v27 = vpop.f32.mrf.mxu0 }
 0x25c   :  { %v1703_v47 = vadd.f32 %v1702_v14, %v1632_v54  ;;  %1933 = vmatmul.f32.gmra.mxu3 %v4448_v26 }
 0x25d   :  { %2112 = vmatmul.f32.gmra.mxu1 %v6021_v34  ;;  %v6054_v34 = vld [vmem:[#allocation39_spill] sm:$0xff] }
 0x25e   :  { %3944 = vst.msk [vmem:[%s5825_s3 + $0x80] sm:$0xff] %vm1195_vm1, %v1703_v47  ;;  %2019 = vmatmul.f32.gmra.mxu0 %v6044_v9  ;;  %v1460_v60 = vpop.f32.mrf.mxu2  ;;  %v6049_v47 = vld [vmem:[#allocation12_spill] sm:$0xff] }
 0x25f   :  { %v1544_v24 = vpop.f32.mrf.mxu3  ;;  %v1461_v42 = vadd.f32 %v1460_v60, %v1382_v17  ;;  %v6053_v17 = vld [vmem:[#allocation50_spill] sm:$0xff] }
 0x260   :  { %v1545_v39 = vadd.f32 %v1544_v24, %v1456_v5  ;;  %v292_v5 = vadd.f32 %v6049_v47, %v6048_v16 }
 0x262   :  { %v1714_v59 = vpop.f32.mrf.mxu1  ;;  %v1636_v2 = vadd.f32 %v1635_v33, %v1545_v39  ;;  %v6050_v39 = vld [vmem:[#allocation9_spill] sm:$0xff]  ;;  %v371_v60 = vadd.f32 %v6052_v48, %v292_v5  ;;  %v6059_v48 = vld [vmem:[#allocation60_spill] sm:$0xff] }
 0x263   :  { %1850 = vmatmul.f32.gmra.mxu2 %v6045_v25  ;;  %v1643_v14 = vpop.f32.mrf.mxu0 }
 0x264   :  { %v1707_v54 = vadd.f32 %v1706_v7, %v1636_v2  ;;  %1937 = vmatmul.f32.gmra.mxu3 %v4465_v22  ;;  %v6051_v2 = vld [vmem:[#allocation10_spill] sm:$0xff] }
 0x265   :  { %2118 = vmatmul.f32.gmra.mxu1 %v6024_v36  ;;  %v288_v28 = vadd.f32 %v6051_v2, %v6050_v39 }
 0x266   :  { %3945 = vst.msk [vmem:[%s5825_s3 + $0x88] sm:$0xff] %vm1195_vm1, %v1707_v54  ;;  %2024 = vmatmul.f32.gmra.mxu0 %v6019_v6  ;;  %v1465_v33 = vpop.f32.mrf.mxu2  ;;  %v6055_v54 = vld [vmem:[#allocation35_spill] sm:$0xff] }
 0x267   :  { %v1550_v30 = vpop.f32.mrf.mxu3  ;;  %v1386_v49 = vadd.f32 %v6055_v54, %v6054_v34 }
 0x268   :  { %v1551_v56 = vadd.f32 %v1550_v30, %v1461_v42  ;;  %v6056_v42 = vld [vmem:[#allocation58_spill] sm:$0xff] }
 0x269   :  { %v366_v30 = vadd.f32 %v6056_v42, %v288_v28  ;;  %v1466_v16 = vadd.f32 %v1465_v33, %v1386_v49  ;;  %v6060_v28 = vld [vmem:[#allocation53_spill] sm:$0xff]  ;;  %v6061_v33 = vld [vmem:[#allocation72_spill] sm:$0xff]  ;;  %v6062_v42 = vld [vmem:[#allocation38_spill] sm:$0xff] }
 0x26a   :  { %v1718_v24 = vpop.f32.mrf.mxu1  ;;  %v1640_v7 = vadd.f32 %v1639_v27, %v1551_v56  ;;  %v6057_v56 = vld [vmem:[#allocation65_spill] sm:$0xff] }
 0x26b   :  { %1858 = vmatmul.f32.gmra.mxu2 %v6053_v17  ;;  %v1647_v36 = vpop.f32.mrf.mxu0  ;;  %v460_v47 = vadd.f32 %v6057_v56, %v371_v60  ;;  %v6063_v60 = vld [vmem:[#allocation56_spill] sm:$0xff] }
 0x26c   :  { %v1711_v6 = vadd.f32 %v1710_v32, %v1640_v7  ;;  %1941 = vmatmul.f32.gmra.mxu3 %v4486_v1  ;;  %v6058_v32 = vld [vmem:[#allocation61_spill] sm:$0xff] }
 0x26d   :  { %2124 = vmatmul.f32.gmra.mxu1 %v6027_v12  ;;  %v454_v7 = vadd.f32 %v6058_v32, %v366_v30  ;;  %v535_v54 = vadd.f32 %v6059_v48, %v460_v47  ;;  %v1390_v12 = vadd.f32 %v6062_v42, %v6061_v33  ;;  %v6064_v30 = vld [vmem:[#allocation59_spill] sm:$0xff]  ;;  %v6068_v42 = vld [vmem:[#allocation73_spill] sm:$0xff] }
 0x26e   :  { %3946 = vst.msk [vmem:[%s5825_s3 + $0x90] sm:$0xff] %vm1195_vm1, %v1711_v6  ;;  %2029 = vmatmul.f32.gmra.mxu0 %v4509_v11  ;;  %v1470_v27 = vpop.f32.mrf.mxu2 }
 0x26f   :  { %v1556_v5 = vpop.f32.mrf.mxu3  ;;  %v531_v56 = vadd.f32 %v6063_v60, %v454_v7  ;;  %v602_v47 = vadd.f32 %v6064_v30, %v535_v54  ;;  %v6066_v7 = vld [vmem:[#allocation57_spill] sm:$0xff] }
 0x270   :  { %v1557_v34 = vadd.f32 %v1556_v5, %v1466_v16  ;;  %v1471_v16 = vadd.f32 %v1470_v27, %v1390_v12  ;;  %v6067_v27 = vld [vmem:[#allocation74_spill] sm:$0xff] }
 0x271   :  { %v5042_v33 = vand.u32 4294901760, %v602_v47  ;;  %v1394_v60 = vadd.f32 %v6068_v42, %v6067_v27  ;;  %v6070_v42 = vld [vmem:[#allocation76_spill] sm:$0xff] }
 0x272   :  { %v1722_v39 = vpop.f32.mrf.mxu1  ;;  %v1644_v2 = vadd.f32 %v1643_v14, %v1557_v34 }
 0x273   :  { %1866 = vmatmul.f32.gmra.mxu2 %v6060_v28  ;;  %v1651_v49 = vpop.f32.mrf.mxu0  ;;  %v5057_v30 = vsub.f32 %v602_v47, %v5042_v33 }
 0x274   :  { %v1715_v6 = vadd.f32 %v1714_v59, %v1644_v2  ;;  %1945 = vmatmul.f32.gmra.mxu3 %v4503_v51  ;;  %v6065_v59 = vld [vmem:[#allocation55_spill] sm:$0xff] }
 0x275   :  { %2130 = vmatmul.f32.gmra.mxu1 %v6030_v46  ;;  %v598_v32 = vadd.f32 %v6065_v59, %v531_v56 }
 0x276   :  { %3947 = vst.msk [vmem:[%s5825_s3 + $0x98] sm:$0xff] %vm1195_vm1, %v1715_v6  ;;  %2034 = vmatmul.f32.gmra.mxu0 %v4530_v63  ;;  %v1475_v14 = vpop.f32.mrf.mxu2 }
 0x277   :  { %v1562_v5 = vpop.f32.mrf.mxu3  ;;  %v5049_v54 = vand.u32 4294901760, %v598_v32 }
 0x278   :  { %v1563_v34 = vadd.f32 %v1562_v5, %v1471_v16  ;;  %v1476_v16 = vadd.f32 %v1475_v14, %v1394_v60  ;;  %v5909_v14 = vand.u32 4294901760, %v5057_v30  ;;  %v6071_v60 = vld [vmem:[#allocation75_spill] sm:$0xff] }
 0x27a   :  { %v1726_v2 = vpop.f32.mrf.mxu1  ;;  %v1648_v48 = vadd.f32 %v1647_v36, %v1563_v34  ;;  %v6069_v36 = vld [vmem:[#allocation52_spill] sm:$0xff]  ;;  %v5060_v34 = vsub.f32 %v598_v32, %v5049_v54 }
 0x27b   :  { %1874 = vmatmul.f32.gmra.mxu2 %v6066_v7  ;;  %v1655_v12 = vpop.f32.mrf.mxu0 }
 0x27c   :  { %v1719_v6 = vadd.f32 %v1718_v24, %v1648_v48  ;;  %1949 = vmatmul.f32.gmra.mxu3 %v4522_v44  ;;  %v5908_v47 = vand.u32 4294901760, %v5060_v34 }
 0x27d   :  { %2136 = vmatmul.f32.gmra.mxu1 %v6033_v10 }
 0x27e   :  { %3948 = vst.msk [vmem:[%s5825_s3 + $0xa0] sm:$0xff] %vm1195_vm1, %v1719_v6  ;;  %2039 = vmatmul.f32.gmra.mxu0 %v6069_v36  ;;  %v1480_v56 = vpop.f32.mrf.mxu2  ;;  %v1398_v6 = vadd.f32 %v6071_v60, %v6070_v42  ;;  %v6072_v60 = vld [vmem:[#allocation51_spill] sm:$0xff] }
 0x27f   :  { %v1568_v5 = vpop.f32.mrf.mxu3 }
 0x280   :  { %v1569_v24 = vadd.f32 %v1568_v5, %v1476_v16  ;;  %v2985_v16 = vsub.f32 %v5057_v30, %v5909_v14 }
 0x282   :  { %v1730_v59 = vpop.f32.mrf.mxu1  ;;  %v1652_v48 = vadd.f32 %v1651_v49, %v1569_v24  ;;  %v1481_v49 = vadd.f32 %v1480_v56, %v1398_v6  ;;  %v1402_v6 = vadd.f32 %v6072_v60, %v4899_v21 }
 0x283   :  { %2163 = vmatmul.f32.vlgmr.msra.gmra.mxu2 %v4334_v0  ;;  %v1659_v27 = vpop.f32.mrf.mxu0 }
 0x284   :  { %v1723_v10 = vadd.f32 %v1722_v39, %v1652_v48  ;;  %1953 = vmatmul.f32.gmra.mxu3 %v4543_v13  ;;  %2860 = vmatpush.msra.mxu2 %v5042_v33  ;;  %v2986_v48 = vand.u32 4294901760, %v2985_v16 }
 0x285   :  { %2450 = vmatmul.f32.vlgmr.msra.gmra.mxu1 %v4334_v0 }
 0x286   :  { %3148 = vmatpush.msra.mxu1 %v5042_v33  ;;  %3949 = vst.msk [vmem:[%s5825_s3 + $0xa8] sm:$0xff] %vm1195_vm1, %v1723_v10  ;;  %2323 = vmatmul.f32.vlgmr.msra.gmra.mxu0 %v6032_v50  ;;  %v1485_v32 = vpop.f32.mrf.mxu2  ;;  %v2991_v10 = vsub.f32 %v5060_v34, %v5908_v47  ;;  %v6078_v47 = vld [vmem:[#allocation14_spill] sm:$0xff] }
 0x287   :  { %2862 = vmatpush.msra.mxu2 %v5049_v54  ;;  %3063 = vmatpush.msra.mxu0 %v5057_v30  ;;  %v1574_v39 = vpop.f32.mrf.mxu3 }
 0x288   :  { %3150 = vmatpush.msra.mxu1 %v5049_v54  ;;  %v1575_v56 = vadd.f32 %v1574_v39, %v1481_v49  ;;  %v2992_v49 = vand.u32 4294901760, %v2991_v10  ;;  %v1486_v39 = vadd.f32 %v1485_v32, %v1402_v6  ;;  %v1406_v10 = vadd.f32 %v4913_v31, %v4920_v19 }
 0x289   :  { %3066 = vmatpush.msra.mxu0 %v5060_v34  ;;  %v1410_v19 = vadd.f32 %v4928_v43, %v4935_v57 }
 0x28a   :  { %v1734_v5 = vpop.f32.mrf.mxu1  ;;  %v1656_v24 = vadd.f32 %v1655_v12, %v1575_v56 }
 0x28b   :  { %2167 = vmatmul.f32.gmra.mxu2 %v4343_v18  ;;  %v1663_v42 = vpop.f32.mrf.mxu0 }
 0x28c   :  { %v1727_v50 = vadd.f32 %v1726_v2, %v1656_v24  ;;  %2234 = vmatmul.f32.vlgmr.msra.gmra.mxu3 %v4334_v0 }
 0x28d   :  { %2454 = vmatmul.f32.gmra.mxu1 %v4343_v18  ;;  %2987 = vmatpush.msra.mxu3 %v2986_v48 }
 0x28e   :  { %3950 = vst.msk [vmem:[%s5825_s3 + $0xb0] sm:$0xff] %vm1195_vm1, %v1727_v50  ;;  %2331 = vmatmul.f32.gmra.mxu0 %v6036_v58  ;;  %v1490_v12 = vpop.f32.mrf.mxu2 }
 0x28f   :  { %2993 = vmatpush.msra.mxu3 %v2992_v49  ;;  %v1580_v16 = vpop.f32.mrf.mxu3  ;;  %v1491_v50 = vadd.f32 %v1490_v12, %v1406_v10 }
 0x290   :  { %v1581_v56 = vadd.f32 %v1580_v16, %v1486_v39 }
 0x292   :  { %v1738_v21 = vpop.f32.mrf.mxu1  ;;  %v1660_v2 = vadd.f32 %v1659_v27, %v1581_v56 }
 0x293   :  { %2171 = vmatmul.f32.gmra.mxu2 %v4359_v15  ;;  %v1667_v24 = vpop.f32.mrf.mxu0 }
 0x294   :  { %v1731_v32 = vadd.f32 %v1730_v59, %v1660_v2  ;;  %2238 = vmatmul.f32.gmra.mxu3 %v4343_v18 }
 0x295   :  { %2458 = vmatmul.f32.gmra.mxu1 %v4359_v15 }
 0x296   :  { %3951 = vst.msk [vmem:[%s5825_s3 + $0xb8] sm:$0xff] %vm1195_vm1, %v1731_v32  ;;  %2339 = vmatmul.f32.gmra.mxu0 %v6037_v3  ;;  %v1495_v27 = vpop.f32.mrf.mxu2 }
 0x297   :  { %v1586_v48 = vpop.f32.mrf.mxu3  ;;  %v1496_v39 = vadd.f32 %v1495_v27, %v1410_v19 }
 0x298   :  { %v1587_v60 = vadd.f32 %v1586_v48, %v1491_v50 }
 0x29a   :  { %v2065_v6 = vpop.f32.mrf.mxu1  ;;  %v1664_v49 = vadd.f32 %v1663_v42, %v1587_v60 }
 0x29b   :  { %2175 = vmatmul.f32.gmra.mxu2 %v4379_v8  ;;  %v1980_v31 = vpop.f32.mrf.mxu0 }
 0x29c   :  { %v1735_v59 = vadd.f32 %v1734_v5, %v1664_v49  ;;  %2242 = vmatmul.f32.gmra.mxu3 %v4359_v15  ;;  %v6073_v5 = vld [vmem:[#allocation34_spill] sm:$0xff] }
 0x29d   :  { %2462 = vmatmul.f32.gmra.mxu1 %v4379_v8 }
 0x29e   :  { %3952 = vst.msk [vmem:[%s5825_s3 + $0xc0] sm:$0xff] %vm1195_vm1, %v1735_v59  ;;  %2347 = vmatmul.f32.gmra.mxu0 %v6038_v53  ;;  %v1779_v42 = vpop.f32.mrf.mxu2 }
 0x29f   :  { %v1592_v12 = vpop.f32.mrf.mxu3 }
 0x2a0   :  { %v1593_v16 = vadd.f32 %v1592_v12, %v1496_v39 }
 0x2a2   :  { %v2071_v56 = vpop.f32.mrf.mxu1  ;;  %v1668_v2 = vadd.f32 %v1667_v24, %v1593_v16 }
 0x2a3   :  { %2179 = vmatmul.f32.gmra.mxu2 %v4397_v41  ;;  %v1985_v43 = vpop.f32.mrf.mxu0 }
 0x2a4   :  { %v1739_v57 = vadd.f32 %v1738_v21, %v1668_v2  ;;  %2246 = vmatmul.f32.gmra.mxu3 %v4379_v8 }
 0x2a5   :  { %2466 = vmatmul.f32.gmra.mxu1 %v4397_v41 }
 0x2a6   :  { %3953 = vst.msk [vmem:[%s5825_s3 + $0xc8] sm:$0xf] %vm1208_vm2, %v1739_v57  ;;  %2355 = vmatmul.f32.gmra.mxu0 %v6073_v5  ;;  %v1787_v10 = vpop.f32.mrf.mxu2 }
 0x2a7   :  { %v1906_v32 = vpop.f32.mrf.mxu3 }
 0x2a8   :  { %v1907_v50 = vadd.f32 %v1906_v32, %v1779_v42 }
 0x2aa   :  { %v2077_v27 = vpop.f32.mrf.mxu1  ;;  %v1981_v24 = vadd.f32 %v1980_v31, %v1907_v50 }
 0x2ab   :  { %2183 = vmatmul.f32.gmra.mxu2 %v4414_v61  ;;  %v1990_v48 = vpop.f32.mrf.mxu0 }
 0x2ac   :  { %v5125_v21 = vadd.f32 %v2065_v6, %v1981_v24  ;;  %2250 = vmatmul.f32.gmra.mxu3 %v4397_v41 }
 0x2ad   :  { %2470 = vmatmul.f32.gmra.mxu1 %v4414_v61 }
 0x2ae   :  { %2363 = vmatmul.f32.gmra.mxu0 %v6040_v29  ;;  %v1795_v60 = vpop.f32.mrf.mxu2 }
 0x2af   :  { %v1910_v49 = vpop.f32.mrf.mxu3 }
 0x2b0   :  { %v1911_v19 = vadd.f32 %v1910_v49, %v1787_v10 }
 0x2b2   :  { %v2083_v59 = vpop.f32.mrf.mxu1  ;;  %v1986_v39 = vadd.f32 %v1985_v43, %v1911_v19 }
 0x2b3   :  { %2187 = vmatmul.f32.gmra.mxu2 %v4431_v4  ;;  %v1995_v42 = vpop.f32.mrf.mxu0 }
 0x2b4   :  { %v5131_v31 = vadd.f32 %v2071_v56, %v1986_v39  ;;  %2254 = vmatmul.f32.gmra.mxu3 %v4414_v61 }
 0x2b5   :  { %2474 = vmatmul.f32.gmra.mxu1 %v4431_v4 }
 0x2b6   :  { %2371 = vmatmul.f32.gmra.mxu0 %v6041_v45  ;;  %v1803_v6 = vpop.f32.mrf.mxu2 }
 0x2b7   :  { %v1914_v12 = vpop.f32.mrf.mxu3 }
 0x2b8   :  { %v1915_v16 = vadd.f32 %v1914_v12, %v1795_v60  ;;  %v6074_v12 = vld [vmem:[#allocation15_spill] sm:$0xff] }
 0x2ba   :  { %v2089_v2 = vpop.f32.mrf.mxu1  ;;  %v1991_v57 = vadd.f32 %v1990_v48, %v1915_v16  ;;  %v6075_v16 = vld [vmem:[#allocation16_spill] sm:$0xff] }
 0x2bb   :  { %2191 = vmatmul.f32.gmra.mxu2 %v4448_v26  ;;  %v2000_v10 = vpop.f32.mrf.mxu0 }
 0x2bc   :  { %v5137_v43 = vadd.f32 %v2077_v27, %v1991_v57  ;;  %2258 = vmatmul.f32.gmra.mxu3 %v4431_v4  ;;  %v300_v57 = vadd.f32 %v6075_v16, %v6074_v12 }
 0x2bd   :  { %2478 = vmatmul.f32.gmra.mxu1 %v4448_v26 }
 0x2be   :  { %2379 = vmatmul.f32.gmra.mxu0 %v4481_v62  ;;  %v1811_v56 = vpop.f32.mrf.mxu2 }
 0x2bf   :  { %v1918_v32 = vpop.f32.mrf.mxu3 }
 0x2c0   :  { %v1919_v50 = vadd.f32 %v1918_v32, %v1803_v6 }
 0x2c2   :  { %v2095_v24 = vpop.f32.mrf.mxu1  ;;  %v1996_v49 = vadd.f32 %v1995_v42, %v1919_v50  ;;  %v6076_v42 = vld [vmem:[#allocation70_spill] sm:$0xff] }
 0x2c3   :  { %2195 = vmatmul.f32.gmra.mxu2 %v4465_v22  ;;  %v2005_v60 = vpop.f32.mrf.mxu0  ;;  %v381_v50 = vadd.f32 %v6076_v42, %v300_v57 }
 0x2c4   :  { %v5143_v48 = vadd.f32 %v2083_v59, %v1996_v49  ;;  %2262 = vmatmul.f32.gmra.mxu3 %v4448_v26  ;;  %v6077_v49 = vld [vmem:[#allocation13_spill] sm:$0xff] }
 0x2c5   :  { %2482 = vmatmul.f32.gmra.mxu1 %v4465_v22  ;;  %v296_v14 = vadd.f32 %v6078_v47, %v6077_v49  ;;  %v6082_v47 = vld [vmem:[#allocation68_spill] sm:$0xff] }
 0x2c6   :  { %2387 = vmatmul.f32.gmra.mxu0 %v4498_v40  ;;  %v1819_v27 = vpop.f32.mrf.mxu2  ;;  %v6081_v40 = vld [vmem:[#allocation69_spill] sm:$0xff] }
 0x2c7   :  { %v1922_v19 = vpop.f32.mrf.mxu3 }
 0x2c8   :  { %v1923_v39 = vadd.f32 %v1922_v19, %v1811_v56  ;;  %v6079_v56 = vld [vmem:[#allocation66_spill] sm:$0xff] }
 0x2c9   :  { %v376_v19 = vadd.f32 %v6079_v56, %v296_v14  ;;  %v6083_v14 = vld [vmem:[#allocation64_spill] sm:$0xff] }
 0x2ca   :  { %v2101_v6 = vpop.f32.mrf.mxu1  ;;  %v2001_v32 = vadd.f32 %v2000_v10, %v1923_v39  ;;  %v6080_v10 = vld [vmem:[#allocation71_spill] sm:$0xff] }
 0x2cb   :  { %2199 = vmatmul.f32.gmra.mxu2 %v4486_v1  ;;  %v2010_v59 = vpop.f32.mrf.mxu0  ;;  %v472_v39 = vadd.f32 %v6080_v10, %v381_v50  ;;  %v466_v45 = vadd.f32 %v6081_v40, %v376_v19  ;;  %v6084_v50 = vld [vmem:[#allocation67_spill] sm:$0xff] }
 0x2cc   :  { %v5154_v62 = vadd.f32 %v2089_v2, %v2001_v32  ;;  %2266 = vmatmul.f32.gmra.mxu3 %v4465_v22 }
 0x2cd   :  { %2486 = vmatmul.f32.gmra.mxu1 %v4486_v1  ;;  %v543_v2 = vadd.f32 %v6082_v47, %v472_v39  ;;  %v539_v56 = vadd.f32 %v6083_v14, %v466_v45  ;;  %v6085_v39 = vld [vmem:[#allocation63_spill] sm:$0xff] }
 0x2ce   :  { %2395 = vmatmul.f32.gmra.mxu0 %v6045_v25  ;;  %v1827_v12 = vpop.f32.mrf.mxu2  ;;  %v6087_v25 = vand.u32 4294901760, %v5057_v30  ;;  %v6090_v30 = vld [vmem:[#allocation18_spill] sm:$0xff] }
 0x2cf   :  { %v1926_v16 = vpop.f32.mrf.mxu3  ;;  %v610_v10 = vadd.f32 %v6084_v50, %v543_v2 }
 0x2d0   :  { %v1927_v57 = vadd.f32 %v1926_v16, %v1819_v27  ;;  %v606_v16 = vadd.f32 %v6085_v39, %v539_v56 }
 0x2d1   :  { %v5172_v47 = vand.u32 4294901760, %v610_v10 }
 0x2d2   :  { %v2107_v42 = vpop.f32.mrf.mxu1  ;;  %v2006_v29 = vadd.f32 %v2005_v60, %v1927_v57  ;;  %v5179_v45 = vand.u32 4294901760, %v606_v16 }
 0x2d3   :  { %2203 = vmatmul.f32.gmra.mxu2 %v4503_v51  ;;  %v2015_v32 = vpop.f32.mrf.mxu0  ;;  %v5183_v2 = vsub.f32 %v610_v10, %v5172_v47 }
 0x2d4   :  { %v5164_v49 = vadd.f32 %v2095_v24, %v2006_v29  ;;  %2270 = vmatmul.f32.gmra.mxu3 %v4486_v1  ;;  %v5186_v50 = vsub.f32 %v606_v16, %v5179_v45 }
 0x2d5   :  { %2490 = vmatmul.f32.gmra.mxu1 %v4503_v51 }
 0x2d6   :  { %2403 = vmatmul.f32.gmra.mxu0 %v6053_v17  ;;  %v1835_v27 = vpop.f32.mrf.mxu2 }
 0x2d7   :  { %v1930_v40 = vpop.f32.mrf.mxu3 }
 0x2d8   :  { %v1931_v60 = vadd.f32 %v1930_v40, %v1827_v12  ;;  %v5921_v40 = vand.u32 4294901760, %v5183_v2 }
 0x2da   :  { %v2113_v19 = vpop.f32.mrf.mxu1  ;;  %v2011_v57 = vadd.f32 %v2010_v59, %v1931_v60 }
 0x2db   :  { %2207 = vmatmul.f32.gmra.mxu2 %v4522_v44  ;;  %v2020_v29 = vpop.f32.mrf.mxu0 }
 0x2dc   :  { %v5175_v24 = vadd.f32 %v2101_v6, %v2011_v57  ;;  %2274 = vmatmul.f32.gmra.mxu3 %v4503_v51 }
 0x2dd   :  { %2494 = vmatmul.f32.gmra.mxu1 %v4522_v44 }
 0x2de   :  { %2411 = vmatmul.f32.gmra.mxu0 %v6060_v28  ;;  %v1843_v12 = vpop.f32.mrf.mxu2 }
 0x2df   :  { %v1934_v59 = vpop.f32.mrf.mxu3 }
 0x2e0   :  { %v1935_v14 = vadd.f32 %v1934_v59, %v1835_v27  ;;  %v5920_v27 = vand.u32 4294901760, %v5186_v50 }
 0x2e2   :  { %v2119_v56 = vpop.f32.mrf.mxu1  ;;  %v2016_v6 = vadd.f32 %v2015_v32, %v1935_v14  ;;  %v3530_v32 = vsub.f32 %v5183_v2, %v5921_v40 }
 0x2e3   :  { %2211 = vmatmul.f32.gmra.mxu2 %v4543_v13  ;;  %v2025_v60 = vpop.f32.mrf.mxu0 }
 0x2e4   :  { %v5190_v39 = vadd.f32 %v2107_v42, %v2016_v6  ;;  %2278 = vmatmul.f32.gmra.mxu3 %v4522_v44  ;;  %v3536_v42 = vsub.f32 %v5186_v50, %v5920_v27  ;;  %v6086_v6 = vld [vmem:[#allocation17_spill] sm:$0xff]  ;;  %v3531_v28 = vand.u32 4294901760, %v3530_v32  ;;  %v6089_v27 = vld [vmem:[#allocation19_spill] sm:$0xff] }
 0x2e5   :  { %2498 = vmatmul.f32.gmra.mxu1 %v4543_v13 }
 0x2e6   :  { %2419 = vmatmul.f32.gmra.mxu0 %v6066_v7  ;;  %v1851_v10 = vpop.f32.mrf.mxu2 }
 0x2e7   :  { %v1938_v57 = vpop.f32.mrf.mxu3 }
 0x2e8   :  { %v1939_v16 = vadd.f32 %v1938_v57, %v1843_v12  ;;  %v6088_v57 = vand.u32 4294901760, %v5060_v34 }
 0x2ea   :  { %v2125_v59 = vpop.f32.mrf.mxu1  ;;  %v2021_v14 = vadd.f32 %v2020_v29, %v1939_v16  ;;  %v3537_v29 = vand.u32 4294901760, %v3536_v42 }
 0x2eb   :  { %2524 = vmatmul.f32.vlgmr.msrb.gmra.mxu2 %v6086_v6  ;;  %v2030_v17 = vpop.f32.mrf.mxu0 }
 0x2ec   :  { %v5203_v7 = vadd.f32 %v2113_v19, %v2021_v14  ;;  %2282 = vmatmul.f32.gmra.mxu3 %v4543_v13  ;;  %3247 = vmatpush.msrb.mxu2 %v6087_v25 }
 0x2ed   :  { %2779 = vmatmul.f32.vlgmr.msrb.gmra.mxu1 %v4334_v0 }
 0x2ee   :  { %3532 = vmatpush.msrb.mxu1 %v3531_v28  ;;  %2708 = vmatmul.f32.vlgmr.msrb.gmra.mxu0 %v4334_v0  ;;  %v1859_v12 = vpop.f32.mrf.mxu2 }
 0x2ef   :  { %3251 = vmatpush.msrb.mxu2 %v6088_v57  ;;  %3405 = vmatpush.msrb.mxu0 %v5172_v47  ;;  %v1942_v32 = vpop.f32.mrf.mxu3  ;;  %v6091_v57 = vld [vmem:[#allocation23_spill] sm:$0xff] }
 0x2f0   :  { %3538 = vmatpush.msrb.mxu1 %v3537_v29  ;;  %v1943_v19 = vadd.f32 %v1942_v32, %v1851_v10 }
 0x2f1   :  { %3407 = vmatpush.msrb.mxu0 %v5179_v45 }
 0x2f2   :  { %v2131_v16 = vpop.f32.mrf.mxu1  ;;  %v2026_v14 = vadd.f32 %v2025_v60, %v1943_v19  ;;  %v6092_v19 = vld [vmem:[#allocation21_spill] sm:$0xff] }
 0x2f3   :  { %2529 = vmatmul.f32.gmra.mxu2 %v6089_v27  ;;  %v2035_v25 = vpop.f32.mrf.mxu0 }
 0x2f4   :  { %v5215_v28 = vadd.f32 %v2119_v56, %v2026_v14  ;;  %2609 = vmatmul.f32.vlgmr.msrb.gmra.mxu3 %v6090_v30 }
 0x2f5   :  { %2783 = vmatmul.f32.gmra.mxu1 %v4343_v18  ;;  %3320 = vmatpush.msrb.mxu3 %v5042_v33 }
 0x2f6   :  { %2712 = vmatmul.f32.gmra.mxu0 %v4343_v18  ;;  %v1867_v34 = vpop.f32.mrf.mxu2 }
 0x2f7   :  { %3322 = vmatpush.msrb.mxu3 %v5049_v54  ;;  %v1946_v10 = vpop.f32.mrf.mxu3 }
 0x2f8   :  { %v1947_v42 = vadd.f32 %v1946_v10, %v1859_v12  ;;  %v6093_v12 = vld [vmem:[#allocation27_spill] sm:$0xff] }
 0x2fa   :  { %v2137_v29 = vpop.f32.mrf.mxu1  ;;  %v2031_v60 = vadd.f32 %v2030_v17, %v1947_v42 }
 0x2fb   :  { %2534 = vmatmul.f32.gmra.mxu2 %v6091_v57  ;;  %v2040_v32 = vpop.f32.mrf.mxu0 }
 0x2fc   :  { %v5223_v56 = vadd.f32 %v2125_v59, %v2031_v60  ;;  %2615 = vmatmul.f32.gmra.mxu3 %v6092_v19  ;;  %v6094_v59 = vld [vmem:[#allocation25_spill] sm:$0xff] }
 0x2fd   :  { %2787 = vmatmul.f32.gmra.mxu1 %v4359_v15 }
 0x2fe   :  { %2716 = vmatmul.f32.gmra.mxu0 %v4359_v15  ;;  %v1875_v33 = vpop.f32.mrf.mxu2 }
 0x2ff   :  { %v1950_v14 = vpop.f32.mrf.mxu3 }
 0x300   :  { %v1951_v40 = vadd.f32 %v1950_v14, %v1867_v34 }
 0x302   :  { %v5228_v5 = vpop.f32.mrf.mxu1  ;;  %v2036_v54 = vadd.f32 %v2035_v25, %v1951_v40 }
 0x303   :  { %2539 = vmatmul.f32.gmra.mxu2 %v6093_v12  ;;  %v5231_v17 = vpop.f32.mrf.mxu0 }
 0x304   :  { %v5233_v10 = vadd.f32 %v2131_v16, %v2036_v54  ;;  %2621 = vmatmul.f32.gmra.mxu3 %v6094_v59  ;;  %v6095_v16 = vld [vmem:[#allocation29_spill] sm:$0xff] }
 0x305   :  { %2791 = vmatmul.f32.gmra.mxu1 %v4379_v8 }
 0x306   :  { %2720 = vmatmul.f32.gmra.mxu0 %v4379_v8  ;;  %v2164_v42 = vpop.f32.mrf.mxu2 }
 0x307   :  { %v1954_v60 = vpop.f32.mrf.mxu3  ;;  %v2165_v14 = vadd.f32 %v2164_v42, %v5125_v21 }
 0x308   :  { %v1955_v15 = vadd.f32 %v1954_v60, %v1875_v33 }
 0x30a   :  { %v5238_v53 = vpop.f32.mrf.mxu1  ;;  %v2041_v34 = vadd.f32 %v2040_v32, %v1955_v15 }
 0x30b   :  { %2544 = vmatmul.f32.gmra.mxu2 %v6004_v20  ;;  %v5241_v40 = vpop.f32.mrf.mxu0 }
 0x30c   :  { %v5243_v25 = vadd.f32 %v2137_v29, %v2041_v34  ;;  %2627 = vmatmul.f32.gmra.mxu3 %v6095_v16 }
 0x30d   :  { %2795 = vmatmul.f32.gmra.mxu1 %v4397_v41 }
 0x30e   :  { %2724 = vmatmul.f32.gmra.mxu0 %v4397_v41  ;;  %v2168_v54 = vpop.f32.mrf.mxu2 }
 0x30f   :  { %v2235_v8 = vpop.f32.mrf.mxu3  ;;  %v2169_v21 = vadd.f32 %v2168_v54, %v5131_v31 }
 0x310   :  { %v2236_v33 = vadd.f32 %v2235_v8, %v2165_v14 }
 0x312   :  { %v5249_v60 = vpop.f32.mrf.mxu1  ;;  %3954 = vst.msk [vmem:[%s5825_s3 + $0xd0] sm:$0xff] %vm1195_vm1, %v2236_v33 }
 0x313   :  { %2549 = vmatmul.f32.gmra.mxu2 %v6006_v38  ;;  %v5256_v15 = vpop.f32.mrf.mxu0 }
 0x314   :  { %2633 = vmatmul.f32.gmra.mxu3 %v6007_v37 }
 0x315   :  { %2799 = vmatmul.f32.gmra.mxu1 %v4414_v61 }
 0x316   :  { %2728 = vmatmul.f32.gmra.mxu0 %v4414_v61  ;;  %v2172_v8 = vpop.f32.mrf.mxu2 }
 0x317   :  { %v2239_v29 = vpop.f32.mrf.mxu3  ;;  %v2173_v31 = vadd.f32 %v2172_v8, %v5137_v43 }
 0x318   :  { %v2240_v32 = vadd.f32 %v2239_v29, %v2169_v21 }
 0x31a   :  { %v5262_v42 = vpop.f32.mrf.mxu1  ;;  %3955 = vst.msk [vmem:[%s5825_s3 + $0xd8] sm:$0xff] %vm1195_vm1, %v2240_v32 }
 0x31b   :  { %2554 = vmatmul.f32.gmra.mxu2 %v6008_v52  ;;  %v5269_v34 = vpop.f32.mrf.mxu0 }
 0x31c   :  { %2639 = vmatmul.f32.gmra.mxu3 %v6009_v55 }
 0x31d   :  { %2803 = vmatmul.f32.gmra.mxu1 %v4431_v4 }
 0x31e   :  { %2732 = vmatmul.f32.gmra.mxu0 %v4431_v4  ;;  %v2176_v14 = vpop.f32.mrf.mxu2 }
 0x31f   :  { %v2243_v54 = vpop.f32.mrf.mxu3  ;;  %v2177_v43 = vadd.f32 %v2176_v14, %v5143_v48 }
 0x320   :  { %v2244_v33 = vadd.f32 %v2243_v54, %v2173_v31 }
 0x322   :  { %v5275_v21 = vpop.f32.mrf.mxu1  ;;  %3956 = vst.msk [vmem:[%s5825_s3 + $0xe0] sm:$0xff] %vm1195_vm1, %v2244_v33 }
 0x323   :  { %6096 = vst [vmem:[#allocation24_spill] sm:$0xff] %v5275_v21  ;;  %2559 = vmatmul.f32.gmra.mxu2 %v6011_v23  ;;  %v5282_v29 = vpop.f32.mrf.mxu0  ;;  %v6099_v21 = vld [vmem:[#allocation41_spill] sm:$0xff] }
 0x324   :  { %2645 = vmatmul.f32.gmra.mxu3 %v6013_v35 }
 0x325   :  { %2807 = vmatmul.f32.gmra.mxu1 %v4448_v26 }
 0x326   :  { %2736 = vmatmul.f32.gmra.mxu0 %v4448_v26  ;;  %v2180_v8 = vpop.f32.mrf.mxu2 }
 0x327   :  { %v2247_v32 = vpop.f32.mrf.mxu3  ;;  %v2181_v48 = vadd.f32 %v2180_v8, %v5154_v62 }
 0x328   :  { %v2248_v31 = vadd.f32 %v2247_v32, %v2177_v43 }
 0x32a   :  { %v5288_v54 = vpop.f32.mrf.mxu1  ;;  %3957 = vst.msk [vmem:[%s5825_s3 + $0xe8] sm:$0xff] %vm1195_vm1, %v2248_v31  ;;  %v6101_v31 = vld [vmem:[#allocation45_spill] sm:$0xff] }
 0x32b   :  { %6097 = vst [vmem:[#allocation28_spill] sm:$0xff] %v5288_v54  ;;  %2564 = vmatmul.f32.gmra.mxu2 %v6044_v9  ;;  %v5295_v33 = vpop.f32.mrf.mxu0  ;;  %v6103_v9 = vld [vmem:[#allocation44_spill] sm:$0xff] }
 0x32c   :  { %6098 = vst [vmem:[#allocation33_spill] sm:$0xff] %v5295_v33  ;;  %2651 = vmatmul.f32.gmra.mxu3 %v6099_v21 }
 0x32d   :  { %2811 = vmatmul.f32.gmra.mxu1 %v4465_v22 }
 0x32e   :  { %2740 = vmatmul.f32.gmra.mxu0 %v4465_v22  ;;  %v2184_v14 = vpop.f32.mrf.mxu2 }
 0x32f   :  { %v2251_v43 = vpop.f32.mrf.mxu3  ;;  %v2185_v62 = vadd.f32 %v2184_v14, %v5164_v49 }
 0x330   :  { %v2252_v32 = vadd.f32 %v2251_v43, %v2181_v48 }
 0x332   :  { %v5301_v54 = vpop.f32.mrf.mxu1  ;;  %3958 = vst.msk [vmem:[%s5825_s3 + $0xf0] sm:$0xff] %vm1195_vm1, %v2252_v32 }
 0x333   :  { %6100 = vst [vmem:[#allocation30_spill] sm:$0xff] %v5301_v54  ;;  %2569 = vmatmul.f32.gmra.mxu2 %v6101_v31  ;;  %v5308_v33 = vpop.f32.mrf.mxu0 }
 0x334   :  { %6102 = vst [vmem:[#allocation36_spill] sm:$0xff] %v5308_v33  ;;  %2657 = vmatmul.f32.gmra.mxu3 %v6103_v9  ;;  %v6106_v33 = vld [vmem:[#allocation47_spill] sm:$0xff] }
 0x335   :  { %2815 = vmatmul.f32.gmra.mxu1 %v4486_v1 }
 0x336   :  { %2744 = vmatmul.f32.gmra.mxu0 %v4486_v1  ;;  %v2188_v8 = vpop.f32.mrf.mxu2 }
 0x337   :  { %v2255_v48 = vpop.f32.mrf.mxu3  ;;  %v2189_v49 = vadd.f32 %v2188_v8, %v5175_v24 }
 0x338   :  { %v2256_v43 = vadd.f32 %v2255_v48, %v2185_v62 }
 0x33a   :  { %v5314_v54 = vpop.f32.mrf.mxu1  ;;  %3959 = vst.msk [vmem:[%s5825_s3 + $0xf8] sm:$0xff] %vm1195_vm1, %v2256_v43 }
 0x33b   :  { %6104 = vst [vmem:[#allocation32_spill] sm:$0xff] %v5314_v54  ;;  %2574 = vmatmul.f32.gmra.mxu2 %v4509_v11  ;;  %v5321_v32 = vpop.f32.mrf.mxu0 }
 0x33c   :  { %6105 = vst [vmem:[#allocation11_spill] sm:$0xff] %v5321_v32  ;;  %2663 = vmatmul.f32.gmra.mxu3 %v6106_v33  ;;  %v6108_v32 = vld [vmem:[#allocation49_spill] sm:$0xff] }
 0x33d   :  { %2819 = vmatmul.f32.gmra.mxu1 %v4503_v51 }
 0x33e   :  { %2748 = vmatmul.f32.gmra.mxu0 %v4503_v51  ;;  %v2192_v14 = vpop.f32.mrf.mxu2 }
 0x33f   :  { %v2259_v62 = vpop.f32.mrf.mxu3  ;;  %v2193_v24 = vadd.f32 %v2192_v14, %v5190_v39 }
 0x340   :  { %v2260_v48 = vadd.f32 %v2259_v62, %v2189_v49 }
 0x342   :  { %v5327_v54 = vpop.f32.mrf.mxu1  ;;  %3960 = vst.msk [vmem:[%s5825_s3 + $0x100] sm:$0xff] %vm1195_vm1, %v2260_v48 }
 0x343   :  { %6107 = vst [vmem:[#allocation12_spill] sm:$0xff] %v5327_v54  ;;  %2579 = vmatmul.f32.gmra.mxu2 %v4530_v63  ;;  %v5334_v43 = vpop.f32.mrf.mxu0 }
 0x344   :  { %2669 = vmatmul.f32.gmra.mxu3 %v6108_v32 }
 0x345   :  { %2823 = vmatmul.f32.gmra.mxu1 %v4522_v44 }
 0x346   :  { %2752 = vmatmul.f32.gmra.mxu0 %v4522_v44  ;;  %v2196_v8 = vpop.f32.mrf.mxu2 }
 0x347   :  { %v2263_v49 = vpop.f32.mrf.mxu3  ;;  %v2197_v39 = vadd.f32 %v2196_v8, %v5203_v7 }
 0x348   :  { %v2264_v62 = vadd.f32 %v2263_v49, %v2193_v24 }
 0x34a   :  { %v5340_v54 = vpop.f32.mrf.mxu1  ;;  %3961 = vst.msk [vmem:[%s5825_s3 + $0x108] sm:$0xff] %vm1195_vm1, %v2264_v62  ;;  %v6112_v62 = vld [vmem:[#allocation20_spill] sm:$0xff] }
 0x34b   :  { %6109 = vst [vmem:[#allocation9_spill] sm:$0xff] %v5340_v54  ;;  %2584 = vmatmul.f32.gmra.mxu2 %v6069_v36  ;;  %v5347_v48 = vpop.f32.mrf.mxu0  ;;  %v6113_v36 = vld [vmem:[#allocation54_spill] sm:$0xff] }
 0x34c   :  { %6110 = vst [vmem:[#allocation10_spill] sm:$0xff] %v5347_v48  ;;  %2675 = vmatmul.f32.gmra.mxu3 %v6030_v46 }
 0x34d   :  { %2827 = vmatmul.f32.gmra.mxu1 %v4543_v13 }
 0x34e   :  { %2756 = vmatmul.f32.gmra.mxu0 %v4543_v13  ;;  %v2200_v14 = vpop.f32.mrf.mxu2 }
 0x34f   :  { %v2267_v24 = vpop.f32.mrf.mxu3  ;;  %v2201_v7 = vadd.f32 %v2200_v14, %v5215_v28 }
 0x350   :  { %v2268_v49 = vadd.f32 %v2267_v24, %v2197_v39  ;;  %v6114_v39 = vand.u32 4294901760, %v5183_v2 }
 0x352   :  { %v5353_v54 = vpop.f32.mrf.mxu1  ;;  %3962 = vst.msk [vmem:[%s5825_s3 + $0x110] sm:$0xff] %vm1195_vm1, %v2268_v49 }
 0x353   :  { %6111 = vst [vmem:[#allocation62_spill] sm:$0xff] %v5353_v54  ;;  %2868 = vmatmul.f32.vlgmr.msra.gmra.mxu2 %v6112_v62  ;;  %v5360_v48 = vpop.f32.mrf.mxu0 }
 0x354   :  { %2681 = vmatmul.f32.gmra.mxu3 %v6113_v36  ;;  %3608 = vmatpush.msra.mxu2 %v5183_v2 }
 0x355   :  { %3154 = vmatmul.f32.vlgmr.msra.gmra.mxu1 %v6090_v30  ;;  %v6115_v30 = vand.u32 4294901760, %v5186_v50 }
 0x356   :  { %3865 = vmatpush.msra.mxu1 %v5172_v47  ;;  %3069 = vmatmul.f32.vlgmr.msra.gmra.mxu0 %v6086_v6  ;;  %v2204_v8 = vpop.f32.mrf.mxu2  ;;  %v2456_v6 = vadd.f32 %v5238_v53, %v5241_v40 }
 0x357   :  { %3611 = vmatpush.msra.mxu2 %v5186_v50  ;;  %3792 = vmatpush.msra.mxu0 %v6114_v39  ;;  %v2271_v24 = vpop.f32.mrf.mxu3  ;;  %v2205_v2 = vadd.f32 %v2204_v8, %v5223_v56 }
 0x358   :  { %3867 = vmatpush.msra.mxu1 %v5179_v45  ;;  %v2272_v49 = vadd.f32 %v2271_v24, %v2201_v7 }
 0x359   :  { %3796 = vmatpush.msra.mxu0 %v6115_v30 }
 0x35a   :  { %v5374_v54 = vpop.f32.mrf.mxu1  ;;  %3963 = vst.msk [vmem:[%s5825_s3 + $0x118] sm:$0xff] %vm1195_vm1, %v2272_v49  ;;  %v6116_v49 = vld [vmem:[#allocation31_spill] sm:$0xff] }
 0x35b   :  { %2876 = vmatmul.f32.gmra.mxu2 %v6036_v58  ;;  %v5381_v28 = vpop.f32.mrf.mxu0 }
 0x35c   :  { %2995 = vmatmul.f32.vlgmr.msra.gmra.mxu3 %v4334_v0 }
 0x35d   :  { %3160 = vmatmul.f32.gmra.mxu1 %v6092_v19  ;;  %3693 = vmatpush.msra.mxu3 %v5172_v47  ;;  %v2452_v19 = vadd.f32 %v5228_v5, %v5231_v17 }
 0x35e   :  { %v2208_v50 = vpop.f32.mrf.mxu2  ;;  %3074 = vmatmul.f32.gmra.mxu0 %v6089_v27  ;;  %v6120_v27 = vld [vmem:[#allocation37_spill] sm:$0xff] }
 0x35f   :  { %3695 = vmatpush.msra.mxu3 %v5179_v45  ;;  %v2275_v30 = vpop.f32.mrf.mxu3  ;;  %v2209_v47 = vadd.f32 %v2208_v50, %v5233_v10 }
 0x360   :  { %v2276_v14 = vadd.f32 %v2275_v30, %v2205_v2  ;;  %v6117_v30 = vld [vmem:[#allocation22_spill] sm:$0xff] }
 0x362   :  { %v5389_v7 = vpop.f32.mrf.mxu1  ;;  %3964 = vst.msk [vmem:[%s5825_s3 + $0x120] sm:$0xff] %vm1195_vm1, %v2276_v14 }
 0x363   :  { %2884 = vmatmul.f32.gmra.mxu2 %v6037_v3  ;;  %v5396_v39 = vpop.f32.mrf.mxu0 }
 0x364   :  { %2999 = vmatmul.f32.gmra.mxu3 %v4343_v18 }
 0x365   :  { %3166 = vmatmul.f32.gmra.mxu1 %v6094_v59 }
 0x366   :  { %v2212_v45 = vpop.f32.mrf.mxu2  ;;  %3079 = vmatmul.f32.gmra.mxu0 %v6091_v57 }
 0x367   :  { %v2279_v56 = vpop.f32.mrf.mxu3  ;;  %v2213_v10 = vadd.f32 %v2212_v45, %v5243_v25 }
 0x368   :  { %v2280_v8 = vadd.f32 %v2279_v56, %v2209_v47 }
 0x36a   :  { %v2780_v24 = vpop.f32.mrf.mxu1  ;;  %3965 = vst.msk [vmem:[%s5825_s3 + $0x128] sm:$0xff] %vm1195_vm1, %v2280_v8  ;;  %v6118_v8 = vld [vmem:[#allocation34_spill] sm:$0xff] }
 0x36b   :  { %2892 = vmatmul.f32.gmra.mxu2 %v6116_v49  ;;  %v2709_v2 = vpop.f32.mrf.mxu0 }
 0x36c   :  { %3003 = vmatmul.f32.gmra.mxu3 %v6117_v30 }
 0x36d   :  { %3172 = vmatmul.f32.gmra.mxu1 %v6095_v16  ;;  %v6119_v16 = vld [vmem:[#allocation26_spill] sm:$0xff] }
 0x36e   :  { %v2525_v50 = vpop.f32.mrf.mxu2  ;;  %3084 = vmatmul.f32.gmra.mxu0 %v6093_v12 }
 0x36f   :  { %v2283_v14 = vpop.f32.mrf.mxu3  ;;  %v2526_v25 = vadd.f32 %v2525_v50, %v2452_v19 }
 0x370   :  { %v2284_v47 = vadd.f32 %v2283_v14, %v2213_v10 }
 0x372   :  { %v2784_v56 = vpop.f32.mrf.mxu1  ;;  %3966 = vst.msk [vmem:[%s5825_s3 + $0x130] sm:$0xf] %vm1208_vm2, %v2284_v47 }
 0x373   :  { %2900 = vmatmul.f32.gmra.mxu2 %v6118_v8  ;;  %v2713_v59 = vpop.f32.mrf.mxu0 }
 0x374   :  { %3007 = vmatmul.f32.gmra.mxu3 %v6119_v16 }
 0x375   :  { %3178 = vmatmul.f32.gmra.mxu1 %v6007_v37 }
 0x376   :  { %v2530_v45 = vpop.f32.mrf.mxu2  ;;  %3089 = vmatmul.f32.gmra.mxu0 %v6004_v20 }
 0x377   :  { %v2610_v10 = vpop.f32.mrf.mxu3  ;;  %v2531_v5 = vadd.f32 %v2530_v45, %v2456_v6 }
 0x378   :  { %v2611_v14 = vadd.f32 %v2610_v10, %v2526_v25  ;;  %v6121_v10 = vld [vmem:[#allocation40_spill] sm:$0xff] }
 0x37a   :  { %v2788_v12 = vpop.f32.mrf.mxu1  ;;  %v2710_v57 = vadd.f32 %v2709_v2, %v2611_v14 }
 0x37b   :  { %2908 = vmatmul.f32.gmra.mxu2 %v6120_v27  ;;  %v2717_v47 = vpop.f32.mrf.mxu0 }
 0x37c   :  { %v2781_v8 = vadd.f32 %v2780_v24, %v2710_v57  ;;  %3011 = vmatmul.f32.gmra.mxu3 %v4397_v41  ;;  %v2460_v57 = vadd.f32 %v5249_v60, %v5256_v15  ;;  %v2464_v15 = vadd.f32 %v5262_v42, %v5269_v34  ;;  %v6124_v42 = vld [vmem:[#allocation24_spill] sm:$0xff] }
 0x37d   :  { %3184 = vmatmul.f32.gmra.mxu1 %v6009_v55  ;;  %v2468_v34 = vadd.f32 %v6124_v42, %v5282_v29 }
 0x37e   :  { %3967 = vst.msk [vmem:[%s5825_s3 + $0x138] sm:$0xff] %vm1195_vm1, %v2781_v8  ;;  %v2535_v19 = vpop.f32.mrf.mxu2  ;;  %3094 = vmatmul.f32.gmra.mxu0 %v6006_v38 }
 0x37f   :  { %v2616_v17 = vpop.f32.mrf.mxu3  ;;  %v2536_v6 = vadd.f32 %v2535_v19, %v2460_v57 }
 0x380   :  { %v2617_v2 = vadd.f32 %v2616_v17, %v2531_v5  ;;  %v6122_v5 = vld [vmem:[#allocation43_spill] sm:$0xff] }
 0x382   :  { %v2792_v50 = vpop.f32.mrf.mxu1  ;;  %v2714_v25 = vadd.f32 %v2713_v59, %v2617_v2 }
 0x383   :  { %2916 = vmatmul.f32.gmra.mxu2 %v6121_v10  ;;  %v2721_v53 = vpop.f32.mrf.mxu0 }
 0x384   :  { %v2785_v40 = vadd.f32 %v2784_v56, %v2714_v25  ;;  %3015 = vmatmul.f32.gmra.mxu3 %v4414_v61 }
 0x385   :  { %3190 = vmatmul.f32.gmra.mxu1 %v6013_v35 }
 0x386   :  { %3968 = vst.msk [vmem:[%s5825_s3 + $0x140] sm:$0xff] %vm1195_vm1, %v2785_v40  ;;  %v2540_v24 = vpop.f32.mrf.mxu2  ;;  %3099 = vmatmul.f32.gmra.mxu0 %v6008_v52  ;;  %v6123_v40 = vld [vmem:[#allocation46_spill] sm:$0xff] }
 0x387   :  { %v2622_v59 = vpop.f32.mrf.mxu3  ;;  %v2541_v19 = vadd.f32 %v2540_v24, %v2464_v15 }
 0x388   :  { %v2623_v8 = vadd.f32 %v2622_v59, %v2536_v6 }
 0x38a   :  { %v2796_v45 = vpop.f32.mrf.mxu1  ;;  %v2718_v14 = vadd.f32 %v2717_v47, %v2623_v8  ;;  %v6125_v8 = vld [vmem:[#allocation42_spill] sm:$0xff] }
 0x38b   :  { %2924 = vmatmul.f32.gmra.mxu2 %v6122_v5  ;;  %v2725_v60 = vpop.f32.mrf.mxu0 }
 0x38c   :  { %v2789_v56 = vadd.f32 %v2788_v12, %v2718_v14  ;;  %3019 = vmatmul.f32.gmra.mxu3 %v4431_v4 }
 0x38d   :  { %3196 = vmatmul.f32.gmra.mxu1 %v6099_v21 }
 0x38e   :  { %3969 = vst.msk [vmem:[%s5825_s3 + $0x148] sm:$0xff] %vm1195_vm1, %v2789_v56  ;;  %v2545_v17 = vpop.f32.mrf.mxu2  ;;  %3104 = vmatmul.f32.gmra.mxu0 %v6011_v23 }
 0x38f   :  { %v2628_v47 = vpop.f32.mrf.mxu3  ;;  %v2546_v24 = vadd.f32 %v2545_v17, %v2468_v34 }
 0x390   :  { %v2629_v2 = vadd.f32 %v2628_v47, %v2541_v19  ;;  %v6126_v19 = vld [vmem:[#allocation48_spill] sm:$0xff] }
 0x391   :  { %v6128_v47 = vld [vmem:[#allocation28_spill] sm:$0xff] }
 0x392   :  { %v2800_v25 = vpop.f32.mrf.mxu1  ;;  %v2722_v57 = vadd.f32 %v2721_v53, %v2629_v2 }
 0x393   :  { %2932 = vmatmul.f32.gmra.mxu2 %v6123_v40  ;;  %v2729_v12 = vpop.f32.mrf.mxu0 }
 0x394   :  { %v2793_v6 = vadd.f32 %v2792_v50, %v2722_v57  ;;  %3023 = vmatmul.f32.gmra.mxu3 %v4448_v26  ;;  %v6127_v50 = vld [vmem:[#allocation33_spill] sm:$0xff] }
 0x395   :  { %3202 = vmatmul.f32.gmra.mxu1 %v6103_v9  ;;  %v2472_v2 = vadd.f32 %v6128_v47, %v6127_v50 }
 0x396   :  { %3970 = vst.msk [vmem:[%s5825_s3 + $0x150] sm:$0xff] %vm1195_vm1, %v2793_v6  ;;  %v2550_v59 = vpop.f32.mrf.mxu2  ;;  %3109 = vmatmul.f32.gmra.mxu0 %v6125_v8 }
 0x397   :  { %v2634_v53 = vpop.f32.mrf.mxu3  ;;  %v2551_v17 = vadd.f32 %v2550_v59, %v2472_v2 }
 0x398   :  { %v2635_v14 = vadd.f32 %v2634_v53, %v2546_v24  ;;  %v6129_v53 = vld [vmem:[#allocation50_spill] sm:$0xff] }
 0x39a   :  { %v2804_v15 = vpop.f32.mrf.mxu1  ;;  %v2726_v56 = vadd.f32 %v2725_v60, %v2635_v14  ;;  %v6130_v14 = vld [vmem:[#allocation36_spill] sm:$0xff] }
 0x39b   :  { %2940 = vmatmul.f32.gmra.mxu2 %v6126_v19  ;;  %v2733_v29 = vpop.f32.mrf.mxu0 }
 0x39c   :  { %v2797_v57 = vadd.f32 %v2796_v45, %v2726_v56  ;;  %3027 = vmatmul.f32.gmra.mxu3 %v4465_v22  ;;  %v6131_v56 = vld [vmem:[#allocation30_spill] sm:$0xff] }
 0x39d   :  { %3208 = vmatmul.f32.gmra.mxu1 %v6106_v33  ;;  %v2476_v50 = vadd.f32 %v6131_v56, %v6130_v14  ;;  %v6134_v14 = vld [vmem:[#allocation32_spill] sm:$0xff] }
 0x39e   :  { %3971 = vst.msk [vmem:[%s5825_s3 + $0x158] sm:$0xff] %vm1195_vm1, %v2797_v57  ;;  %v2555_v42 = vpop.f32.mrf.mxu2  ;;  %3114 = vmatmul.f32.gmra.mxu0 %v6101_v31 }
 0x39f   :  { %v2640_v60 = vpop.f32.mrf.mxu3  ;;  %v2556_v59 = vadd.f32 %v2555_v42, %v2476_v50 }
 0x3a0   :  { %v2641_v34 = vadd.f32 %v2640_v60, %v2551_v17 }
 0x3a2   :  { %v2808_v6 = vpop.f32.mrf.mxu1  ;;  %v2730_v24 = vadd.f32 %v2729_v12, %v2641_v34  ;;  %v6132_v34 = vld [vmem:[#allocation53_spill] sm:$0xff] }
 0x3a3   :  { %2948 = vmatmul.f32.gmra.mxu2 %v6129_v53  ;;  %v2737_v45 = vpop.f32.mrf.mxu0 }
 0x3a4   :  { %v2801_v47 = vadd.f32 %v2800_v25, %v2730_v24  ;;  %3031 = vmatmul.f32.gmra.mxu3 %v4486_v1  ;;  %v6133_v24 = vld [vmem:[#allocation11_spill] sm:$0xff] }
 0x3a5   :  { %3214 = vmatmul.f32.gmra.mxu1 %v6108_v32  ;;  %v2480_v56 = vadd.f32 %v6134_v14, %v6133_v24 }
 0x3a6   :  { %3972 = vst.msk [vmem:[%s5825_s3 + $0x160] sm:$0xff] %vm1195_vm1, %v2801_v47  ;;  %v2560_v2 = vpop.f32.mrf.mxu2  ;;  %3119 = vmatmul.f32.gmra.mxu0 %v4509_v11 }
 0x3a7   :  { %v2646_v12 = vpop.f32.mrf.mxu3  ;;  %v2561_v42 = vadd.f32 %v2560_v2, %v2480_v56  ;;  %v6137_v56 = vld [vmem:[#allocation52_spill] sm:$0xff] }
 0x3a8   :  { %v2647_v57 = vadd.f32 %v2646_v12, %v2556_v59 }
 0x3aa   :  { %v2812_v17 = vpop.f32.mrf.mxu1  ;;  %v2734_v60 = vadd.f32 %v2733_v29, %v2647_v57  ;;  %v6135_v57 = vld [vmem:[#allocation57_spill] sm:$0xff] }
 0x3ab   :  { %2956 = vmatmul.f32.gmra.mxu2 %v6132_v34  ;;  %v2741_v25 = vpop.f32.mrf.mxu0 }
 0x3ac   :  { %v2805_v32 = vadd.f32 %v2804_v15, %v2734_v60  ;;  %3035 = vmatmul.f32.gmra.mxu3 %v4503_v51  ;;  %v6136_v60 = vld [vmem:[#allocation12_spill] sm:$0xff] }
 0x3ad   :  { %3220 = vmatmul.f32.gmra.mxu1 %v6030_v46  ;;  %v2484_v24 = vadd.f32 %v6136_v60, %v5334_v43 }
 0x3ae   :  { %3973 = vst.msk [vmem:[%s5825_s3 + $0x168] sm:$0xff] %vm1195_vm1, %v2805_v32  ;;  %v2565_v50 = vpop.f32.mrf.mxu2  ;;  %3124 = vmatmul.f32.gmra.mxu0 %v4530_v63 }
 0x3af   :  { %v2652_v29 = vpop.f32.mrf.mxu3  ;;  %v2566_v2 = vadd.f32 %v2565_v50, %v2484_v24 }
 0x3b0   :  { %v2653_v47 = vadd.f32 %v2652_v29, %v2561_v42 }
 0x3b2   :  { %v2816_v59 = vpop.f32.mrf.mxu1  ;;  %v2738_v12 = vadd.f32 %v2737_v45, %v2653_v47 }
 0x3b3   :  { %2964 = vmatmul.f32.gmra.mxu2 %v6135_v57  ;;  %v2745_v15 = vpop.f32.mrf.mxu0 }
 0x3b4   :  { %v2809_v14 = vadd.f32 %v2808_v6, %v2738_v12  ;;  %3039 = vmatmul.f32.gmra.mxu3 %v4522_v44  ;;  %v6138_v6 = vld [vmem:[#allocation10_spill] sm:$0xff]  ;;  %v6139_v12 = vld [vmem:[#allocation9_spill] sm:$0xff] }
 0x3b5   :  { %3226 = vmatmul.f32.gmra.mxu1 %v6113_v36  ;;  %v2488_v60 = vadd.f32 %v6139_v12, %v6138_v6 }
 0x3b6   :  { %3974 = vst.msk [vmem:[%s5825_s3 + $0x170] sm:$0xff] %vm1195_vm1, %v2809_v14  ;;  %v2570_v32 = vpop.f32.mrf.mxu2  ;;  %3129 = vmatmul.f32.gmra.mxu0 %v6137_v56 }
 0x3b7   :  { %v2658_v45 = vpop.f32.mrf.mxu3  ;;  %v2571_v50 = vadd.f32 %v2570_v32, %v2488_v60 }
 0x3b8   :  { %v2659_v42 = vadd.f32 %v2658_v45, %v2566_v2 }
 0x3ba   :  { %v2820_v29 = vpop.f32.mrf.mxu1  ;;  %v2742_v47 = vadd.f32 %v2741_v25, %v2659_v42  ;;  %v6140_v42 = vld [vmem:[#allocation62_spill] sm:$0xff] }
 0x3bb   :  { %3253 = vmatmul.f32.vlgmr.msrb.gmra.mxu2 %v4334_v0  ;;  %v2749_v43 = vpop.f32.mrf.mxu0 }
 0x3bc   :  { %v2813_v36 = vadd.f32 %v2812_v17, %v2742_v47  ;;  %3043 = vmatmul.f32.gmra.mxu3 %v4543_v13  ;;  %v2492_v47 = vadd.f32 %v6140_v42, %v5360_v48 }
 0x3bd   :  { %3540 = vmatmul.f32.vlgmr.msrb.gmra.mxu1 %v4334_v0 }
 0x3be   :  { %3975 = vst.msk [vmem:[%s5825_s3 + $0x178] sm:$0xff] %vm1195_vm1, %v2813_v36  ;;  %v2575_v24 = vpop.f32.mrf.mxu2  ;;  %3413 = vmatmul.f32.vlgmr.msrb.gmra.mxu0 %v6112_v62 }
 0x3bf   :  { %v2664_v25 = vpop.f32.mrf.mxu3  ;;  %v2576_v32 = vadd.f32 %v2575_v24, %v2492_v47 }
 0x3c0   :  { %v2665_v14 = vadd.f32 %v2664_v25, %v2571_v50 }
 0x3c2   :  { %v2824_v2 = vpop.f32.mrf.mxu1  ;;  %v2746_v45 = vadd.f32 %v2745_v15, %v2665_v14 }
 0x3c3   :  { %3257 = vmatmul.f32.gmra.mxu2 %v4343_v18  ;;  %v2753_v17 = vpop.f32.mrf.mxu0 }
 0x3c4   :  { %v2817_v6 = vadd.f32 %v2816_v59, %v2746_v45  ;;  %3324 = vmatmul.f32.vlgmr.msrb.gmra.mxu3 %v4334_v0  ;;  %v2496_v59 = vadd.f32 %v5374_v54, %v5381_v28  ;;  %v2500_v28 = vadd.f32 %v5389_v7, %v5396_v39 }
 0x3c5   :  { %3544 = vmatmul.f32.gmra.mxu1 %v4343_v18 }
 0x3c6   :  { %3976 = vst.msk [vmem:[%s5825_s3 + $0x180] sm:$0xff] %vm1195_vm1, %v2817_v6  ;;  %v2580_v36 = vpop.f32.mrf.mxu2  ;;  %3421 = vmatmul.f32.gmra.mxu0 %v6036_v58 }
 0x3c7   :  { %v2670_v62 = vpop.f32.mrf.mxu3  ;;  %v2581_v24 = vadd.f32 %v2580_v36, %v2496_v59  ;;  %v6141_v36 = vld [vmem:[#allocation34_spill] sm:$0xff] }
 0x3c8   :  { %v2671_v15 = vadd.f32 %v2670_v62, %v2576_v32 }
 0x3ca   :  { %v2828_v12 = vpop.f32.mrf.mxu1  ;;  %v2750_v60 = vadd.f32 %v2749_v43, %v2671_v15 }
 0x3cb   :  { %3261 = vmatmul.f32.gmra.mxu2 %v6117_v30  ;;  %v2757_v48 = vpop.f32.mrf.mxu0 }
 0x3cc   :  { %v2821_v50 = vadd.f32 %v2820_v29, %v2750_v60  ;;  %3328 = vmatmul.f32.gmra.mxu3 %v4343_v18 }
 0x3cd   :  { %3548 = vmatmul.f32.gmra.mxu1 %v6117_v30 }
 0x3ce   :  { %3977 = vst.msk [vmem:[%s5825_s3 + $0x188] sm:$0xff] %vm1195_vm1, %v2821_v50  ;;  %v2585_v58 = vpop.f32.mrf.mxu2  ;;  %3429 = vmatmul.f32.gmra.mxu0 %v6037_v3 }
 0x3cf   :  { %v2676_v43 = vpop.f32.mrf.mxu3  ;;  %v2586_v42 = vadd.f32 %v2585_v58, %v2500_v28 }
 0x3d0   :  { %v2677_v25 = vadd.f32 %v2676_v43, %v2581_v24 }
 0x3d2   :  { %v3155_v14 = vpop.f32.mrf.mxu1  ;;  %v2754_v45 = vadd.f32 %v2753_v17, %v2677_v25 }
 0x3d3   :  { %3265 = vmatmul.f32.gmra.mxu2 %v6119_v16  ;;  %v3070_v54 = vpop.f32.mrf.mxu0 }
 0x3d4   :  { %v2825_v29 = vadd.f32 %v2824_v2, %v2754_v45  ;;  %3332 = vmatmul.f32.gmra.mxu3 %v6117_v30 }
 0x3d5   :  { %3552 = vmatmul.f32.gmra.mxu1 %v6119_v16 }
 0x3d6   :  { %3978 = vst.msk [vmem:[%s5825_s3 + $0x190] sm:$0xff] %vm1195_vm1, %v2825_v29  ;;  %v2869_v3 = vpop.f32.mrf.mxu2  ;;  %3437 = vmatmul.f32.gmra.mxu0 %v6116_v49 }
 0x3d7   :  { %v2682_v17 = vpop.f32.mrf.mxu3 }
 0x3d8   :  { %v2683_v47 = vadd.f32 %v2682_v17, %v2586_v42 }
 0x3da   :  { %v3161_v6 = vpop.f32.mrf.mxu1  ;;  %v2758_v32 = vadd.f32 %v2757_v48, %v2683_v47 }
 0x3db   :  { %3269 = vmatmul.f32.gmra.mxu2 %v4397_v41  ;;  %v3075_v7 = vpop.f32.mrf.mxu0 }
 0x3dc   :  { %v2829_v39 = vadd.f32 %v2828_v12, %v2758_v32  ;;  %3336 = vmatmul.f32.gmra.mxu3 %v6119_v16 }
 0x3dd   :  { %3556 = vmatmul.f32.gmra.mxu1 %v4397_v41 }
 0x3de   :  { %3979 = vst.msk [vmem:[%s5825_s3 + $0x198] sm:$0xf] %vm1208_vm2, %v2829_v39  ;;  %v2877_v2 = vpop.f32.mrf.mxu2  ;;  %3445 = vmatmul.f32.gmra.mxu0 %v6141_v36 }
 0x3df   :  { %v2996_v49 = vpop.f32.mrf.mxu3 }
 0x3e0   :  { %v2997_v62 = vadd.f32 %v2996_v49, %v2869_v3 }
 0x3e2   :  { %v3167_v15 = vpop.f32.mrf.mxu1  ;;  %v3071_v60 = vadd.f32 %v3070_v54, %v2997_v62 }
 0x3e3   :  { %3273 = vmatmul.f32.gmra.mxu2 %v4414_v61  ;;  %v3080_v48 = vpop.f32.mrf.mxu0 }
 0x3e4   :  { %v5550_v12 = vadd.f32 %v3155_v14, %v3071_v60  ;;  %3340 = vmatmul.f32.gmra.mxu3 %v4397_v41 }
 0x3e5   :  { %3560 = vmatmul.f32.gmra.mxu1 %v4414_v61 }
 0x3e6   :  { %v2885_v59 = vpop.f32.mrf.mxu2  ;;  %3453 = vmatmul.f32.gmra.mxu0 %v6120_v27 }
 0x3e7   :  { %v3000_v50 = vpop.f32.mrf.mxu3 }
 0x3e8   :  { %v3001_v24 = vadd.f32 %v3000_v50, %v2877_v2 }
 0x3ea   :  { %v3173_v58 = vpop.f32.mrf.mxu1  ;;  %v3076_v43 = vadd.f32 %v3075_v7, %v3001_v24 }
 0x3eb   :  { %3277 = vmatmul.f32.gmra.mxu2 %v4431_v4  ;;  %v3085_v25 = vpop.f32.mrf.mxu0 }
 0x3ec   :  { %v5556_v45 = vadd.f32 %v3161_v6, %v3076_v43  ;;  %3344 = vmatmul.f32.gmra.mxu3 %v4414_v61 }
 0x3ed   :  { %3564 = vmatmul.f32.gmra.mxu1 %v4431_v4 }
 0x3ee   :  { %v2893_v14 = vpop.f32.mrf.mxu2  ;;  %3461 = vmatmul.f32.gmra.mxu0 %v6121_v10 }
 0x3ef   :  { %v3004_v54 = vpop.f32.mrf.mxu3 }
 0x3f0   :  { %v3005_v28 = vadd.f32 %v3004_v54, %v2885_v59 }
 0x3f2   :  { %v3179_v29 = vpop.f32.mrf.mxu1  ;;  %v3081_v27 = vadd.f32 %v3080_v48, %v3005_v28 }
 0x3f3   :  { %3281 = vmatmul.f32.gmra.mxu2 %v4448_v26  ;;  %v3090_v42 = vpop.f32.mrf.mxu0 }
 0x3f4   :  { %v5562_v3 = vadd.f32 %v3167_v15, %v3081_v27  ;;  %3348 = vmatmul.f32.gmra.mxu3 %v4431_v4 }
 0x3f5   :  { %3568 = vmatmul.f32.gmra.mxu1 %v4448_v26 }
 0x3f6   :  { %v2901_v17 = vpop.f32.mrf.mxu2  ;;  %3469 = vmatmul.f32.gmra.mxu0 %v6122_v5 }
 0x3f7   :  { %v3008_v47 = vpop.f32.mrf.mxu3 }
 0x3f8   :  { %v3009_v6 = vadd.f32 %v3008_v47, %v2893_v14 }
 0x3fa   :  { %v3185_v32 = vpop.f32.mrf.mxu1  ;;  %v3086_v10 = vadd.f32 %v3085_v25, %v3009_v6 }
 0x3fb   :  { %3285 = vmatmul.f32.gmra.mxu2 %v4465_v22  ;;  %v3095_v7 = vpop.f32.mrf.mxu0 }
 0x3fc   :  { %v5568_v39 = vadd.f32 %v3173_v58, %v3086_v10  ;;  %3352 = vmatmul.f32.gmra.mxu3 %v4448_v26 }
 0x3fd   :  { %3572 = vmatmul.f32.gmra.mxu1 %v4465_v22 }
 0x3fe   :  { %v2909_v2 = vpop.f32.mrf.mxu2  ;;  %3477 = vmatmul.f32.gmra.mxu0 %v6123_v40 }
 0x3ff   :  { %v3012_v36 = vpop.f32.mrf.mxu3 }
 0x400   :  { %v3013_v49 = vadd.f32 %v3012_v36, %v2901_v17 }
 0x402   :  { %v3191_v62 = vpop.f32.mrf.mxu1  ;;  %v3091_v5 = vadd.f32 %v3090_v42, %v3013_v49 }
 0x403   :  { %3289 = vmatmul.f32.gmra.mxu2 %v4486_v1  ;;  %v3100_v15 = vpop.f32.mrf.mxu0 }
 0x404   :  { %v5574_v60 = vadd.f32 %v3179_v29, %v3091_v5  ;;  %3356 = vmatmul.f32.gmra.mxu3 %v4465_v22 }
 0x405   :  { %3576 = vmatmul.f32.gmra.mxu1 %v4486_v1 }
 0x406   :  { %v2917_v48 = vpop.f32.mrf.mxu2  ;;  %3485 = vmatmul.f32.gmra.mxu0 %v6126_v19 }
 0x407   :  { %v3016_v59 = vpop.f32.mrf.mxu3 }
 0x408   :  { %v3017_v50 = vadd.f32 %v3016_v59, %v2909_v2 }
 0x40a   :  { %v3197_v24 = vpop.f32.mrf.mxu1  ;;  %v3096_v40 = vadd.f32 %v3095_v7, %v3017_v50 }
 0x40b   :  { %3293 = vmatmul.f32.gmra.mxu2 %v4503_v51  ;;  %v3105_v58 = vpop.f32.mrf.mxu0 }
 0x40c   :  { %v5580_v43 = vadd.f32 %v3185_v32, %v3096_v40  ;;  %3360 = vmatmul.f32.gmra.mxu3 %v4486_v1  ;;  %v6143_v40 = vld [vmem:[#allocation19_spill] sm:$0xff] }
 0x40d   :  { %3580 = vmatmul.f32.gmra.mxu1 %v4503_v51 }
 0x40e   :  { %v2925_v25 = vpop.f32.mrf.mxu2  ;;  %3493 = vmatmul.f32.gmra.mxu0 %v6129_v53 }
 0x40f   :  { %v3020_v14 = vpop.f32.mrf.mxu3 }
 0x410   :  { %v3021_v54 = vadd.f32 %v3020_v14, %v2917_v48  ;;  %v6144_v14 = vld [vmem:[#allocation18_spill] sm:$0xff] }
 0x412   :  { %v3203_v28 = vpop.f32.mrf.mxu1  ;;  %v3101_v19 = vadd.f32 %v3100_v15, %v3021_v54 }
 0x413   :  { %3297 = vmatmul.f32.gmra.mxu2 %v4522_v44  ;;  %v3110_v29 = vpop.f32.mrf.mxu0 }
 0x414   :  { %v5586_v27 = vadd.f32 %v3191_v62, %v3101_v19  ;;  %3364 = vmatmul.f32.gmra.mxu3 %v4503_v51  ;;  %v6142_v62 = vld [vmem:[#allocation17_spill] sm:$0xff] }
 0x415   :  { %3584 = vmatmul.f32.gmra.mxu1 %v4522_v44 }
 0x416   :  { %v2933_v42 = vpop.f32.mrf.mxu2  ;;  %3501 = vmatmul.f32.gmra.mxu0 %v6132_v34 }
 0x417   :  { %v3024_v17 = vpop.f32.mrf.mxu3 }
 0x418   :  { %v3025_v47 = vadd.f32 %v3024_v17, %v2925_v25 }
 0x41a   :  { %v3209_v6 = vpop.f32.mrf.mxu1  ;;  %v3106_v53 = vadd.f32 %v3105_v58, %v3025_v47 }
 0x41b   :  { %3301 = vmatmul.f32.gmra.mxu2 %v4543_v13  ;;  %v3115_v32 = vpop.f32.mrf.mxu0 }
 0x41c   :  { %v5592_v10 = vadd.f32 %v3197_v24, %v3106_v53  ;;  %3368 = vmatmul.f32.gmra.mxu3 %v4522_v44  ;;  %v6146_v53 = vld [vmem:[#allocation21_spill] sm:$0xff] }
 0x41d   :  { %3588 = vmatmul.f32.gmra.mxu1 %v4543_v13 }
 0x41e   :  { %v2941_v7 = vpop.f32.mrf.mxu2  ;;  %3509 = vmatmul.f32.gmra.mxu0 %v6135_v57 }
 0x41f   :  { %v3028_v2 = vpop.f32.mrf.mxu3 }
 0x420   :  { %v3029_v36 = vadd.f32 %v3028_v2, %v2933_v42  ;;  %v6145_v42 = vld [vmem:[#allocation23_spill] sm:$0xff] }
 0x422   :  { %v3215_v49 = vpop.f32.mrf.mxu1  ;;  %v3111_v34 = vadd.f32 %v3110_v29, %v3029_v36  ;;  %v6147_v36 = vld [vmem:[#allocation27_spill] sm:$0xff] }
 0x423   :  { %3614 = vmatmul.f32.vlgmr.msra.gmra.mxu2 %v6142_v62  ;;  %v3120_v5 = vpop.f32.mrf.mxu0 }
 0x424   :  { %v5598_v15 = vadd.f32 %v3203_v28, %v3111_v34  ;;  %3372 = vmatmul.f32.gmra.mxu3 %v4543_v13 }
 0x425   :  { %3869 = vmatmul.f32.vlgmr.msra.gmra.mxu1 %v4334_v0 }
 0x426   :  { %v2949_v48 = vpop.f32.mrf.mxu2  ;;  %3798 = vmatmul.f32.vlgmr.msra.gmra.mxu0 %v4334_v0 }
 0x427   :  { %v3032_v59 = vpop.f32.mrf.mxu3 }
 0x428   :  { %v3033_v50 = vadd.f32 %v3032_v59, %v2941_v7 }
 0x42a   :  { %v3221_v24 = vpop.f32.mrf.mxu1  ;;  %v3116_v57 = vadd.f32 %v3115_v32, %v3033_v50 }
 0x42b   :  { %3619 = vmatmul.f32.gmra.mxu2 %v6143_v40  ;;  %v3125_v58 = vpop.f32.mrf.mxu0 }
 0x42c   :  { %v5604_v25 = vadd.f32 %v3209_v6, %v3116_v57  ;;  %3699 = vmatmul.f32.vlgmr.msra.gmra.mxu3 %v6144_v14 }
 0x42d   :  { %3873 = vmatmul.f32.gmra.mxu1 %v4343_v18 }
 0x42e   :  { %v2957_v54 = vpop.f32.mrf.mxu2  ;;  %3802 = vmatmul.f32.gmra.mxu0 %v4343_v18 }
 0x42f   :  { %v3036_v28 = vpop.f32.mrf.mxu3 }
 0x430   :  { %v3037_v19 = vadd.f32 %v3036_v28, %v2949_v48 }
 0x432   :  { %v3227_v29 = vpop.f32.mrf.mxu1  ;;  %v3121_v0 = vadd.f32 %v3120_v5, %v3037_v19 }
 0x433   :  { %3624 = vmatmul.f32.gmra.mxu2 %v6145_v42  ;;  %v3130_v17 = vpop.f32.mrf.mxu0 }
 0x434   :  { %v5610_v47 = vadd.f32 %v3215_v49, %v3121_v0  ;;  %3705 = vmatmul.f32.gmra.mxu3 %v6146_v53  ;;  %v6148_v49 = vld [vmem:[#allocation25_spill] sm:$0xff] }
 0x435   :  { %3877 = vmatmul.f32.gmra.mxu1 %v6117_v30 }
 0x436   :  { %v2965_v6 = vpop.f32.mrf.mxu2  ;;  %3806 = vmatmul.f32.gmra.mxu0 %v6117_v30 }
 0x437   :  { %v3040_v32 = vpop.f32.mrf.mxu3 }
 0x438   :  { %v3041_v7 = vadd.f32 %v3040_v32, %v2957_v54 }
 0x43a   :  { %v5615_v2 = vpop.f32.mrf.mxu1  ;;  %v3126_v18 = vadd.f32 %v3125_v58, %v3041_v7 }
 0x43b   :  { %3629 = vmatmul.f32.gmra.mxu2 %v6147_v36  ;;  %v5618_v34 = vpop.f32.mrf.mxu0 }
 0x43c   :  { %v5620_v62 = vadd.f32 %v3221_v24, %v3126_v18  ;;  %3711 = vmatmul.f32.gmra.mxu3 %v6148_v49  ;;  %v6149_v24 = vld [vmem:[#allocation29_spill] sm:$0xff] }
 0x43d   :  { %3881 = vmatmul.f32.gmra.mxu1 %v6119_v16 }
 0x43e   :  { %v3254_v5 = vpop.f32.mrf.mxu2  ;;  %3810 = vmatmul.f32.gmra.mxu0 %v6119_v16 }
 0x43f   :  { %v3044_v48 = vpop.f32.mrf.mxu3  ;;  %v3255_v58 = vadd.f32 %v3254_v5, %v5550_v12 }
 0x440   :  { %v3045_v30 = vadd.f32 %v3044_v48, %v2965_v6 }
 0x442   :  { %v5625_v59 = vpop.f32.mrf.mxu1  ;;  %v3131_v50 = vadd.f32 %v3130_v17, %v3045_v30 }
 0x443   :  { %3634 = vmatmul.f32.gmra.mxu2 %v6004_v20  ;;  %v5628_v57 = vpop.f32.mrf.mxu0 }
 0x444   :  { %v5630_v40 = vadd.f32 %v3227_v29, %v3131_v50  ;;  %3717 = vmatmul.f32.gmra.mxu3 %v6149_v24 }
 0x445   :  { %3885 = vmatmul.f32.gmra.mxu1 %v4397_v41 }
 0x446   :  { %v3258_v14 = vpop.f32.mrf.mxu2  ;;  %3814 = vmatmul.f32.gmra.mxu0 %v4397_v41 }
 0x447   :  { %v3325_v16 = vpop.f32.mrf.mxu3  ;;  %v3259_v12 = vadd.f32 %v3258_v14, %v5556_v45 }
 0x448   :  { %v3326_v54 = vadd.f32 %v3325_v16, %v3255_v58 }
 0x44a   :  { %v3549_v28 = vpop.f32.mrf.mxu1  ;;  %3980 = vst.msk [vmem:[%s5825_s3 + $0x1a0] sm:$0xff] %vm1195_vm1, %v3326_v54 }
 0x44b   :  { %3639 = vmatmul.f32.gmra.mxu2 %v6006_v38  ;;  %v3430_v20 = vpop.f32.mrf.mxu0 }
 0x44c   :  { %3723 = vmatmul.f32.gmra.mxu3 %v6007_v37  ;;  %v5642_v19 = vadd.f32 %v3549_v28, %v3430_v20 }
 0x44d   :  { %3889 = vmatmul.f32.gmra.mxu1 %v4414_v61 }
 0x44e   :  { %v3262_v41 = vpop.f32.mrf.mxu2  ;;  %3818 = vmatmul.f32.gmra.mxu0 %v4414_v61 }
 0x44f   :  { %v3329_v29 = vpop.f32.mrf.mxu3  ;;  %v3263_v45 = vadd.f32 %v3262_v41, %v5562_v3 }
 0x450   :  { %v3330_v0 = vadd.f32 %v3329_v29, %v3259_v12 }
 0x452   :  { %v3553_v42 = vpop.f32.mrf.mxu1  ;;  %3981 = vst.msk [vmem:[%s5825_s3 + $0x1a8] sm:$0xff] %vm1195_vm1, %v3330_v0 }
 0x453   :  { %3644 = vmatmul.f32.gmra.mxu2 %v6008_v52  ;;  %v3438_v38 = vpop.f32.mrf.mxu0 }
 0x454   :  { %3729 = vmatmul.f32.gmra.mxu3 %v6009_v55  ;;  %v5653_v37 = vadd.f32 %v3553_v42, %v3438_v38  ;;  %v6151_v42 = vld [vmem:[#allocation54_spill] sm:$0xff] }
 0x455   :  { %3893 = vmatmul.f32.gmra.mxu1 %v4431_v4 }
 0x456   :  { %v3266_v61 = vpop.f32.mrf.mxu2  ;;  %3822 = vmatmul.f32.gmra.mxu0 %v4431_v4 }
 0x457   :  { %v3333_v17 = vpop.f32.mrf.mxu3  ;;  %v3267_v3 = vadd.f32 %v3266_v61, %v5568_v39 }
 0x458   :  { %v3334_v53 = vadd.f32 %v3333_v17, %v3263_v45 }
 0x45a   :  { %v3557_v6 = vpop.f32.mrf.mxu1  ;;  %3982 = vst.msk [vmem:[%s5825_s3 + $0x1b0] sm:$0xff] %vm1195_vm1, %v3334_v53 }
 0x45b   :  { %3649 = vmatmul.f32.gmra.mxu2 %v6011_v23  ;;  %v3446_v55 = vpop.f32.mrf.mxu0 }
 0x45c   :  { %3735 = vmatmul.f32.gmra.mxu3 %v6013_v35  ;;  %v5664_v52 = vadd.f32 %v3557_v6, %v3446_v55 }
 0x45d   :  { %3897 = vmatmul.f32.gmra.mxu1 %v4448_v26 }
 0x45e   :  { %v3270_v4 = vpop.f32.mrf.mxu2  ;;  %3826 = vmatmul.f32.gmra.mxu0 %v4448_v26 }
 0x45f   :  { %v3337_v32 = vpop.f32.mrf.mxu3  ;;  %v3271_v39 = vadd.f32 %v3270_v4, %v5574_v60 }
 0x460   :  { %v3338_v7 = vadd.f32 %v3337_v32, %v3267_v3 }
 0x462   :  { %v3561_v18 = vpop.f32.mrf.mxu1  ;;  %3983 = vst.msk [vmem:[%s5825_s3 + $0x1b8] sm:$0xff] %vm1195_vm1, %v3338_v7 }
 0x463   :  { %3654 = vmatmul.f32.gmra.mxu2 %v6125_v8  ;;  %v3454_v35 = vpop.f32.mrf.mxu0 }
 0x464   :  { %3741 = vmatmul.f32.gmra.mxu3 %v6099_v21  ;;  %v5675_v23 = vadd.f32 %v3561_v18, %v3454_v35 }
 0x465   :  { %3901 = vmatmul.f32.gmra.mxu1 %v4465_v22 }
 0x466   :  { %v3274_v26 = vpop.f32.mrf.mxu2  ;;  %3830 = vmatmul.f32.gmra.mxu0 %v4465_v22 }
 0x467   :  { %v3341_v36 = vpop.f32.mrf.mxu3  ;;  %v3275_v60 = vadd.f32 %v3274_v26, %v5580_v43 }
 0x468   :  { %v3342_v49 = vadd.f32 %v3341_v36, %v3271_v39 }
 0x46a   :  { %v3565_v5 = vpop.f32.mrf.mxu1  ;;  %3984 = vst.msk [vmem:[%s5825_s3 + $0x1c0] sm:$0xff] %vm1195_vm1, %v3342_v49 }
 0x46b   :  { %3659 = vmatmul.f32.gmra.mxu2 %v6101_v31  ;;  %v3462_v21 = vpop.f32.mrf.mxu0 }
 0x46c   :  { %3747 = vmatmul.f32.gmra.mxu3 %v6103_v9  ;;  %v5686_v8 = vadd.f32 %v3565_v5, %v3462_v21 }
 0x46d   :  { %3905 = vmatmul.f32.gmra.mxu1 %v4486_v1 }
 0x46e   :  { %v3278_v22 = vpop.f32.mrf.mxu2  ;;  %3834 = vmatmul.f32.gmra.mxu0 %v4486_v1 }
 0x46f   :  { %v3345_v48 = vpop.f32.mrf.mxu3  ;;  %v3279_v43 = vadd.f32 %v3278_v22, %v5586_v27 }
 0x470   :  { %v3346_v30 = vadd.f32 %v3345_v48, %v3275_v60  ;;  %v3542_v48 = vadd.f32 %v5615_v2, %v5618_v34 }
 0x472   :  { %v3569_v50 = vpop.f32.mrf.mxu1  ;;  %3985 = vst.msk [vmem:[%s5825_s3 + $0x1c8] sm:$0xff] %vm1195_vm1, %v3346_v30 }
 0x473   :  { %3664 = vmatmul.f32.gmra.mxu2 %v4509_v11  ;;  %v3470_v9 = vpop.f32.mrf.mxu0 }
 0x474   :  { %3753 = vmatmul.f32.gmra.mxu3 %v6106_v33  ;;  %v5697_v31 = vadd.f32 %v3569_v50, %v3470_v9  ;;  %v6150_v33 = vld [vmem:[#allocation49_spill] sm:$0xff] }
 0x475   :  { %3909 = vmatmul.f32.gmra.mxu1 %v4503_v51 }
 0x476   :  { %v3282_v1 = vpop.f32.mrf.mxu2  ;;  %3838 = vmatmul.f32.gmra.mxu0 %v4503_v51 }
 0x477   :  { %v3349_v24 = vpop.f32.mrf.mxu3  ;;  %v3283_v27 = vadd.f32 %v3282_v1, %v5592_v10 }
 0x478   :  { %v3350_v58 = vadd.f32 %v3349_v24, %v3279_v43 }
 0x47a   :  { %v3573_v14 = vpop.f32.mrf.mxu1  ;;  %3986 = vst.msk [vmem:[%s5825_s3 + $0x1d0] sm:$0xff] %vm1195_vm1, %v3350_v58  ;;  %v3546_v58 = vadd.f32 %v5625_v59, %v5628_v57 }
 0x47b   :  { %3669 = vmatmul.f32.gmra.mxu2 %v4530_v63  ;;  %v3478_v11 = vpop.f32.mrf.mxu0 }
 0x47c   :  { %3759 = vmatmul.f32.gmra.mxu3 %v6150_v33  ;;  %v5708_v16 = vadd.f32 %v3573_v14, %v3478_v11 }
 0x47d   :  { %3913 = vmatmul.f32.gmra.mxu1 %v4522_v44 }
 0x47e   :  { %v3286_v51 = vpop.f32.mrf.mxu2  ;;  %3842 = vmatmul.f32.gmra.mxu0 %v4522_v44 }
 0x47f   :  { %v3353_v54 = vpop.f32.mrf.mxu3  ;;  %v3287_v10 = vadd.f32 %v3286_v51, %v5598_v15 }
 0x480   :  { %v3354_v28 = vadd.f32 %v3353_v54, %v3283_v27 }
 0x482   :  { %v3577_v20 = vpop.f32.mrf.mxu1  ;;  %3987 = vst.msk [vmem:[%s5825_s3 + $0x1d8] sm:$0xff] %vm1195_vm1, %v3354_v28 }
 0x483   :  { %3674 = vmatmul.f32.gmra.mxu2 %v6137_v56  ;;  %v3486_v63 = vpop.f32.mrf.mxu0 }
 0x484   :  { %3765 = vmatmul.f32.gmra.mxu3 %v6030_v46  ;;  %v5719_v12 = vadd.f32 %v3577_v20, %v3486_v63 }
 0x485   :  { %3917 = vmatmul.f32.gmra.mxu1 %v4543_v13 }
 0x486   :  { %v3290_v44 = vpop.f32.mrf.mxu2  ;;  %3846 = vmatmul.f32.gmra.mxu0 %v4543_v13 }
 0x487   :  { %v3357_v41 = vpop.f32.mrf.mxu3  ;;  %v3291_v38 = vadd.f32 %v3290_v44, %v5604_v25 }
 0x488   :  { %v3358_v29 = vadd.f32 %v3357_v41, %v3287_v10 }
 0x48a   :  { %v3581_v0 = vpop.f32.mrf.mxu1  ;;  %3988 = vst.msk [vmem:[%s5825_s3 + $0x1e0] sm:$0xff] %vm1195_vm1, %v3358_v29 }
 0x48b   :  { %v3494_v56 = vpop.f32.mrf.mxu0 }
 0x48c   :  { %3771 = vmatmul.f32.gmra.mxu3 %v6151_v42  ;;  %v5729_v46 = vadd.f32 %v3581_v0, %v3494_v56 }
 0x48e   :  { %v3294_v45 = vpop.f32.mrf.mxu2 }
 0x48f   :  { %v3361_v15 = vpop.f32.mrf.mxu3  ;;  %v3295_v6 = vadd.f32 %v3294_v45, %v5610_v47 }
 0x490   :  { %v3362_v61 = vadd.f32 %v3361_v15, %v3291_v38 }
 0x492   :  { %v3585_v17 = vpop.f32.mrf.mxu1  ;;  %3989 = vst.msk [vmem:[%s5825_s3 + $0x1e8] sm:$0xff] %vm1195_vm1, %v3362_v61 }
 0x493   :  { %v3502_v13 = vpop.f32.mrf.mxu0 }
 0x494   :  { %v5736_v53 = vadd.f32 %v3585_v17, %v3502_v13 }
 0x496   :  { %v3298_v55 = vpop.f32.mrf.mxu2 }
 0x497   :  { %v3365_v3 = vpop.f32.mrf.mxu3  ;;  %v3299_v18 = vadd.f32 %v3298_v55, %v5620_v62 }
 0x498   :  { %v3366_v4 = vadd.f32 %v3365_v3, %v3295_v6 }
 0x49a   :  { %v3589_v32 = vpop.f32.mrf.mxu1  ;;  %3990 = vst.msk [vmem:[%s5825_s3 + $0x1f0] sm:$0xff] %vm1195_vm1, %v3366_v4 }
 0x49b   :  { %v3510_v25 = vpop.f32.mrf.mxu0 }
 0x49c   :  { %v5743_v7 = vadd.f32 %v3589_v32, %v3510_v25 }
 0x49e   :  { %v3302_v35 = vpop.f32.mrf.mxu2 }
 0x49f   :  { %v3369_v39 = vpop.f32.mrf.mxu3  ;;  %v3303_v49 = vadd.f32 %v3302_v35, %v5630_v40 }
 0x4a0   :  { %v3370_v26 = vadd.f32 %v3369_v39, %v3299_v18 }
 0x4a2   :  { %v3870_v36 = vpop.f32.mrf.mxu1  ;;  %3991 = vst.msk [vmem:[%s5825_s3 + $0x1f8] sm:$0xff] %vm1195_vm1, %v3370_v26 }
 0x4a3   :  { %v3799_v47 = vpop.f32.mrf.mxu0 }
 0x4a6   :  { %v3615_v5 = vpop.f32.mrf.mxu2 }
 0x4a7   :  { %v3373_v21 = vpop.f32.mrf.mxu3  ;;  %v3616_v30 = vadd.f32 %v3615_v5, %v3542_v48 }
 0x4a8   :  { %v3374_v60 = vadd.f32 %v3373_v21, %v3303_v49 }
 0x4aa   :  { %v3874_v22 = vpop.f32.mrf.mxu1  ;;  %3992 = vst.msk [vmem:[%s5825_s3 + $0x200] sm:$0xf] %vm1208_vm2, %v3374_v60 }
 0x4ab   :  { %v3803_v62 = vpop.f32.mrf.mxu0 }
 0x4ae   :  { %v3620_v50 = vpop.f32.mrf.mxu2 }
 0x4af   :  { %v3700_v9 = vpop.f32.mrf.mxu3  ;;  %v3621_v11 = vadd.f32 %v3620_v50, %v3546_v58 }
 0x4b0   :  { %v3701_v43 = vadd.f32 %v3700_v9, %v3616_v30 }
 0x4b2   :  { %v3878_v1 = vpop.f32.mrf.mxu1  ;;  %v3800_v24 = vadd.f32 %v3799_v47, %v3701_v43 }
 0x4b3   :  { %v3807_v40 = vpop.f32.mrf.mxu0 }
 0x4b4   :  { %v3871_v14 = vadd.f32 %v3870_v36, %v3800_v24 }
 0x4b6   :  { %3993 = vst.msk [vmem:[%s5825_s3 + $0x208] sm:$0xff] %vm1195_vm1, %v3871_v14  ;;  %v3625_v33 = vpop.f32.mrf.mxu2 }
 0x4b7   :  { %v3706_v27 = vpop.f32.mrf.mxu3  ;;  %v3626_v20 = vadd.f32 %v3625_v33, %v5642_v19 }
 0x4b8   :  { %v3707_v2 = vadd.f32 %v3706_v27, %v3621_v11 }
 0x4ba   :  { %v3882_v34 = vpop.f32.mrf.mxu1  ;;  %v3804_v51 = vadd.f32 %v3803_v62, %v3707_v2 }
 0x4bb   :  { %v3811_v54 = vpop.f32.mrf.mxu0 }
 0x4bc   :  { %v3875_v28 = vadd.f32 %v3874_v22, %v3804_v51 }
 0x4be   :  { %3994 = vst.msk [vmem:[%s5825_s3 + $0x210] sm:$0xff] %vm1195_vm1, %v3875_v28  ;;  %v3630_v59 = vpop.f32.mrf.mxu2 }
 0x4bf   :  { %v3712_v57 = vpop.f32.mrf.mxu3  ;;  %v3631_v0 = vadd.f32 %v3630_v59, %v5653_v37 }
 0x4c0   :  { %v3713_v63 = vadd.f32 %v3712_v57, %v3626_v20 }
 0x4c2   :  { %v3886_v10 = vpop.f32.mrf.mxu1  ;;  %v3808_v44 = vadd.f32 %v3807_v40, %v3713_v63 }
 0x4c3   :  { %v3815_v41 = vpop.f32.mrf.mxu0 }
 0x4c4   :  { %v3879_v29 = vadd.f32 %v3878_v1, %v3808_v44 }
 0x4c6   :  { %3995 = vst.msk [vmem:[%s5825_s3 + $0x218] sm:$0xff] %vm1195_vm1, %v3879_v29  ;;  %v3635_v19 = vpop.f32.mrf.mxu2 }
 0x4c7   :  { %v3718_v56 = vpop.f32.mrf.mxu3  ;;  %v3636_v17 = vadd.f32 %v3635_v19, %v5664_v52 }
 0x4c8   :  { %v3719_v42 = vadd.f32 %v3718_v56, %v3631_v0 }
 0x4ca   :  { %v3812_v38 = vadd.f32 %v3811_v54, %v3719_v42  ;;  %v3890_v15 = vpop.f32.mrf.mxu1 }
 0x4cb   :  { %v3819_v45 = vpop.f32.mrf.mxu0 }
 0x4cc   :  { %v3883_v61 = vadd.f32 %v3882_v34, %v3812_v38 }
 0x4ce   :  { %3996 = vst.msk [vmem:[%s5825_s3 + $0x220] sm:$0xff] %vm1195_vm1, %v3883_v61  ;;  %v3640_v37 = vpop.f32.mrf.mxu2 }
 0x4cf   :  { %v3724_v13 = vpop.f32.mrf.mxu3  ;;  %v3641_v25 = vadd.f32 %v3640_v37, %v5675_v23 }
 0x4d0   :  { %v3725_v6 = vadd.f32 %v3724_v13, %v3636_v17 }
 0x4d2   :  { %v3816_v55 = vadd.f32 %v3815_v41, %v3725_v6  ;;  %v3894_v32 = vpop.f32.mrf.mxu1 }
 0x4d3   :  { %v3823_v3 = vpop.f32.mrf.mxu0 }
 0x4d4   :  { %v3887_v4 = vadd.f32 %v3886_v10, %v3816_v55 }
 0x4d6   :  { %3997 = vst.msk [vmem:[%s5825_s3 + $0x228] sm:$0xff] %vm1195_vm1, %v3887_v4  ;;  %v3645_v52 = vpop.f32.mrf.mxu2 }
 0x4d7   :  { %v3730_v18 = vpop.f32.mrf.mxu3  ;;  %v3646_v47 = vadd.f32 %v3645_v52, %v5686_v8 }
 0x4d8   :  { %v3731_v35 = vadd.f32 %v3730_v18, %v3641_v25 }
 0x4da   :  { %v3820_v39 = vadd.f32 %v3819_v45, %v3731_v35  ;;  %v3898_v5 = vpop.f32.mrf.mxu1 }
 0x4db   :  { %v3827_v36 = vpop.f32.mrf.mxu0 }
 0x4dc   :  { %v3891_v26 = vadd.f32 %v3890_v15, %v3820_v39 }
 0x4de   :  { %3998 = vst.msk [vmem:[%s5825_s3 + $0x230] sm:$0xff] %vm1195_vm1, %v3891_v26  ;;  %v3650_v49 = vpop.f32.mrf.mxu2 }
 0x4df   :  { %v3736_v23 = vpop.f32.mrf.mxu3  ;;  %v3651_v62 = vadd.f32 %v3650_v49, %v5697_v31 }
 0x4e0   :  { %v3737_v21 = vadd.f32 %v3736_v23, %v3646_v47 }
 0x4e2   :  { %v3824_v60 = vadd.f32 %v3823_v3, %v3737_v21  ;;  %v3902_v9 = vpop.f32.mrf.mxu1 }
 0x4e3   :  { %v3831_v30 = vpop.f32.mrf.mxu0 }
 0x4e4   :  { %v3895_v22 = vadd.f32 %v3894_v32, %v3824_v60 }
 0x4e6   :  { %3999 = vst.msk [vmem:[%s5825_s3 + $0x238] sm:$0xff] %vm1195_vm1, %v3895_v22  ;;  %v3655_v48 = vpop.f32.mrf.mxu2 }
 0x4e7   :  { %v3742_v8 = vpop.f32.mrf.mxu3  ;;  %v3656_v24 = vadd.f32 %v3655_v48, %v5708_v16 }
 0x4e8   :  { %v3743_v50 = vadd.f32 %v3742_v8, %v3651_v62 }
 0x4ea   :  { %v3828_v43 = vadd.f32 %v3827_v36, %v3743_v50  ;;  %v3906_v33 = vpop.f32.mrf.mxu1 }
 0x4eb   :  { %v3835_v14 = vpop.f32.mrf.mxu0 }
 0x4ec   :  { %v3899_v1 = vadd.f32 %v3898_v5, %v3828_v43 }
 0x4ee   :  { %4000 = vst.msk [vmem:[%s5825_s3 + $0x240] sm:$0xff] %vm1195_vm1, %v3899_v1  ;;  %v3660_v31 = vpop.f32.mrf.mxu2 }
 0x4ef   :  { %v3748_v40 = vpop.f32.mrf.mxu3  ;;  %v3661_v2 = vadd.f32 %v3660_v31, %v5719_v12 }
 0x4f0   :  { %v3749_v58 = vadd.f32 %v3748_v40, %v3656_v24 }
 0x4f2   :  { %v3832_v11 = vadd.f32 %v3831_v30, %v3749_v58  ;;  %v3910_v59 = vpop.f32.mrf.mxu1 }
 0x4f3   :  { %v3839_v28 = vpop.f32.mrf.mxu0 }
 0x4f4   :  { %v3903_v27 = vadd.f32 %v3902_v9, %v3832_v11 }
 0x4f6   :  { %4001 = vst.msk [vmem:[%s5825_s3 + $0x248] sm:$0xff] %vm1195_vm1, %v3903_v27  ;;  %v3665_v34 = vpop.f32.mrf.mxu2 }
 0x4f7   :  { %v3754_v16 = vpop.f32.mrf.mxu3  ;;  %v3666_v57 = vadd.f32 %v3665_v34, %v5729_v46 }
 0x4f8   :  { %v3755_v51 = vadd.f32 %v3754_v16, %v3661_v2 }
 0x4fa   :  { %v3836_v54 = vadd.f32 %v3835_v14, %v3755_v51  ;;  %v3914_v46 = vpop.f32.mrf.mxu1 }
 0x4fb   :  { %v3843_v29 = vpop.f32.mrf.mxu0 }
 0x4fc   :  { %v3907_v20 = vadd.f32 %v3906_v33, %v3836_v54 }
 0x4fe   :  { %4002 = vst.msk [vmem:[%s5825_s3 + $0x250] sm:$0xff] %vm1195_vm1, %v3907_v20  ;;  %v3670_v10 = vpop.f32.mrf.mxu2 }
 0x4ff   :  { %v3760_v12 = vpop.f32.mrf.mxu3  ;;  %v3671_v0 = vadd.f32 %v3670_v10, %v5736_v53 }
 0x500   :  { %v3761_v63 = vadd.f32 %v3760_v12, %v3666_v57 }
 0x502   :  { %v3840_v44 = vadd.f32 %v3839_v28, %v3761_v63  ;;  %v3918_v37 = vpop.f32.mrf.mxu1 }
 0x503   :  { %v3847_v53 = vpop.f32.mrf.mxu0 }
 0x504   :  { %v3911_v41 = vadd.f32 %v3910_v59, %v3840_v44 }
 0x506   :  { %4003 = vst.msk [vmem:[%s5825_s3 + $0x258] sm:$0xff] %vm1195_vm1, %v3911_v41  ;;  %v3675_v38 = vpop.f32.mrf.mxu2 }
 0x507   :  { %v3766_v19 = vpop.f32.mrf.mxu3  ;;  %v3676_v15 = vadd.f32 %v3675_v38, %v5743_v7 }
 0x508   :  { %v3767_v56 = vadd.f32 %v3766_v19, %v3671_v0 }
 0x50a   :  { %v3844_v42 = vadd.f32 %v3843_v29, %v3767_v56 }
 0x50c   :  { %v3915_v45 = vadd.f32 %v3914_v46, %v3844_v42 }
 0x50e   :  { %4004 = vst.msk [vmem:[%s5825_s3 + $0x260] sm:$0xff] %vm1195_vm1, %v3915_v45 }
 0x50f   :  { %v3772_v61 = vpop.f32.mrf.mxu3 }
 0x510   :  { %v3773_v17 = vadd.f32 %v3772_v61, %v3676_v15 }
 0x512   :  { %v3848_v13 = vadd.f32 %v3847_v53, %v3773_v17 }
 0x514   :  { %v3919_v6 = vadd.f32 %v3918_v37, %v3848_v13 }
 0x516   :  { %4005 = vst.msk [vmem:[%s5825_s3 + $0x268] sm:$0xf] %vm1208_vm2, %v3919_v6 }
 0x517   :  { %3939 = vsyncpa [#allocation3], 1 }
 0x518   :  { %3940 = vsyncpa [#allocation5], 1 }

</bundles_post_ra>
